<compile_context>
chip_gen: v6e
topology: v6e:2x2x1
jax: 0.10.0
libtpu: 0.0.40
codegen_flags: <defaults>
</compile_context>

<pallas_src>
import functools

import numpy as np
import jax
import jax.numpy as jnp
from jax.experimental import pallas as pl
from jax.experimental.pallas import tpu as pltpu


def _freq_sum_broadcast(v, F, C):
    """Sum a packed (T, F*C) slab over the frequency axis and broadcast the
    per-(t, channel) sums back across frequency, using only lane rotations.

    lane index = f*C + c; rolling by multiples of C cycles f and preserves c,
    so log2(F) roll+add steps leave every lane holding sum_f of its channel.
    Requires F to be a power of two (asserted in the wrapper).
    """
    FC = F * C
    s = v
    shift = C
    while shift < FC:
        s = s + pltpu.roll(s, shift, axis=1)
        shift *= 2
    return s


def _dense_block_kernel(x_ref, w_ref, bias_ref, gamma_ref, beta_ref, alpha_ref,
                        *out_refs, T, F, C, tap_off):
    """Fused DenseBlock for one batch element.

    x_ref     : (1, T, F*C)        input slab, packed lane-dense
    w_ref     : (NW, F*C, F*C)     banded conv weights, one per (layer, kt, slab)
    bias_ref  : (depth, F*C)       conv bias, packed per lane (= bias[c])
    gamma_ref : (depth, F*C)       LayerNorm weight, packed per lane (= gamma[f])
    beta_ref  : (depth, F*C)       LayerNorm bias, packed per lane (= beta[f])
    alpha_ref : (depth, F*C)       PReLU slope, packed per lane (= alpha[c])
    out_refs  : depth x (1, T, F*C) per-layer outputs (also reused as `skip`)
    """
    FC = F * C
    depth = len(out_refs)

    # Hoisted: lane-dense parameter tables and the time-shift iotas.
    bias_v = bias_ref[...]
    gamma_v = gamma_ref[...]
    beta_v = beta_ref[...]
    alpha_v = alpha_ref[...]
    row_idx = jax.lax.broadcasted_iota(jnp.int32, (T, T), 0)
    col_idx = jax.lax.broadcasted_iota(jnp.int32, (T, T), 1)

    for i in range(depth):
        dil = 2 ** i
        nslab = i + 1
        base = tap_off[i]

        # Conv as matmuls in the packed layout.  skip = [out_{i-1}, ..., out_0, x].
        acc1 = jnp.zeros((T, FC), jnp.float32)   # time tap kt=1 (current frame t)
        acc0 = jnp.zeros((T, FC), jnp.float32)   # time tap kt=0 (frame t - dil)
        for s in range(nslab):
            src_ref = out_refs[i - 1 - s] if s < i else x_ref
            xs = src_ref[0]                                     # (T, FC)
            acc1 = acc1 + jnp.dot(xs, w_ref[base + nslab + s],
                                  preferred_element_type=jnp.float32)
            if dil < T:   # if dil >= T the causal tap sees only zero padding
                acc0 = acc0 + jnp.dot(xs, w_ref[base + s],
                                      preferred_element_type=jnp.float32)

        acc = acc1
        if dil < T:
            # Causal time shift: acc[t] += acc0[t - dil], zero for t < dil,
            # via an exact 0/1 shift-matrix matmul (no unaligned sublane slices).
            shift_mat = (col_idx == row_idx - dil).astype(jnp.float32)   # (T, T)
            acc = acc + jnp.dot(shift_mat, acc0,
                                preferred_element_type=jnp.float32)
        acc = acc + bias_v[i:i + 1, :]

        # LayerNorm over frequency, stats per (t, channel); eps as in nn.LayerNorm.
        mean = _freq_sum_broadcast(acc, F, C) * (1.0 / F)
        diff = acc - mean
        var = _freq_sum_broadcast(diff * diff, F, C) * (1.0 / F)
        y = diff * jax.lax.rsqrt(var + 1e-5)
        y = y * gamma_v[i:i + 1, :] + beta_v[i:i + 1, :]

        # PReLU with per-channel slope.
        a = alpha_v[i:i + 1, :]
        y = jnp.where(y > 0, y, a * y)

        out_refs[i][0] = y.astype(out_refs[i].dtype)


def _pack_params(params, F, C):
    """Build kernel-side tensors from per-layer conv/LN/PReLU parameters.

    Layer i's conv weight (2, 3, C*(i+1), C) is split into (i+1) slabs of C input
    channels; each (time-tap, slab) pair becomes one banded (F*C, F*C) matrix that
    already encodes the 3 frequency taps and the (1, 1) frequency zero padding.
    """
    depth = len(params)
    Cout = C
    FC = F * C

    # P[kf, fin, fout] = 1 where input freq `fin` feeds output freq `fout` via tap kf.
    P = np.zeros((3, F, F), np.float32)
    for kf in range(3):
        for fout in range(F):
            fin = fout + kf - 1
            if 0 <= fin < F:
                P[kf, fin, fout] = 1.0
    P = jnp.asarray(P)

    taps = []
    tap_off = []
    for i, p in enumerate(params):
        tap_off.append(len(taps))
        w = p["w"]                                   # (2, 3, C*(i+1), Cout)
        for kt in range(2):
            for s in range(i + 1):
                taps.append(w[kt, :, s * C:(s + 1) * C, :])   # (3, C, Cout)
    w_taps = jnp.stack(taps, axis=0)                 # (NW, 3, C, Cout)
    # W_all[n, fin*C + c, fout*Cout + co] = w_tap[n, kf=fin-fout+1, c, co]
    W_all = jnp.einsum("kfg,nkcd->nfcgd", P, w_taps).reshape(len(taps), FC, F * Cout)

    bias_all = jnp.stack([jnp.tile(p["b"], F) for p in params])             # b[co] per lane
    alpha_all = jnp.stack([jnp.tile(p["alpha"], F) for p in params])        # alpha[co] per lane
    gamma_all = jnp.stack([jnp.repeat(p["gamma"], Cout) for p in params])   # gamma[f] per lane
    beta_all = jnp.stack([jnp.repeat(p["beta"], Cout) for p in params])     # beta[f] per lane
    return W_all, bias_all, gamma_all, beta_all, alpha_all, tuple(tap_off)


@jax.jit
def dense_block_forward(x_nchw, params):
    """DenseBlock.forward(x) with encoder_outs=None, temb=None.

    Accepts/returns NCHW like the PyTorch module: (out, encoder_outputs).
    """
    B, C, T, F = x_nchw.shape
    depth = len(params)
    assert F & (F - 1) == 0, "frequency butterfly reduction needs power-of-two F"
    FC = F * C

    W_all, bias_all, gamma_all, beta_all, alpha_all, tap_off = _pack_params(params, F, C)
    NW = W_all.shape[0]

    # NCHW -> NHWC -> packed (B, T, F*C); the reshape is a free metadata reshape.
    x_packed = jnp.transpose(x_nchw, (0, 2, 3, 1)).astype(jnp.float32).reshape(B, T, FC)

    kern = functools.partial(_dense_block_kernel, T=T, F=F, C=C, tap_off=tap_off)
    outs = pl.pallas_call(
        kern,
        out_shape=tuple(jax.ShapeDtypeStruct((B, T, FC), jnp.float32)
                        for _ in range(depth)),
        grid=(B,),
        in_specs=[
            pl.BlockSpec((1, T, FC), lambda b: (b, 0, 0)),      # input slab
            pl.BlockSpec((NW, FC, FC), lambda b: (0, 0, 0)),    # banded conv weights
            pl.BlockSpec((depth, FC), lambda b: (0, 0)),        # bias (lane-dense)
            pl.BlockSpec((depth, FC), lambda b: (0, 0)),        # LN gamma
            pl.BlockSpec((depth, FC), lambda b: (0, 0)),        # LN beta
            pl.BlockSpec((depth, FC), lambda b: (0, 0)),        # PReLU alpha
        ],
        out_specs=tuple(pl.BlockSpec((1, T, FC), lambda b: (b, 0, 0))
                        for _ in range(depth)),
        compiler_params=pltpu.CompilerParams(
            dimension_semantics=("parallel",)),
    )(x_packed, W_all, bias_all, gamma_all, beta_all, alpha_all)

    enc = [jnp.transpose(o.reshape(B, T, F, C), (0, 3, 1, 2)) for o in outs]
    return enc[-1], enc


def init_dense_block_params(key, *, depth, in_channels, input_size):
    """Deterministic synthetic parameters matching the module's shapes."""
    C = in_channels
    params = []
    for i in range(depth):
        cin = C * (i + 1)
        key, wk, bk, gk, ek = jax.random.split(key, 5)
        params.append(dict(
            # conv{i+1}: Conv2d(cin, C, kernel=(2,3), dilation=(2**i, 1))
            w=0.05 * jax.random.normal(wk, (2, 3, cin, C), jnp.float32),
            b=0.01 * jax.random.normal(bk, (C,), jnp.float32),
            # norm{i+1}: LayerNorm(input_size)
            gamma=1.0 + 0.1 * jax.random.normal(gk, (input_size,), jnp.float32),
            beta=0.05 * jax.random.normal(ek, (input_size,), jnp.float32),
            # prelu{i+1}: PReLU(C), default slope 0.25
            alpha=jnp.full((C,), 0.25, jnp.float32),
        ))
    return params


# ---------------- pure-JAX reference (correctness sanity check) ----------------


def _ref_layer(x_nhwc, w, b, gamma, beta, alpha, dil):
    B, T, F, Cin = x_nhwc.shape
    Cout = w.shape[-1]
    xpad = jnp.pad(x_nhwc, ((0, 0), (dil, 0), (1, 1), (0, 0)))
    acc = jnp.zeros((B, T, F, Cout), jnp.float32)
    for kt in range(2):
        for kf in range(3):
            xs = xpad[:, kt * dil:kt * dil + T, kf:kf + F, :]
            acc = acc + jnp.einsum("btfc,co->btfo", xs, w[kt, kf])
    acc = acc + b
    mean = acc.mean(axis=2, keepdims=True)
    var = ((acc - mean) ** 2).mean(axis=2, keepdims=True)
    y = (acc - mean) * jax.lax.rsqrt(var + 1e-5)
    y = y * gamma[None, None, :, None] + beta[None, None, :, None]
    return jnp.where(y > 0, y, alpha * y)


def dense_block_reference(x_nchw, params):
    x = jnp.transpose(x_nchw, (0, 2, 3, 1)).astype(jnp.float32)
    skip = x
    outs = []
    out = None
    for i, p in enumerate(params):
        out = _ref_layer(skip, p["w"], p["b"], p["gamma"], p["beta"],
                         p["alpha"], 2 ** i)
        skip = jnp.concatenate([out, skip], axis=-1)
        outs.append(out)
    return (jnp.transpose(out, (0, 3, 1, 2)),
            [jnp.transpose(o, (0, 3, 1, 2)) for o in outs])


if __name__ == "__main__":
    B, C, T, F = 2, 8, 16, 16      # batch, in_channels, time frames, input_size
    depth = 5

    key = jax.random.PRNGKey(0)
    key, xk = jax.random.split(key)
    x = jax.random.normal(xk, (B, C, T, F), jnp.float32)   # NCHW, like PyTorch

    params = init_dense_block_params(key, depth=depth, in_channels=C,
                                     input_size=F)

    out, enc_outs = dense_block_forward(x, params)
    out = jax.block_until_ready(out)

    assert out.shape == (B, C, T, F)
    assert len(enc_outs) == depth

    ref_out, ref_enc = dense_block_reference(x, params)
    if not jnp.allclose(out, ref_out, atol=2e-4, rtol=2e-4):
        raise AssertionError("Pallas output does not match reference")
    for o, r in zip(enc_outs, ref_enc):
        if not jnp.allclose(o, r, atol=2e-4, rtol=2e-4):
            raise AssertionError("Pallas encoder output does not match reference")

    print("KERNEL_OK")
</pallas_src>

<mosaic_0001>
module attributes {stable_mosaic.version = 11 : i64} {
  func.func @_dense_block_kernel(%arg0: i32, %arg1: memref<1x16x128xf32, #tpu.memory_space<vmem>>, %arg2: memref<30x128x128xf32, #tpu.memory_space<vmem>>, %arg3: memref<5x128xf32, #tpu.memory_space<vmem>>, %arg4: memref<5x128xf32, #tpu.memory_space<vmem>>, %arg5: memref<5x128xf32, #tpu.memory_space<vmem>>, %arg6: memref<5x128xf32, #tpu.memory_space<vmem>>, %arg7: memref<1x16x128xf32, #tpu.memory_space<vmem>>, %arg8: memref<1x16x128xf32, #tpu.memory_space<vmem>>, %arg9: memref<1x16x128xf32, #tpu.memory_space<vmem>>, %arg10: memref<1x16x128xf32, #tpu.memory_space<vmem>>, %arg11: memref<1x16x128xf32, #tpu.memory_space<vmem>>) attributes {dimension_semantics = [#tpu.dimension_semantics<parallel>], iteration_bounds = array<i64: 2>, scalar_prefetch = 0 : i64, scratch_operands = 0 : i64, tpu.core_type = #tpu.core_type<tc>, window_params = [{transform_indices = @transform_0, window_bounds = array<i64: 1, 16, 128>}, {pipeline_mode = #tpu.pipeline_mode<synchronous>, transform_indices = @transform_1, window_bounds = array<i64: 30, 128, 128>}, {pipeline_mode = #tpu.pipeline_mode<synchronous>, transform_indices = @transform_2, window_bounds = array<i64: 5, 128>}, {pipeline_mode = #tpu.pipeline_mode<synchronous>, transform_indices = @transform_3, window_bounds = array<i64: 5, 128>}, {pipeline_mode = #tpu.pipeline_mode<synchronous>, transform_indices = @transform_4, window_bounds = array<i64: 5, 128>}, {pipeline_mode = #tpu.pipeline_mode<synchronous>, transform_indices = @transform_5, window_bounds = array<i64: 5, 128>}, {transform_indices = @transform_6, window_bounds = array<i64: 1, 16, 128>}, {transform_indices = @transform_7, window_bounds = array<i64: 1, 16, 128>}, {transform_indices = @transform_8, window_bounds = array<i64: 1, 16, 128>}, {transform_indices = @transform_9, window_bounds = array<i64: 1, 16, 128>}, {transform_indices = @transform_10, window_bounds = array<i64: 1, 16, 128>}]} {
    %c0 = arith.constant 0 : index
    %c0_0 = arith.constant 0 : index
    %0 = vector.load %arg3[%c0, %c0_0] : memref<5x128xf32, #tpu.memory_space<vmem>>, vector<5x128xf32>
    %c0_1 = arith.constant 0 : index
    %c0_2 = arith.constant 0 : index
    %1 = vector.load %arg4[%c0_1, %c0_2] : memref<5x128xf32, #tpu.memory_space<vmem>>, vector<5x128xf32>
    %c0_3 = arith.constant 0 : index
    %c0_4 = arith.constant 0 : index
    %2 = vector.load %arg5[%c0_3, %c0_4] : memref<5x128xf32, #tpu.memory_space<vmem>>, vector<5x128xf32>
    %c0_5 = arith.constant 0 : index
    %c0_6 = arith.constant 0 : index
    %3 = vector.load %arg6[%c0_5, %c0_6] : memref<5x128xf32, #tpu.memory_space<vmem>>, vector<5x128xf32>
    %4 = tpu.iota {dimensions = array<i32: 0>} : vector<16x16xi32>
    %5 = tpu.iota {dimensions = array<i32: 1>} : vector<16x16xi32>
    %cst = arith.constant 0.000000e+00 : f32
    %6 = vector.broadcast %cst : f32 to vector<16x128xf32>
    %cst_7 = arith.constant 0.000000e+00 : f32
    %7 = vector.broadcast %cst_7 : f32 to vector<16x128xf32>
    %c0_8 = arith.constant 0 : index
    %c0_9 = arith.constant 0 : index
    %c0_10 = arith.constant 0 : index
    %8 = vector.load %arg1[%c0_8, %c0_9, %c0_10] : memref<1x16x128xf32, #tpu.memory_space<vmem>>, vector<1x16x128xf32>
    %9 = vector.shape_cast %8 : vector<1x16x128xf32> to vector<16x128xf32>
    %c1 = arith.constant 1 : index
    %c0_11 = arith.constant 0 : index
    %c0_12 = arith.constant 0 : index
    %10 = vector.load %arg2[%c1, %c0_11, %c0_12] : memref<30x128x128xf32, #tpu.memory_space<vmem>>, vector<1x128x128xf32>
    %11 = vector.shape_cast %10 : vector<1x128x128xf32> to vector<128x128xf32>
    %cst_13 = arith.constant dense<0.000000e+00> : vector<16x128xf32>
    %12 = tpu.matmul %9, %11, %cst_13 {dimension_numbers = #tpu.dot_dimension_numbers<[1], [0], [0], [1], [0, 0, 1, 1], [], []>} : vector<16x128xf32>, vector<128x128xf32>, vector<16x128xf32> -> vector<16x128xf32>
    %13 = arith.addf %6, %12 : vector<16x128xf32>
    %c0_14 = arith.constant 0 : index
    %c0_15 = arith.constant 0 : index
    %c0_16 = arith.constant 0 : index
    %14 = vector.load %arg2[%c0_14, %c0_15, %c0_16] : memref<30x128x128xf32, #tpu.memory_space<vmem>>, vector<1x128x128xf32>
    %15 = vector.shape_cast %14 : vector<1x128x128xf32> to vector<128x128xf32>
    %cst_17 = arith.constant dense<0.000000e+00> : vector<16x128xf32>
    %16 = tpu.matmul %9, %15, %cst_17 {dimension_numbers = #tpu.dot_dimension_numbers<[1], [0], [0], [1], [0, 0, 1, 1], [], []>} : vector<16x128xf32>, vector<128x128xf32>, vector<16x128xf32> -> vector<16x128xf32>
    %17 = arith.addf %7, %16 : vector<16x128xf32>
    %c1_i32 = arith.constant 1 : i32
    %18 = vector.broadcast %c1_i32 : i32 to vector<16x16xi32>
    %19 = arith.subi %4, %18 : vector<16x16xi32>
    %20 = arith.cmpi eq, %5, %19 : vector<16x16xi32>
    %21 = arith.extui %20 : vector<16x16xi1> to vector<16x16xi32>
    %22 = arith.sitofp %21 : vector<16x16xi32> to vector<16x16xf32>
    %cst_18 = arith.constant dense<0.000000e+00> : vector<16x128xf32>
    %23 = tpu.matmul %22, %17, %cst_18 {dimension_numbers = #tpu.dot_dimension_numbers<[1], [0], [0], [1], [0, 0, 1, 1], [], []>} : vector<16x16xf32>, vector<16x128xf32>, vector<16x128xf32> -> vector<16x128xf32>
    %24 = arith.addf %13, %23 : vector<16x128xf32>
    %25 = vector.extract_strided_slice %0 {offsets = [0, 0], sizes = [1, 128], strides = [1, 1]} : vector<5x128xf32> to vector<1x128xf32>
    %26 = vector.broadcast %25 : vector<1x128xf32> to vector<16x128xf32>
    %27 = arith.addf %24, %26 : vector<16x128xf32>
    %c8_i32 = arith.constant 8 : i32
    %28 = tpu.dynamic_rotate %27 by %c8_i32 dim 1 : vector<16x128xf32>, i32 -> vector<16x128xf32>
    %29 = arith.addf %27, %28 : vector<16x128xf32>
    %c16_i32 = arith.constant 16 : i32
    %30 = tpu.dynamic_rotate %29 by %c16_i32 dim 1 : vector<16x128xf32>, i32 -> vector<16x128xf32>
    %31 = arith.addf %29, %30 : vector<16x128xf32>
    %c32_i32 = arith.constant 32 : i32
    %32 = tpu.dynamic_rotate %31 by %c32_i32 dim 1 : vector<16x128xf32>, i32 -> vector<16x128xf32>
    %33 = arith.addf %31, %32 : vector<16x128xf32>
    %c64_i32 = arith.constant 64 : i32
    %34 = tpu.dynamic_rotate %33 by %c64_i32 dim 1 : vector<16x128xf32>, i32 -> vector<16x128xf32>
    %35 = arith.addf %33, %34 : vector<16x128xf32>
    %cst_19 = arith.constant 6.250000e-02 : f32
    %36 = vector.broadcast %cst_19 : f32 to vector<16x128xf32>
    %37 = arith.mulf %35, %36 : vector<16x128xf32>
    %38 = arith.subf %27, %37 : vector<16x128xf32>
    %39 = arith.mulf %38, %38 : vector<16x128xf32>
    %c8_i32_20 = arith.constant 8 : i32
    %40 = tpu.dynamic_rotate %39 by %c8_i32_20 dim 1 : vector<16x128xf32>, i32 -> vector<16x128xf32>
    %41 = arith.addf %39, %40 : vector<16x128xf32>
    %c16_i32_21 = arith.constant 16 : i32
    %42 = tpu.dynamic_rotate %41 by %c16_i32_21 dim 1 : vector<16x128xf32>, i32 -> vector<16x128xf32>
    %43 = arith.addf %41, %42 : vector<16x128xf32>
    %c32_i32_22 = arith.constant 32 : i32
    %44 = tpu.dynamic_rotate %43 by %c32_i32_22 dim 1 : vector<16x128xf32>, i32 -> vector<16x128xf32>
    %45 = arith.addf %43, %44 : vector<16x128xf32>
    %c64_i32_23 = arith.constant 64 : i32
    %46 = tpu.dynamic_rotate %45 by %c64_i32_23 dim 1 : vector<16x128xf32>, i32 -> vector<16x128xf32>
    %47 = arith.addf %45, %46 : vector<16x128xf32>
    %cst_24 = arith.constant 6.250000e-02 : f32
    %48 = vector.broadcast %cst_24 : f32 to vector<16x128xf32>
    %49 = arith.mulf %47, %48 : vector<16x128xf32>
    %cst_25 = arith.constant 9.99999974E-6 : f32
    %50 = vector.broadcast %cst_25 : f32 to vector<16x128xf32>
    %51 = arith.addf %49, %50 : vector<16x128xf32>
    %52 = math.rsqrt %51 : vector<16x128xf32>
    %53 = arith.mulf %38, %52 : vector<16x128xf32>
    %54 = vector.extract_strided_slice %1 {offsets = [0, 0], sizes = [1, 128], strides = [1, 1]} : vector<5x128xf32> to vector<1x128xf32>
    %55 = vector.broadcast %54 : vector<1x128xf32> to vector<16x128xf32>
    %56 = arith.mulf %53, %55 : vector<16x128xf32>
    %57 = vector.extract_strided_slice %2 {offsets = [0, 0], sizes = [1, 128], strides = [1, 1]} : vector<5x128xf32> to vector<1x128xf32>
    %58 = vector.broadcast %57 : vector<1x128xf32> to vector<16x128xf32>
    %59 = arith.addf %56, %58 : vector<16x128xf32>
    %60 = vector.extract_strided_slice %3 {offsets = [0, 0], sizes = [1, 128], strides = [1, 1]} : vector<5x128xf32> to vector<1x128xf32>
    %cst_26 = arith.constant 0.000000e+00 : f32
    %61 = vector.broadcast %cst_26 : f32 to vector<16x128xf32>
    %62 = arith.cmpf ogt, %59, %61 : vector<16x128xf32>
    %63 = vector.broadcast %60 : vector<1x128xf32> to vector<16x128xf32>
    %64 = arith.mulf %63, %59 : vector<16x128xf32>
    %65 = arith.select %62, %59, %64 : vector<16x128xi1>, vector<16x128xf32>
    %c0_27 = arith.constant 0 : index
    %c0_28 = arith.constant 0 : index
    %c0_29 = arith.constant 0 : index
    %66 = vector.load %arg7[%c0_27, %c0_28, %c0_29] : memref<1x16x128xf32, #tpu.memory_space<vmem>>, vector<1x16x128xf32>
    %67 = vector.shape_cast %66 : vector<1x16x128xf32> to vector<16x128xf32>
    %68 = vector.shape_cast %65 : vector<16x128xf32> to vector<1x16x128xf32>
    tpu.vector_store %arg7[%c0_27, %c0_28, %c0_29], %68 {strides = array<i32>} : memref<1x16x128xf32, #tpu.memory_space<vmem>>, vector<1x16x128xf32>,
    %cst_30 = arith.constant 0.000000e+00 : f32
    %69 = vector.broadcast %cst_30 : f32 to vector<16x128xf32>
    %cst_31 = arith.constant 0.000000e+00 : f32
    %70 = vector.broadcast %cst_31 : f32 to vector<16x128xf32>
    %c0_32 = arith.constant 0 : index
    %c0_33 = arith.constant 0 : index
    %c0_34 = arith.constant 0 : index
    %71 = vector.load %arg7[%c0_32, %c0_33, %c0_34] : memref<1x16x128xf32, #tpu.memory_space<vmem>>, vector<1x16x128xf32>
    %72 = vector.shape_cast %71 : vector<1x16x128xf32> to vector<16x128xf32>
    %c4 = arith.constant 4 : index
    %c0_35 = arith.constant 0 : index
    %c0_36 = arith.constant 0 : index
    %73 = vector.load %arg2[%c4, %c0_35, %c0_36] : memref<30x128x128xf32, #tpu.memory_space<vmem>>, vector<1x128x128xf32>
    %74 = vector.shape_cast %73 : vector<1x128x128xf32> to vector<128x128xf32>
    %cst_37 = arith.constant dense<0.000000e+00> : vector<16x128xf32>
    %75 = tpu.matmul %72, %74, %cst_37 {dimension_numbers = #tpu.dot_dimension_numbers<[1], [0], [0], [1], [0, 0, 1, 1], [], []>} : vector<16x128xf32>, vector<128x128xf32>, vector<16x128xf32> -> vector<16x128xf32>
    %76 = arith.addf %69, %75 : vector<16x128xf32>
    %c2 = arith.constant 2 : index
    %c0_38 = arith.constant 0 : index
    %c0_39 = arith.constant 0 : index
    %77 = vector.load %arg2[%c2, %c0_38, %c0_39] : memref<30x128x128xf32, #tpu.memory_space<vmem>>, vector<1x128x128xf32>
    %78 = vector.shape_cast %77 : vector<1x128x128xf32> to vector<128x128xf32>
    %cst_40 = arith.constant dense<0.000000e+00> : vector<16x128xf32>
    %79 = tpu.matmul %72, %78, %cst_40 {dimension_numbers = #tpu.dot_dimension_numbers<[1], [0], [0], [1], [0, 0, 1, 1], [], []>} : vector<16x128xf32>, vector<128x128xf32>, vector<16x128xf32> -> vector<16x128xf32>
    %80 = arith.addf %70, %79 : vector<16x128xf32>
    %c0_41 = arith.constant 0 : index
    %c0_42 = arith.constant 0 : index
    %c0_43 = arith.constant 0 : index
    %81 = vector.load %arg1[%c0_41, %c0_42, %c0_43] : memref<1x16x128xf32, #tpu.memory_space<vmem>>, vector<1x16x128xf32>
    %82 = vector.shape_cast %81 : vector<1x16x128xf32> to vector<16x128xf32>
    %c5 = arith.constant 5 : index
    %c0_44 = arith.constant 0 : index
    %c0_45 = arith.constant 0 : index
    %83 = vector.load %arg2[%c5, %c0_44, %c0_45] : memref<30x128x128xf32, #tpu.memory_space<vmem>>, vector<1x128x128xf32>
    %84 = vector.shape_cast %83 : vector<1x128x128xf32> to vector<128x128xf32>
    %cst_46 = arith.constant dense<0.000000e+00> : vector<16x128xf32>
    %85 = tpu.matmul %82, %84, %cst_46 {dimension_numbers = #tpu.dot_dimension_numbers<[1], [0], [0], [1], [0, 0, 1, 1], [], []>} : vector<16x128xf32>, vector<128x128xf32>, vector<16x128xf32> -> vector<16x128xf32>
    %86 = arith.addf %76, %85 : vector<16x128xf32>
    %c3 = arith.constant 3 : index
    %c0_47 = arith.constant 0 : index
    %c0_48 = arith.constant 0 : index
    %87 = vector.load %arg2[%c3, %c0_47, %c0_48] : memref<30x128x128xf32, #tpu.memory_space<vmem>>, vector<1x128x128xf32>
    %88 = vector.shape_cast %87 : vector<1x128x128xf32> to vector<128x128xf32>
    %cst_49 = arith.constant dense<0.000000e+00> : vector<16x128xf32>
    %89 = tpu.matmul %82, %88, %cst_49 {dimension_numbers = #tpu.dot_dimension_numbers<[1], [0], [0], [1], [0, 0, 1, 1], [], []>} : vector<16x128xf32>, vector<128x128xf32>, vector<16x128xf32> -> vector<16x128xf32>
    %90 = arith.addf %80, %89 : vector<16x128xf32>
    %c2_i32 = arith.constant 2 : i32
    %91 = vector.broadcast %c2_i32 : i32 to vector<16x16xi32>
    %92 = arith.subi %4, %91 : vector<16x16xi32>
    %93 = arith.cmpi eq, %5, %92 : vector<16x16xi32>
    %94 = arith.extui %93 : vector<16x16xi1> to vector<16x16xi32>
    %95 = arith.sitofp %94 : vector<16x16xi32> to vector<16x16xf32>
    %cst_50 = arith.constant dense<0.000000e+00> : vector<16x128xf32>
    %96 = tpu.matmul %95, %90, %cst_50 {dimension_numbers = #tpu.dot_dimension_numbers<[1], [0], [0], [1], [0, 0, 1, 1], [], []>} : vector<16x16xf32>, vector<16x128xf32>, vector<16x128xf32> -> vector<16x128xf32>
    %97 = arith.addf %86, %96 : vector<16x128xf32>
    %98 = vector.extract_strided_slice %0 {offsets = [1, 0], sizes = [1, 128], strides = [1, 1]} : vector<5x128xf32> to vector<1x128xf32>
    %99 = vector.broadcast %98 : vector<1x128xf32> to vector<16x128xf32>
    %100 = arith.addf %97, %99 : vector<16x128xf32>
    %c8_i32_51 = arith.constant 8 : i32
    %101 = tpu.dynamic_rotate %100 by %c8_i32_51 dim 1 : vector<16x128xf32>, i32 -> vector<16x128xf32>
    %102 = arith.addf %100, %101 : vector<16x128xf32>
    %c16_i32_52 = arith.constant 16 : i32
    %103 = tpu.dynamic_rotate %102 by %c16_i32_52 dim 1 : vector<16x128xf32>, i32 -> vector<16x128xf32>
    %104 = arith.addf %102, %103 : vector<16x128xf32>
    %c32_i32_53 = arith.constant 32 : i32
    %105 = tpu.dynamic_rotate %104 by %c32_i32_53 dim 1 : vector<16x128xf32>, i32 -> vector<16x128xf32>
    %106 = arith.addf %104, %105 : vector<16x128xf32>
    %c64_i32_54 = arith.constant 64 : i32
    %107 = tpu.dynamic_rotate %106 by %c64_i32_54 dim 1 : vector<16x128xf32>, i32 -> vector<16x128xf32>
    %108 = arith.addf %106, %107 : vector<16x128xf32>
    %cst_55 = arith.constant 6.250000e-02 : f32
    %109 = vector.broadcast %cst_55 : f32 to vector<16x128xf32>
    %110 = arith.mulf %108, %109 : vector<16x128xf32>
    %111 = arith.subf %100, %110 : vector<16x128xf32>
    %112 = arith.mulf %111, %111 : vector<16x128xf32>
    %c8_i32_56 = arith.constant 8 : i32
    %113 = tpu.dynamic_rotate %112 by %c8_i32_56 dim 1 : vector<16x128xf32>, i32 -> vector<16x128xf32>
    %114 = arith.addf %112, %113 : vector<16x128xf32>
    %c16_i32_57 = arith.constant 16 : i32
    %115 = tpu.dynamic_rotate %114 by %c16_i32_57 dim 1 : vector<16x128xf32>, i32 -> vector<16x128xf32>
    %116 = arith.addf %114, %115 : vector<16x128xf32>
    %c32_i32_58 = arith.constant 32 : i32
    %117 = tpu.dynamic_rotate %116 by %c32_i32_58 dim 1 : vector<16x128xf32>, i32 -> vector<16x128xf32>
    %118 = arith.addf %116, %117 : vector<16x128xf32>
    %c64_i32_59 = arith.constant 64 : i32
    %119 = tpu.dynamic_rotate %118 by %c64_i32_59 dim 1 : vector<16x128xf32>, i32 -> vector<16x128xf32>
    %120 = arith.addf %118, %119 : vector<16x128xf32>
    %cst_60 = arith.constant 6.250000e-02 : f32
    %121 = vector.broadcast %cst_60 : f32 to vector<16x128xf32>
    %122 = arith.mulf %120, %121 : vector<16x128xf32>
    %cst_61 = arith.constant 9.99999974E-6 : f32
    %123 = vector.broadcast %cst_61 : f32 to vector<16x128xf32>
    %124 = arith.addf %122, %123 : vector<16x128xf32>
    %125 = math.rsqrt %124 : vector<16x128xf32>
    %126 = arith.mulf %111, %125 : vector<16x128xf32>
    %127 = vector.extract_strided_slice %1 {offsets = [1, 0], sizes = [1, 128], strides = [1, 1]} : vector<5x128xf32> to vector<1x128xf32>
    %128 = vector.broadcast %127 : vector<1x128xf32> to vector<16x128xf32>
    %129 = arith.mulf %126, %128 : vector<16x128xf32>
    %130 = vector.extract_strided_slice %2 {offsets = [1, 0], sizes = [1, 128], strides = [1, 1]} : vector<5x128xf32> to vector<1x128xf32>
    %131 = vector.broadcast %130 : vector<1x128xf32> to vector<16x128xf32>
    %132 = arith.addf %129, %131 : vector<16x128xf32>
    %133 = vector.extract_strided_slice %3 {offsets = [1, 0], sizes = [1, 128], strides = [1, 1]} : vector<5x128xf32> to vector<1x128xf32>
    %cst_62 = arith.constant 0.000000e+00 : f32
    %134 = vector.broadcast %cst_62 : f32 to vector<16x128xf32>
    %135 = arith.cmpf ogt, %132, %134 : vector<16x128xf32>
    %136 = vector.broadcast %133 : vector<1x128xf32> to vector<16x128xf32>
    %137 = arith.mulf %136, %132 : vector<16x128xf32>
    %138 = arith.select %135, %132, %137 : vector<16x128xi1>, vector<16x128xf32>
    %c0_63 = arith.constant 0 : index
    %c0_64 = arith.constant 0 : index
    %c0_65 = arith.constant 0 : index
    %139 = vector.load %arg8[%c0_63, %c0_64, %c0_65] : memref<1x16x128xf32, #tpu.memory_space<vmem>>, vector<1x16x128xf32>
    %140 = vector.shape_cast %139 : vector<1x16x128xf32> to vector<16x128xf32>
    %141 = vector.shape_cast %138 : vector<16x128xf32> to vector<1x16x128xf32>
    tpu.vector_store %arg8[%c0_63, %c0_64, %c0_65], %141 {strides = array<i32>} : memref<1x16x128xf32, #tpu.memory_space<vmem>>, vector<1x16x128xf32>,
    %cst_66 = arith.constant 0.000000e+00 : f32
    %142 = vector.broadcast %cst_66 : f32 to vector<16x128xf32>
    %cst_67 = arith.constant 0.000000e+00 : f32
    %143 = vector.broadcast %cst_67 : f32 to vector<16x128xf32>
    %c0_68 = arith.constant 0 : index
    %c0_69 = arith.constant 0 : index
    %c0_70 = arith.constant 0 : index
    %144 = vector.load %arg8[%c0_68, %c0_69, %c0_70] : memref<1x16x128xf32, #tpu.memory_space<vmem>>, vector<1x16x128xf32>
    %145 = vector.shape_cast %144 : vector<1x16x128xf32> to vector<16x128xf32>
    %c9 = arith.constant 9 : index
    %c0_71 = arith.constant 0 : index
    %c0_72 = arith.constant 0 : index
    %146 = vector.load %arg2[%c9, %c0_71, %c0_72] : memref<30x128x128xf32, #tpu.memory_space<vmem>>, vector<1x128x128xf32>
    %147 = vector.shape_cast %146 : vector<1x128x128xf32> to vector<128x128xf32>
    %cst_73 = arith.constant dense<0.000000e+00> : vector<16x128xf32>
    %148 = tpu.matmul %145, %147, %cst_73 {dimension_numbers = #tpu.dot_dimension_numbers<[1], [0], [0], [1], [0, 0, 1, 1], [], []>} : vector<16x128xf32>, vector<128x128xf32>, vector<16x128xf32> -> vector<16x128xf32>
    %149 = arith.addf %142, %148 : vector<16x128xf32>
    %c6 = arith.constant 6 : index
    %c0_74 = arith.constant 0 : index
    %c0_75 = arith.constant 0 : index
    %150 = vector.load %arg2[%c6, %c0_74, %c0_75] : memref<30x128x128xf32, #tpu.memory_space<vmem>>, vector<1x128x128xf32>
    %151 = vector.shape_cast %150 : vector<1x128x128xf32> to vector<128x128xf32>
    %cst_76 = arith.constant dense<0.000000e+00> : vector<16x128xf32>
    %152 = tpu.matmul %145, %151, %cst_76 {dimension_numbers = #tpu.dot_dimension_numbers<[1], [0], [0], [1], [0, 0, 1, 1], [], []>} : vector<16x128xf32>, vector<128x128xf32>, vector<16x128xf32> -> vector<16x128xf32>
    %153 = arith.addf %143, %152 : vector<16x128xf32>
    %c0_77 = arith.constant 0 : index
    %c0_78 = arith.constant 0 : index
    %c0_79 = arith.constant 0 : index
    %154 = vector.load %arg7[%c0_77, %c0_78, %c0_79] : memref<1x16x128xf32, #tpu.memory_space<vmem>>, vector<1x16x128xf32>
    %155 = vector.shape_cast %154 : vector<1x16x128xf32> to vector<16x128xf32>
    %c10 = arith.constant 10 : index
    %c0_80 = arith.constant 0 : index
    %c0_81 = arith.constant 0 : index
    %156 = vector.load %arg2[%c10, %c0_80, %c0_81] : memref<30x128x128xf32, #tpu.memory_space<vmem>>, vector<1x128x128xf32>
    %157 = vector.shape_cast %156 : vector<1x128x128xf32> to vector<128x128xf32>
    %cst_82 = arith.constant dense<0.000000e+00> : vector<16x128xf32>
    %158 = tpu.matmul %155, %157, %cst_82 {dimension_numbers = #tpu.dot_dimension_numbers<[1], [0], [0], [1], [0, 0, 1, 1], [], []>} : vector<16x128xf32>, vector<128x128xf32>, vector<16x128xf32> -> vector<16x128xf32>
    %159 = arith.addf %149, %158 : vector<16x128xf32>
    %c7 = arith.constant 7 : index
    %c0_83 = arith.constant 0 : index
    %c0_84 = arith.constant 0 : index
    %160 = vector.load %arg2[%c7, %c0_83, %c0_84] : memref<30x128x128xf32, #tpu.memory_space<vmem>>, vector<1x128x128xf32>
    %161 = vector.shape_cast %160 : vector<1x128x128xf32> to vector<128x128xf32>
    %cst_85 = arith.constant dense<0.000000e+00> : vector<16x128xf32>
    %162 = tpu.matmul %155, %161, %cst_85 {dimension_numbers = #tpu.dot_dimension_numbers<[1], [0], [0], [1], [0, 0, 1, 1], [], []>} : vector<16x128xf32>, vector<128x128xf32>, vector<16x128xf32> -> vector<16x128xf32>
    %163 = arith.addf %153, %162 : vector<16x128xf32>
    %c0_86 = arith.constant 0 : index
    %c0_87 = arith.constant 0 : index
    %c0_88 = arith.constant 0 : index
    %164 = vector.load %arg1[%c0_86, %c0_87, %c0_88] : memref<1x16x128xf32, #tpu.memory_space<vmem>>, vector<1x16x128xf32>
    %165 = vector.shape_cast %164 : vector<1x16x128xf32> to vector<16x128xf32>
    %c11 = arith.constant 11 : index
    %c0_89 = arith.constant 0 : index
    %c0_90 = arith.constant 0 : index
    %166 = vector.load %arg2[%c11, %c0_89, %c0_90] : memref<30x128x128xf32, #tpu.memory_space<vmem>>, vector<1x128x128xf32>
    %167 = vector.shape_cast %166 : vector<1x128x128xf32> to vector<128x128xf32>
    %cst_91 = arith.constant dense<0.000000e+00> : vector<16x128xf32>
    %168 = tpu.matmul %165, %167, %cst_91 {dimension_numbers = #tpu.dot_dimension_numbers<[1], [0], [0], [1], [0, 0, 1, 1], [], []>} : vector<16x128xf32>, vector<128x128xf32>, vector<16x128xf32> -> vector<16x128xf32>
    %169 = arith.addf %159, %168 : vector<16x128xf32>
    %c8 = arith.constant 8 : index
    %c0_92 = arith.constant 0 : index
    %c0_93 = arith.constant 0 : index
    %170 = vector.load %arg2[%c8, %c0_92, %c0_93] : memref<30x128x128xf32, #tpu.memory_space<vmem>>, vector<1x128x128xf32>
    %171 = vector.shape_cast %170 : vector<1x128x128xf32> to vector<128x128xf32>
    %cst_94 = arith.constant dense<0.000000e+00> : vector<16x128xf32>
    %172 = tpu.matmul %165, %171, %cst_94 {dimension_numbers = #tpu.dot_dimension_numbers<[1], [0], [0], [1], [0, 0, 1, 1], [], []>} : vector<16x128xf32>, vector<128x128xf32>, vector<16x128xf32> -> vector<16x128xf32>
    %173 = arith.addf %163, %172 : vector<16x128xf32>
    %c4_i32 = arith.constant 4 : i32
    %174 = vector.broadcast %c4_i32 : i32 to vector<16x16xi32>
    %175 = arith.subi %4, %174 : vector<16x16xi32>
    %176 = arith.cmpi eq, %5, %175 : vector<16x16xi32>
    %177 = arith.extui %176 : vector<16x16xi1> to vector<16x16xi32>
    %178 = arith.sitofp %177 : vector<16x16xi32> to vector<16x16xf32>
    %cst_95 = arith.constant dense<0.000000e+00> : vector<16x128xf32>
    %179 = tpu.matmul %178, %173, %cst_95 {dimension_numbers = #tpu.dot_dimension_numbers<[1], [0], [0], [1], [0, 0, 1, 1], [], []>} : vector<16x16xf32>, vector<16x128xf32>, vector<16x128xf32> -> vector<16x128xf32>
    %180 = arith.addf %169, %179 : vector<16x128xf32>
    %181 = vector.extract_strided_slice %0 {offsets = [2, 0], sizes = [1, 128], strides = [1, 1]} : vector<5x128xf32> to vector<1x128xf32>
    %182 = vector.broadcast %181 : vector<1x128xf32> to vector<16x128xf32>
    %183 = arith.addf %180, %182 : vector<16x128xf32>
    %c8_i32_96 = arith.constant 8 : i32
    %184 = tpu.dynamic_rotate %183 by %c8_i32_96 dim 1 : vector<16x128xf32>, i32 -> vector<16x128xf32>
    %185 = arith.addf %183, %184 : vector<16x128xf32>
    %c16_i32_97 = arith.constant 16 : i32
    %186 = tpu.dynamic_rotate %185 by %c16_i32_97 dim 1 : vector<16x128xf32>, i32 -> vector<16x128xf32>
    %187 = arith.addf %185, %186 : vector<16x128xf32>
    %c32_i32_98 = arith.constant 32 : i32
    %188 = tpu.dynamic_rotate %187 by %c32_i32_98 dim 1 : vector<16x128xf32>, i32 -> vector<16x128xf32>
    %189 = arith.addf %187, %188 : vector<16x128xf32>
    %c64_i32_99 = arith.constant 64 : i32
    %190 = tpu.dynamic_rotate %189 by %c64_i32_99 dim 1 : vector<16x128xf32>, i32 -> vector<16x128xf32>
    %191 = arith.addf %189, %190 : vector<16x128xf32>
    %cst_100 = arith.constant 6.250000e-02 : f32
    %192 = vector.broadcast %cst_100 : f32 to vector<16x128xf32>
    %193 = arith.mulf %191, %192 : vector<16x128xf32>
    %194 = arith.subf %183, %193 : vector<16x128xf32>
    %195 = arith.mulf %194, %194 : vector<16x128xf32>
    %c8_i32_101 = arith.constant 8 : i32
    %196 = tpu.dynamic_rotate %195 by %c8_i32_101 dim 1 : vector<16x128xf32>, i32 -> vector<16x128xf32>
    %197 = arith.addf %195, %196 : vector<16x128xf32>
    %c16_i32_102 = arith.constant 16 : i32
    %198 = tpu.dynamic_rotate %197 by %c16_i32_102 dim 1 : vector<16x128xf32>, i32 -> vector<16x128xf32>
    %199 = arith.addf %197, %198 : vector<16x128xf32>
    %c32_i32_103 = arith.constant 32 : i32
    %200 = tpu.dynamic_rotate %199 by %c32_i32_103 dim 1 : vector<16x128xf32>, i32 -> vector<16x128xf32>
    %201 = arith.addf %199, %200 : vector<16x128xf32>
    %c64_i32_104 = arith.constant 64 : i32
    %202 = tpu.dynamic_rotate %201 by %c64_i32_104 dim 1 : vector<16x128xf32>, i32 -> vector<16x128xf32>
    %203 = arith.addf %201, %202 : vector<16x128xf32>
    %cst_105 = arith.constant 6.250000e-02 : f32
    %204 = vector.broadcast %cst_105 : f32 to vector<16x128xf32>
    %205 = arith.mulf %203, %204 : vector<16x128xf32>
    %cst_106 = arith.constant 9.99999974E-6 : f32
    %206 = vector.broadcast %cst_106 : f32 to vector<16x128xf32>
    %207 = arith.addf %205, %206 : vector<16x128xf32>
    %208 = math.rsqrt %207 : vector<16x128xf32>
    %209 = arith.mulf %194, %208 : vector<16x128xf32>
    %210 = vector.extract_strided_slice %1 {offsets = [2, 0], sizes = [1, 128], strides = [1, 1]} : vector<5x128xf32> to vector<1x128xf32>
    %211 = vector.broadcast %210 : vector<1x128xf32> to vector<16x128xf32>
    %212 = arith.mulf %209, %211 : vector<16x128xf32>
    %213 = vector.extract_strided_slice %2 {offsets = [2, 0], sizes = [1, 128], strides = [1, 1]} : vector<5x128xf32> to vector<1x128xf32>
    %214 = vector.broadcast %213 : vector<1x128xf32> to vector<16x128xf32>
    %215 = arith.addf %212, %214 : vector<16x128xf32>
    %216 = vector.extract_strided_slice %3 {offsets = [2, 0], sizes = [1, 128], strides = [1, 1]} : vector<5x128xf32> to vector<1x128xf32>
    %cst_107 = arith.constant 0.000000e+00 : f32
    %217 = vector.broadcast %cst_107 : f32 to vector<16x128xf32>
    %218 = arith.cmpf ogt, %215, %217 : vector<16x128xf32>
    %219 = vector.broadcast %216 : vector<1x128xf32> to vector<16x128xf32>
    %220 = arith.mulf %219, %215 : vector<16x128xf32>
    %221 = arith.select %218, %215, %220 : vector<16x128xi1>, vector<16x128xf32>
    %c0_108 = arith.constant 0 : index
    %c0_109 = arith.constant 0 : index
    %c0_110 = arith.constant 0 : index
    %222 = vector.load %arg9[%c0_108, %c0_109, %c0_110] : memref<1x16x128xf32, #tpu.memory_space<vmem>>, vector<1x16x128xf32>
    %223 = vector.shape_cast %222 : vector<1x16x128xf32> to vector<16x128xf32>
    %224 = vector.shape_cast %221 : vector<16x128xf32> to vector<1x16x128xf32>
    tpu.vector_store %arg9[%c0_108, %c0_109, %c0_110], %224 {strides = array<i32>} : memref<1x16x128xf32, #tpu.memory_space<vmem>>, vector<1x16x128xf32>,
    %cst_111 = arith.constant 0.000000e+00 : f32
    %225 = vector.broadcast %cst_111 : f32 to vector<16x128xf32>
    %cst_112 = arith.constant 0.000000e+00 : f32
    %226 = vector.broadcast %cst_112 : f32 to vector<16x128xf32>
    %c0_113 = arith.constant 0 : index
    %c0_114 = arith.constant 0 : index
    %c0_115 = arith.constant 0 : index
    %227 = vector.load %arg9[%c0_113, %c0_114, %c0_115] : memref<1x16x128xf32, #tpu.memory_space<vmem>>, vector<1x16x128xf32>
    %228 = vector.shape_cast %227 : vector<1x16x128xf32> to vector<16x128xf32>
    %c16 = arith.constant 16 : index
    %c0_116 = arith.constant 0 : index
    %c0_117 = arith.constant 0 : index
    %229 = vector.load %arg2[%c16, %c0_116, %c0_117] : memref<30x128x128xf32, #tpu.memory_space<vmem>>, vector<1x128x128xf32>
    %230 = vector.shape_cast %229 : vector<1x128x128xf32> to vector<128x128xf32>
    %cst_118 = arith.constant dense<0.000000e+00> : vector<16x128xf32>
    %231 = tpu.matmul %228, %230, %cst_118 {dimension_numbers = #tpu.dot_dimension_numbers<[1], [0], [0], [1], [0, 0, 1, 1], [], []>} : vector<16x128xf32>, vector<128x128xf32>, vector<16x128xf32> -> vector<16x128xf32>
    %232 = arith.addf %225, %231 : vector<16x128xf32>
    %c12 = arith.constant 12 : index
    %c0_119 = arith.constant 0 : index
    %c0_120 = arith.constant 0 : index
    %233 = vector.load %arg2[%c12, %c0_119, %c0_120] : memref<30x128x128xf32, #tpu.memory_space<vmem>>, vector<1x128x128xf32>
    %234 = vector.shape_cast %233 : vector<1x128x128xf32> to vector<128x128xf32>
    %cst_121 = arith.constant dense<0.000000e+00> : vector<16x128xf32>
    %235 = tpu.matmul %228, %234, %cst_121 {dimension_numbers = #tpu.dot_dimension_numbers<[1], [0], [0], [1], [0, 0, 1, 1], [], []>} : vector<16x128xf32>, vector<128x128xf32>, vector<16x128xf32> -> vector<16x128xf32>
    %236 = arith.addf %226, %235 : vector<16x128xf32>
    %c0_122 = arith.constant 0 : index
    %c0_123 = arith.constant 0 : index
    %c0_124 = arith.constant 0 : index
    %237 = vector.load %arg8[%c0_122, %c0_123, %c0_124] : memref<1x16x128xf32, #tpu.memory_space<vmem>>, vector<1x16x128xf32>
    %238 = vector.shape_cast %237 : vector<1x16x128xf32> to vector<16x128xf32>
    %c17 = arith.constant 17 : index
    %c0_125 = arith.constant 0 : index
    %c0_126 = arith.constant 0 : index
    %239 = vector.load %arg2[%c17, %c0_125, %c0_126] : memref<30x128x128xf32, #tpu.memory_space<vmem>>, vector<1x128x128xf32>
    %240 = vector.shape_cast %239 : vector<1x128x128xf32> to vector<128x128xf32>
    %cst_127 = arith.constant dense<0.000000e+00> : vector<16x128xf32>
    %241 = tpu.matmul %238, %240, %cst_127 {dimension_numbers = #tpu.dot_dimension_numbers<[1], [0], [0], [1], [0, 0, 1, 1], [], []>} : vector<16x128xf32>, vector<128x128xf32>, vector<16x128xf32> -> vector<16x128xf32>
    %242 = arith.addf %232, %241 : vector<16x128xf32>
    %c13 = arith.constant 13 : index
    %c0_128 = arith.constant 0 : index
    %c0_129 = arith.constant 0 : index
    %243 = vector.load %arg2[%c13, %c0_128, %c0_129] : memref<30x128x128xf32, #tpu.memory_space<vmem>>, vector<1x128x128xf32>
    %244 = vector.shape_cast %243 : vector<1x128x128xf32> to vector<128x128xf32>
    %cst_130 = arith.constant dense<0.000000e+00> : vector<16x128xf32>
    %245 = tpu.matmul %238, %244, %cst_130 {dimension_numbers = #tpu.dot_dimension_numbers<[1], [0], [0], [1], [0, 0, 1, 1], [], []>} : vector<16x128xf32>, vector<128x128xf32>, vector<16x128xf32> -> vector<16x128xf32>
    %246 = arith.addf %236, %245 : vector<16x128xf32>
    %c0_131 = arith.constant 0 : index
    %c0_132 = arith.constant 0 : index
    %c0_133 = arith.constant 0 : index
    %247 = vector.load %arg7[%c0_131, %c0_132, %c0_133] : memref<1x16x128xf32, #tpu.memory_space<vmem>>, vector<1x16x128xf32>
    %248 = vector.shape_cast %247 : vector<1x16x128xf32> to vector<16x128xf32>
    %c18 = arith.constant 18 : index
    %c0_134 = arith.constant 0 : index
    %c0_135 = arith.constant 0 : index
    %249 = vector.load %arg2[%c18, %c0_134, %c0_135] : memref<30x128x128xf32, #tpu.memory_space<vmem>>, vector<1x128x128xf32>
    %250 = vector.shape_cast %249 : vector<1x128x128xf32> to vector<128x128xf32>
    %cst_136 = arith.constant dense<0.000000e+00> : vector<16x128xf32>
    %251 = tpu.matmul %248, %250, %cst_136 {dimension_numbers = #tpu.dot_dimension_numbers<[1], [0], [0], [1], [0, 0, 1, 1], [], []>} : vector<16x128xf32>, vector<128x128xf32>, vector<16x128xf32> -> vector<16x128xf32>
    %252 = arith.addf %242, %251 : vector<16x128xf32>
    %c14 = arith.constant 14 : index
    %c0_137 = arith.constant 0 : index
    %c0_138 = arith.constant 0 : index
    %253 = vector.load %arg2[%c14, %c0_137, %c0_138] : memref<30x128x128xf32, #tpu.memory_space<vmem>>, vector<1x128x128xf32>
    %254 = vector.shape_cast %253 : vector<1x128x128xf32> to vector<128x128xf32>
    %cst_139 = arith.constant dense<0.000000e+00> : vector<16x128xf32>
    %255 = tpu.matmul %248, %254, %cst_139 {dimension_numbers = #tpu.dot_dimension_numbers<[1], [0], [0], [1], [0, 0, 1, 1], [], []>} : vector<16x128xf32>, vector<128x128xf32>, vector<16x128xf32> -> vector<16x128xf32>
    %256 = arith.addf %246, %255 : vector<16x128xf32>
    %c0_140 = arith.constant 0 : index
    %c0_141 = arith.constant 0 : index
    %c0_142 = arith.constant 0 : index
    %257 = vector.load %arg1[%c0_140, %c0_141, %c0_142] : memref<1x16x128xf32, #tpu.memory_space<vmem>>, vector<1x16x128xf32>
    %258 = vector.shape_cast %257 : vector<1x16x128xf32> to vector<16x128xf32>
    %c19 = arith.constant 19 : index
    %c0_143 = arith.constant 0 : index
    %c0_144 = arith.constant 0 : index
    %259 = vector.load %arg2[%c19, %c0_143, %c0_144] : memref<30x128x128xf32, #tpu.memory_space<vmem>>, vector<1x128x128xf32>
    %260 = vector.shape_cast %259 : vector<1x128x128xf32> to vector<128x128xf32>
    %cst_145 = arith.constant dense<0.000000e+00> : vector<16x128xf32>
    %261 = tpu.matmul %258, %260, %cst_145 {dimension_numbers = #tpu.dot_dimension_numbers<[1], [0], [0], [1], [0, 0, 1, 1], [], []>} : vector<16x128xf32>, vector<128x128xf32>, vector<16x128xf32> -> vector<16x128xf32>
    %262 = arith.addf %252, %261 : vector<16x128xf32>
    %c15 = arith.constant 15 : index
    %c0_146 = arith.constant 0 : index
    %c0_147 = arith.constant 0 : index
    %263 = vector.load %arg2[%c15, %c0_146, %c0_147] : memref<30x128x128xf32, #tpu.memory_space<vmem>>, vector<1x128x128xf32>
    %264 = vector.shape_cast %263 : vector<1x128x128xf32> to vector<128x128xf32>
    %cst_148 = arith.constant dense<0.000000e+00> : vector<16x128xf32>
    %265 = tpu.matmul %258, %264, %cst_148 {dimension_numbers = #tpu.dot_dimension_numbers<[1], [0], [0], [1], [0, 0, 1, 1], [], []>} : vector<16x128xf32>, vector<128x128xf32>, vector<16x128xf32> -> vector<16x128xf32>
    %266 = arith.addf %256, %265 : vector<16x128xf32>
    %c8_i32_149 = arith.constant 8 : i32
    %267 = vector.broadcast %c8_i32_149 : i32 to vector<16x16xi32>
    %268 = arith.subi %4, %267 : vector<16x16xi32>
    %269 = arith.cmpi eq, %5, %268 : vector<16x16xi32>
    %270 = arith.extui %269 : vector<16x16xi1> to vector<16x16xi32>
    %271 = arith.sitofp %270 : vector<16x16xi32> to vector<16x16xf32>
    %cst_150 = arith.constant dense<0.000000e+00> : vector<16x128xf32>
    %272 = tpu.matmul %271, %266, %cst_150 {dimension_numbers = #tpu.dot_dimension_numbers<[1], [0], [0], [1], [0, 0, 1, 1], [], []>} : vector<16x16xf32>, vector<16x128xf32>, vector<16x128xf32> -> vector<16x128xf32>
    %273 = arith.addf %262, %272 : vector<16x128xf32>
    %274 = vector.extract_strided_slice %0 {offsets = [3, 0], sizes = [1, 128], strides = [1, 1]} : vector<5x128xf32> to vector<1x128xf32>
    %275 = vector.broadcast %274 : vector<1x128xf32> to vector<16x128xf32>
    %276 = arith.addf %273, %275 : vector<16x128xf32>
    %c8_i32_151 = arith.constant 8 : i32
    %277 = tpu.dynamic_rotate %276 by %c8_i32_151 dim 1 : vector<16x128xf32>, i32 -> vector<16x128xf32>
    %278 = arith.addf %276, %277 : vector<16x128xf32>
    %c16_i32_152 = arith.constant 16 : i32
    %279 = tpu.dynamic_rotate %278 by %c16_i32_152 dim 1 : vector<16x128xf32>, i32 -> vector<16x128xf32>
    %280 = arith.addf %278, %279 : vector<16x128xf32>
    %c32_i32_153 = arith.constant 32 : i32
    %281 = tpu.dynamic_rotate %280 by %c32_i32_153 dim 1 : vector<16x128xf32>, i32 -> vector<16x128xf32>
    %282 = arith.addf %280, %281 : vector<16x128xf32>
    %c64_i32_154 = arith.constant 64 : i32
    %283 = tpu.dynamic_rotate %282 by %c64_i32_154 dim 1 : vector<16x128xf32>, i32 -> vector<16x128xf32>
    %284 = arith.addf %282, %283 : vector<16x128xf32>
    %cst_155 = arith.constant 6.250000e-02 : f32
    %285 = vector.broadcast %cst_155 : f32 to vector<16x128xf32>
    %286 = arith.mulf %284, %285 : vector<16x128xf32>
    %287 = arith.subf %276, %286 : vector<16x128xf32>
    %288 = arith.mulf %287, %287 : vector<16x128xf32>
    %c8_i32_156 = arith.constant 8 : i32
    %289 = tpu.dynamic_rotate %288 by %c8_i32_156 dim 1 : vector<16x128xf32>, i32 -> vector<16x128xf32>
    %290 = arith.addf %288, %289 : vector<16x128xf32>
    %c16_i32_157 = arith.constant 16 : i32
    %291 = tpu.dynamic_rotate %290 by %c16_i32_157 dim 1 : vector<16x128xf32>, i32 -> vector<16x128xf32>
    %292 = arith.addf %290, %291 : vector<16x128xf32>
    %c32_i32_158 = arith.constant 32 : i32
    %293 = tpu.dynamic_rotate %292 by %c32_i32_158 dim 1 : vector<16x128xf32>, i32 -> vector<16x128xf32>
    %294 = arith.addf %292, %293 : vector<16x128xf32>
    %c64_i32_159 = arith.constant 64 : i32
    %295 = tpu.dynamic_rotate %294 by %c64_i32_159 dim 1 : vector<16x128xf32>, i32 -> vector<16x128xf32>
    %296 = arith.addf %294, %295 : vector<16x128xf32>
    %cst_160 = arith.constant 6.250000e-02 : f32
    %297 = vector.broadcast %cst_160 : f32 to vector<16x128xf32>
    %298 = arith.mulf %296, %297 : vector<16x128xf32>
    %cst_161 = arith.constant 9.99999974E-6 : f32
    %299 = vector.broadcast %cst_161 : f32 to vector<16x128xf32>
    %300 = arith.addf %298, %299 : vector<16x128xf32>
    %301 = math.rsqrt %300 : vector<16x128xf32>
    %302 = arith.mulf %287, %301 : vector<16x128xf32>
    %303 = vector.extract_strided_slice %1 {offsets = [3, 0], sizes = [1, 128], strides = [1, 1]} : vector<5x128xf32> to vector<1x128xf32>
    %304 = vector.broadcast %303 : vector<1x128xf32> to vector<16x128xf32>
    %305 = arith.mulf %302, %304 : vector<16x128xf32>
    %306 = vector.extract_strided_slice %2 {offsets = [3, 0], sizes = [1, 128], strides = [1, 1]} : vector<5x128xf32> to vector<1x128xf32>
    %307 = vector.broadcast %306 : vector<1x128xf32> to vector<16x128xf32>
    %308 = arith.addf %305, %307 : vector<16x128xf32>
    %309 = vector.extract_strided_slice %3 {offsets = [3, 0], sizes = [1, 128], strides = [1, 1]} : vector<5x128xf32> to vector<1x128xf32>
    %cst_162 = arith.constant 0.000000e+00 : f32
    %310 = vector.broadcast %cst_162 : f32 to vector<16x128xf32>
    %311 = arith.cmpf ogt, %308, %310 : vector<16x128xf32>
    %312 = vector.broadcast %309 : vector<1x128xf32> to vector<16x128xf32>
    %313 = arith.mulf %312, %308 : vector<16x128xf32>
    %314 = arith.select %311, %308, %313 : vector<16x128xi1>, vector<16x128xf32>
    %c0_163 = arith.constant 0 : index
    %c0_164 = arith.constant 0 : index
    %c0_165 = arith.constant 0 : index
    %315 = vector.load %arg10[%c0_163, %c0_164, %c0_165] : memref<1x16x128xf32, #tpu.memory_space<vmem>>, vector<1x16x128xf32>
    %316 = vector.shape_cast %315 : vector<1x16x128xf32> to vector<16x128xf32>
    %317 = vector.shape_cast %314 : vector<16x128xf32> to vector<1x16x128xf32>
    tpu.vector_store %arg10[%c0_163, %c0_164, %c0_165], %317 {strides = array<i32>} : memref<1x16x128xf32, #tpu.memory_space<vmem>>, vector<1x16x128xf32>,
    %cst_166 = arith.constant 0.000000e+00 : f32
    %318 = vector.broadcast %cst_166 : f32 to vector<16x128xf32>
    %c0_167 = arith.constant 0 : index
    %c0_168 = arith.constant 0 : index
    %c0_169 = arith.constant 0 : index
    %319 = vector.load %arg10[%c0_167, %c0_168, %c0_169] : memref<1x16x128xf32, #tpu.memory_space<vmem>>, vector<1x16x128xf32>
    %320 = vector.shape_cast %319 : vector<1x16x128xf32> to vector<16x128xf32>
    %c25 = arith.constant 25 : index
    %c0_170 = arith.constant 0 : index
    %c0_171 = arith.constant 0 : index
    %321 = vector.load %arg2[%c25, %c0_170, %c0_171] : memref<30x128x128xf32, #tpu.memory_space<vmem>>, vector<1x128x128xf32>
    %322 = vector.shape_cast %321 : vector<1x128x128xf32> to vector<128x128xf32>
    %cst_172 = arith.constant dense<0.000000e+00> : vector<16x128xf32>
    %323 = tpu.matmul %320, %322, %cst_172 {dimension_numbers = #tpu.dot_dimension_numbers<[1], [0], [0], [1], [0, 0, 1, 1], [], []>} : vector<16x128xf32>, vector<128x128xf32>, vector<16x128xf32> -> vector<16x128xf32>
    %324 = arith.addf %318, %323 : vector<16x128xf32>
    %c0_173 = arith.constant 0 : index
    %c0_174 = arith.constant 0 : index
    %c0_175 = arith.constant 0 : index
    %325 = vector.load %arg9[%c0_173, %c0_174, %c0_175] : memref<1x16x128xf32, #tpu.memory_space<vmem>>, vector<1x16x128xf32>
    %326 = vector.shape_cast %325 : vector<1x16x128xf32> to vector<16x128xf32>
    %c26 = arith.constant 26 : index
    %c0_176 = arith.constant 0 : index
    %c0_177 = arith.constant 0 : index
    %327 = vector.load %arg2[%c26, %c0_176, %c0_177] : memref<30x128x128xf32, #tpu.memory_space<vmem>>, vector<1x128x128xf32>
    %328 = vector.shape_cast %327 : vector<1x128x128xf32> to vector<128x128xf32>
    %cst_178 = arith.constant dense<0.000000e+00> : vector<16x128xf32>
    %329 = tpu.matmul %326, %328, %cst_178 {dimension_numbers = #tpu.dot_dimension_numbers<[1], [0], [0], [1], [0, 0, 1, 1], [], []>} : vector<16x128xf32>, vector<128x128xf32>, vector<16x128xf32> -> vector<16x128xf32>
    %330 = arith.addf %324, %329 : vector<16x128xf32>
    %c0_179 = arith.constant 0 : index
    %c0_180 = arith.constant 0 : index
    %c0_181 = arith.constant 0 : index
    %331 = vector.load %arg8[%c0_179, %c0_180, %c0_181] : memref<1x16x128xf32, #tpu.memory_space<vmem>>, vector<1x16x128xf32>
    %332 = vector.shape_cast %331 : vector<1x16x128xf32> to vector<16x128xf32>
    %c27 = arith.constant 27 : index
    %c0_182 = arith.constant 0 : index
    %c0_183 = arith.constant 0 : index
    %333 = vector.load %arg2[%c27, %c0_182, %c0_183] : memref<30x128x128xf32, #tpu.memory_space<vmem>>, vector<1x128x128xf32>
    %334 = vector.shape_cast %333 : vector<1x128x128xf32> to vector<128x128xf32>
    %cst_184 = arith.constant dense<0.000000e+00> : vector<16x128xf32>
    %335 = tpu.matmul %332, %334, %cst_184 {dimension_numbers = #tpu.dot_dimension_numbers<[1], [0], [0], [1], [0, 0, 1, 1], [], []>} : vector<16x128xf32>, vector<128x128xf32>, vector<16x128xf32> -> vector<16x128xf32>
    %336 = arith.addf %330, %335 : vector<16x128xf32>
    %c0_185 = arith.constant 0 : index
    %c0_186 = arith.constant 0 : index
    %c0_187 = arith.constant 0 : index
    %337 = vector.load %arg7[%c0_185, %c0_186, %c0_187] : memref<1x16x128xf32, #tpu.memory_space<vmem>>, vector<1x16x128xf32>
    %338 = vector.shape_cast %337 : vector<1x16x128xf32> to vector<16x128xf32>
    %c28 = arith.constant 28 : index
    %c0_188 = arith.constant 0 : index
    %c0_189 = arith.constant 0 : index
    %339 = vector.load %arg2[%c28, %c0_188, %c0_189] : memref<30x128x128xf32, #tpu.memory_space<vmem>>, vector<1x128x128xf32>
    %340 = vector.shape_cast %339 : vector<1x128x128xf32> to vector<128x128xf32>
    %cst_190 = arith.constant dense<0.000000e+00> : vector<16x128xf32>
    %341 = tpu.matmul %338, %340, %cst_190 {dimension_numbers = #tpu.dot_dimension_numbers<[1], [0], [0], [1], [0, 0, 1, 1], [], []>} : vector<16x128xf32>, vector<128x128xf32>, vector<16x128xf32> -> vector<16x128xf32>
    %342 = arith.addf %336, %341 : vector<16x128xf32>
    %c0_191 = arith.constant 0 : index
    %c0_192 = arith.constant 0 : index
    %c0_193 = arith.constant 0 : index
    %343 = vector.load %arg1[%c0_191, %c0_192, %c0_193] : memref<1x16x128xf32, #tpu.memory_space<vmem>>, vector<1x16x128xf32>
    %344 = vector.shape_cast %343 : vector<1x16x128xf32> to vector<16x128xf32>
    %c29 = arith.constant 29 : index
    %c0_194 = arith.constant 0 : index
    %c0_195 = arith.constant 0 : index
    %345 = vector.load %arg2[%c29, %c0_194, %c0_195] : memref<30x128x128xf32, #tpu.memory_space<vmem>>, vector<1x128x128xf32>
    %346 = vector.shape_cast %345 : vector<1x128x128xf32> to vector<128x128xf32>
    %cst_196 = arith.constant dense<0.000000e+00> : vector<16x128xf32>
    %347 = tpu.matmul %344, %346, %cst_196 {dimension_numbers = #tpu.dot_dimension_numbers<[1], [0], [0], [1], [0, 0, 1, 1], [], []>} : vector<16x128xf32>, vector<128x128xf32>, vector<16x128xf32> -> vector<16x128xf32>
    %348 = arith.addf %342, %347 : vector<16x128xf32>
    %349 = vector.extract_strided_slice %0 {offsets = [4, 0], sizes = [1, 128], strides = [1, 1]} : vector<5x128xf32> to vector<1x128xf32>
    %350 = vector.broadcast %349 : vector<1x128xf32> to vector<16x128xf32>
    %351 = arith.addf %348, %350 : vector<16x128xf32>
    %c8_i32_197 = arith.constant 8 : i32
    %352 = tpu.dynamic_rotate %351 by %c8_i32_197 dim 1 : vector<16x128xf32>, i32 -> vector<16x128xf32>
    %353 = arith.addf %351, %352 : vector<16x128xf32>
    %c16_i32_198 = arith.constant 16 : i32
    %354 = tpu.dynamic_rotate %353 by %c16_i32_198 dim 1 : vector<16x128xf32>, i32 -> vector<16x128xf32>
    %355 = arith.addf %353, %354 : vector<16x128xf32>
    %c32_i32_199 = arith.constant 32 : i32
    %356 = tpu.dynamic_rotate %355 by %c32_i32_199 dim 1 : vector<16x128xf32>, i32 -> vector<16x128xf32>
    %357 = arith.addf %355, %356 : vector<16x128xf32>
    %c64_i32_200 = arith.constant 64 : i32
    %358 = tpu.dynamic_rotate %357 by %c64_i32_200 dim 1 : vector<16x128xf32>, i32 -> vector<16x128xf32>
    %359 = arith.addf %357, %358 : vector<16x128xf32>
    %cst_201 = arith.constant 6.250000e-02 : f32
    %360 = vector.broadcast %cst_201 : f32 to vector<16x128xf32>
    %361 = arith.mulf %359, %360 : vector<16x128xf32>
    %362 = arith.subf %351, %361 : vector<16x128xf32>
    %363 = arith.mulf %362, %362 : vector<16x128xf32>
    %c8_i32_202 = arith.constant 8 : i32
    %364 = tpu.dynamic_rotate %363 by %c8_i32_202 dim 1 : vector<16x128xf32>, i32 -> vector<16x128xf32>
    %365 = arith.addf %363, %364 : vector<16x128xf32>
    %c16_i32_203 = arith.constant 16 : i32
    %366 = tpu.dynamic_rotate %365 by %c16_i32_203 dim 1 : vector<16x128xf32>, i32 -> vector<16x128xf32>
    %367 = arith.addf %365, %366 : vector<16x128xf32>
    %c32_i32_204 = arith.constant 32 : i32
    %368 = tpu.dynamic_rotate %367 by %c32_i32_204 dim 1 : vector<16x128xf32>, i32 -> vector<16x128xf32>
    %369 = arith.addf %367, %368 : vector<16x128xf32>
    %c64_i32_205 = arith.constant 64 : i32
    %370 = tpu.dynamic_rotate %369 by %c64_i32_205 dim 1 : vector<16x128xf32>, i32 -> vector<16x128xf32>
    %371 = arith.addf %369, %370 : vector<16x128xf32>
    %cst_206 = arith.constant 6.250000e-02 : f32
    %372 = vector.broadcast %cst_206 : f32 to vector<16x128xf32>
    %373 = arith.mulf %371, %372 : vector<16x128xf32>
    %cst_207 = arith.constant 9.99999974E-6 : f32
    %374 = vector.broadcast %cst_207 : f32 to vector<16x128xf32>
    %375 = arith.addf %373, %374 : vector<16x128xf32>
    %376 = math.rsqrt %375 : vector<16x128xf32>
    %377 = arith.mulf %362, %376 : vector<16x128xf32>
    %378 = vector.extract_strided_slice %1 {offsets = [4, 0], sizes = [1, 128], strides = [1, 1]} : vector<5x128xf32> to vector<1x128xf32>
    %379 = vector.broadcast %378 : vector<1x128xf32> to vector<16x128xf32>
    %380 = arith.mulf %377, %379 : vector<16x128xf32>
    %381 = vector.extract_strided_slice %2 {offsets = [4, 0], sizes = [1, 128], strides = [1, 1]} : vector<5x128xf32> to vector<1x128xf32>
    %382 = vector.broadcast %381 : vector<1x128xf32> to vector<16x128xf32>
    %383 = arith.addf %380, %382 : vector<16x128xf32>
    %384 = vector.extract_strided_slice %3 {offsets = [4, 0], sizes = [1, 128], strides = [1, 1]} : vector<5x128xf32> to vector<1x128xf32>
    %cst_208 = arith.constant 0.000000e+00 : f32
    %385 = vector.broadcast %cst_208 : f32 to vector<16x128xf32>
    %386 = arith.cmpf ogt, %383, %385 : vector<16x128xf32>
    %387 = vector.broadcast %384 : vector<1x128xf32> to vector<16x128xf32>
    %388 = arith.mulf %387, %383 : vector<16x128xf32>
    %389 = arith.select %386, %383, %388 : vector<16x128xi1>, vector<16x128xf32>
    %c0_209 = arith.constant 0 : index
    %c0_210 = arith.constant 0 : index
    %c0_211 = arith.constant 0 : index
    %390 = vector.load %arg11[%c0_209, %c0_210, %c0_211] : memref<1x16x128xf32, #tpu.memory_space<vmem>>, vector<1x16x128xf32>
    %391 = vector.shape_cast %390 : vector<1x16x128xf32> to vector<16x128xf32>
    %392 = vector.shape_cast %389 : vector<16x128xf32> to vector<1x16x128xf32>
    tpu.vector_store %arg11[%c0_209, %c0_210, %c0_211], %392 {strides = array<i32>} : memref<1x16x128xf32, #tpu.memory_space<vmem>>, vector<1x16x128xf32>,
    return
  }
  func.func @transform_0(%arg0: i32) -> (i32, i32, i32) {
    %c0_i32 = arith.constant 0 : i32
    %c0_i32_0 = arith.constant 0 : i32
    %c0_i32_1 = arith.constant 0 : i32
    return %arg0, %c0_i32, %c0_i32_0 : i32, i32, i32
  }
  func.func @transform_1(%arg0: i32) -> (i32, i32, i32) {
    %c0_i32 = arith.constant 0 : i32
    %c0_i32_0 = arith.constant 0 : i32
    %c0_i32_1 = arith.constant 0 : i32
    %c0_i32_2 = arith.constant 0 : i32
    return %c0_i32, %c0_i32_0, %c0_i32_1 : i32, i32, i32
  }
  func.func @transform_2(%arg0: i32) -> (i32, i32) {
    %c0_i32 = arith.constant 0 : i32
    %c0_i32_0 = arith.constant 0 : i32
    %c0_i32_1 = arith.constant 0 : i32
    return %c0_i32, %c0_i32_0 : i32, i32
  }
  func.func @transform_3(%arg0: i32) -> (i32, i32) {
    %c0_i32 = arith.constant 0 : i32
    %c0_i32_0 = arith.constant 0 : i32
    %c0_i32_1 = arith.constant 0 : i32
    return %c0_i32, %c0_i32_0 : i32, i32
  }
  func.func @transform_4(%arg0: i32) -> (i32, i32) {
    %c0_i32 = arith.constant 0 : i32
    %c0_i32_0 = arith.constant 0 : i32
    %c0_i32_1 = arith.constant 0 : i32
    return %c0_i32, %c0_i32_0 : i32, i32
  }
  func.func @transform_5(%arg0: i32) -> (i32, i32) {
    %c0_i32 = arith.constant 0 : i32
    %c0_i32_0 = arith.constant 0 : i32
    %c0_i32_1 = arith.constant 0 : i32
    return %c0_i32, %c0_i32_0 : i32, i32
  }
  func.func @transform_6(%arg0: i32) -> (i32, i32, i32) {
    %c0_i32 = arith.constant 0 : i32
    %c0_i32_0 = arith.constant 0 : i32
    %c0_i32_1 = arith.constant 0 : i32
    return %arg0, %c0_i32, %c0_i32_0 : i32, i32, i32
  }
  func.func @transform_7(%arg0: i32) -> (i32, i32, i32) {
    %c0_i32 = arith.constant 0 : i32
    %c0_i32_0 = arith.constant 0 : i32
    %c0_i32_1 = arith.constant 0 : i32
    return %arg0, %c0_i32, %c0_i32_0 : i32, i32, i32
  }
  func.func @transform_8(%arg0: i32) -> (i32, i32, i32) {
    %c0_i32 = arith.constant 0 : i32
    %c0_i32_0 = arith.constant 0 : i32
    %c0_i32_1 = arith.constant 0 : i32
    return %arg0, %c0_i32, %c0_i32_0 : i32, i32, i32
  }
  func.func @transform_9(%arg0: i32) -> (i32, i32, i32) {
    %c0_i32 = arith.constant 0 : i32
    %c0_i32_0 = arith.constant 0 : i32
    %c0_i32_1 = arith.constant 0 : i32
    return %arg0, %c0_i32, %c0_i32_0 : i32, i32, i32
  }
  func.func @transform_10(%arg0: i32) -> (i32, i32, i32) {
    %c0_i32 = arith.constant 0 : i32
    %c0_i32_0 = arith.constant 0 : i32
    %c0_i32_1 = arith.constant 0 : i32
    return %arg0, %c0_i32, %c0_i32_0 : i32, i32, i32
  }
}

</mosaic_0001>

<bundles_post_ra>
// kernel: tile.53
= control target key start
LH: loop header
LB: loop body
LE: loop exit
PB: predicated region body
PF: predicated region fallthrough
CT: control target
= control target key end

     0   :  { %s28_s0 = inlined_call_operand.vmem [shape: f32[8], index: 0, kind: input, shape index: {}]   ;;  %s29_s1 = inlined_call_operand.vmem [shape: f32[16,8], index: 1, kind: output, shape index: {}]  }
   0x1   :  { %v4_v0 = vld [vmem:[%s28_s0] ss:$0 sm:$0xff] }
   0x2   :  { %5 = vst [vmem:[%s29_s1] sm:$0xff] %v4_v0  ;;  %8 = vst [vmem:[%s29_s1 + $0x8] sm:$0xff] %v4_v0 }

// kernel: tile.70
= control target key start
LH: loop header
LB: loop body
LE: loop exit
PB: predicated region body
PF: predicated region fallthrough
CT: control target
= control target key end

     0   :  { %s133_s10 = smov 120   ;;  %s134_s11 = smov 104   ;;  %vm3_vm0 = vcmask 64512   ;;  %vm9_vm1 = vcmask 1048512   ;;  %vm15_vm2 = vcmask 982912   ;;  %vm21_vm3 = vcmask 917312   ;;  %s209_s0 = inlined_call_operand.vmem [shape: f32[16,8], index: 0, kind: input, shape index: {}]   ;;  %s210_s1 = inlined_call_operand.vmem [shape: f32[1,128], index: 1, kind: output, shape index: {}]  }
   0x1   :  { %v103_v0 = vld [vmem:[%s209_s0 + $0xf] sm:$0x1]   ;;  %v105_v1 = vld [vmem:[%s209_s0 + $0xd] sm:$0x1]   ;;  %v104_v2 = vld [vmem:[%s209_s0 + $0xe] sm:$0x1]  }
   0x2   :  { %7 = vrot.lane.b32.xlu0 %v103_v0, %s133_s10  ;;  %19 = vrot.lane.b32.xlu1 %v105_v1, %s134_s11  ;;  %v106_v3 = vld [vmem:[%s209_s0 + $0xc] sm:$0x1]   ;;  %s135_s16 = smov 112   ;;  %s136_s17 = smov 96   ;;  %v107_v4 = vld [vmem:[%s209_s0 + $0xb] sm:$0x1]  }
   0x3   :  { %v108_v5 = vld [vmem:[%s209_s0 + $0xa] sm:$0x1]   ;;  %v2_v6 = vld [vmem:[%s209_s0] sm:$0x1]   ;;  %s137_s24 = smov 88   ;;  %s138_s25 = smov 80  }
   0x4   :  { %4 = vst.msk [vmem:[#allocation0] sm:$0x1] %vm3_vm0, %v2_v6   ;;  %v109_v7 = vld [vmem:[%s209_s0 + $0x9] sm:$0x1]   ;;  %v110_v8 = vld [vmem:[%s209_s0 + $0x8] sm:$0x1]  }
   0x5   :  { %s139_s30 = smov 72   ;;  %s140_s2 = smov 64   ;;  %v111_v9 = vld [vmem:[%s209_s0 + $0x7] sm:$0x1]   ;;  %v112_v10 = vld [vmem:[%s209_s0 + $0x6] sm:$0x1]  }
   0x6   :  { %13 = vrot.lane.b32.xlu0 %v104_v2, %s135_s16  ;;  %25 = vrot.lane.b32.xlu1 %v106_v3, %s136_s17  ;;  %s141_s7 = smov 56   ;;  %s142_s8 = smov 48   ;;  %v113_v11 = vld [vmem:[%s209_s0 + $0x5] sm:$0x1]   ;;  %v114_v12 = vld [vmem:[%s209_s0 + $0x4] sm:$0x1]  }
   0x7   :  { %s143_s13 = smov 40   ;;  %s144_s14 = smov 32   ;;  %v115_v13 = vld [vmem:[%s209_s0 + $0x3] sm:$0x1]   ;;  %v116_v14 = vld [vmem:[%s209_s0 + $0x2] sm:$0x1]  }
   0x8   :  { %s145_s19 = smov 24   ;;  %s146_s20 = smov 16   ;;  %v117_v15 = vld [vmem:[%s209_s0 + $0x1] sm:$0x1]   ;;  %vm27_vm4 = vcmask 851712   ;;  %vm33_vm5 = vcmask 786112  }
   0x9   :  { %s147_s0 = smov 8   ;;  %vm39_vm6 = vcmask 720512   ;;  %vm45_vm7 = vcmask 654912   ;;  %vm51_vm8 = vcmask 589312   ;;  %vm57_vm9 = vcmask 523712  }
   0xa   :  { %31 = vrot.lane.b32.xlu0 %v107_v4, %s137_s24  ;;  %37 = vrot.lane.b32.xlu1 %v108_v5, %s138_s25  ;;  %vm63_vm10 = vcmask 458112   ;;  %vm69_vm11 = vcmask 392512   ;;  %vm75_vm12 = vcmask 326912   ;;  %vm81_vm13 = vcmask 261312  }
   0xb   :  { %vm87_vm14 = vcmask 195712   ;;  %vm93_vm15 = vcmask 130112  }
   0xe   :  { %43 = vrot.lane.b32.xlu0 %v109_v7, %s139_s30  ;;  %49 = vrot.lane.b32.xlu1 %v110_v8, %s140_s2 }
  0x12   :  { %55 = vrot.lane.b32.xlu0 %v111_v9, %s141_s7  ;;  %61 = vrot.lane.b32.xlu1 %v112_v10, %s142_s8 }
  0x16   :  { %67 = vrot.lane.b32.xlu0 %v113_v11, %s143_s13  ;;  %73 = vrot.lane.b32.xlu1 %v114_v12, %s144_s14 }
  0x1a   :  { %79 = vrot.lane.b32.xlu0 %v115_v13, %s145_s19  ;;  %85 = vrot.lane.b32.xlu1 %v116_v14, %s146_s20 }
  0x1e   :  { %91 = vrot.lane.b32.xlu0 %v117_v15, %s147_s0 }
  0x74   :  { %v8_v16 = vpop.permute.xlu0 %7   ;;  %v20_v17 = vpop.permute.xlu1 %19  }
  0x75   :  { %10 = vst.msk [vmem:[#allocation0] sm:$0x1] %vm9_vm1, %v8_v16  }
  0x78   :  { %v14_v18 = vpop.permute.xlu0 %13   ;;  %v26_v19 = vpop.permute.xlu1 %25  }
  0x79   :  { %16 = vst.msk [vmem:[#allocation0] sm:$0x1] %vm15_vm2, %v14_v18  }
  0x7a   :  { %22 = vst.msk [vmem:[#allocation0] sm:$0x1] %vm21_vm3, %v20_v17  }
  0x7b   :  { %28 = vst.msk [vmem:[#allocation0] sm:$0x1] %vm27_vm4, %v26_v19  }
  0x7c   :  { %v32_v20 = vpop.permute.xlu0 %31   ;;  %v38_v21 = vpop.permute.xlu1 %37  }
  0x7d   :  { %34 = vst.msk [vmem:[#allocation0] sm:$0x1] %vm33_vm5, %v32_v20  }
  0x7e   :  { %40 = vst.msk [vmem:[#allocation0] sm:$0x1] %vm39_vm6, %v38_v21  }
  0x80   :  { %v44_v22 = vpop.permute.xlu0 %43   ;;  %v50_v23 = vpop.permute.xlu1 %49  }
  0x81   :  { %46 = vst.msk [vmem:[#allocation0] sm:$0x1] %vm45_vm7, %v44_v22  }
  0x82   :  { %52 = vst.msk [vmem:[#allocation0] sm:$0x1] %vm51_vm8, %v50_v23  }
  0x84   :  { %v56_v24 = vpop.permute.xlu0 %55   ;;  %v62_v25 = vpop.permute.xlu1 %61  }
  0x85   :  { %58 = vst.msk [vmem:[#allocation0] sm:$0x1] %vm57_vm9, %v56_v24  }
  0x86   :  { %64 = vst.msk [vmem:[#allocation0] sm:$0x1] %vm63_vm10, %v62_v25  }
  0x88   :  { %v68_v26 = vpop.permute.xlu0 %67   ;;  %v74_v27 = vpop.permute.xlu1 %73  }
  0x89   :  { %70 = vst.msk [vmem:[#allocation0] sm:$0x1] %vm69_vm11, %v68_v26  }
  0x8a   :  { %76 = vst.msk [vmem:[#allocation0] sm:$0x1] %vm75_vm12, %v74_v27  }
  0x8c   :  { %v80_v28 = vpop.permute.xlu0 %79   ;;  %v86_v29 = vpop.permute.xlu1 %85  }
  0x8d   :  { %82 = vst.msk [vmem:[#allocation0] sm:$0x1] %vm81_vm13, %v80_v28  }
  0x8e   :  { %88 = vst.msk [vmem:[#allocation0] sm:$0x1] %vm87_vm14, %v86_v29  }
  0x90   :  { %v92_v30 = vpop.permute.xlu0 %91  }
  0x91   :  { %94 = vst.msk [vmem:[#allocation0] sm:$0x1] %vm93_vm15, %v92_v30  }
  0x98   :  { %v99_v31 = vld [vmem:[#allocation0] sm:$0x1] }
  0x99   :  { %102 = vst [vmem:[%s210_s1] sm:$0x1] %v99_v31 }

// kernel: dense_block_forward.1
= control target key start
LH: loop header
LB: loop body
LE: loop exit
PB: predicated region body
PF: predicated region fallthrough
CT: control target
= control target key end

     0   :  { %s5684_s13 = smov 0   ;;  %s7323_s0 = inlined_call_operand.vmem [shape: f32[2,16,128], index: 0, kind: input, shape index: {}]   ;;  %s7324_s1 = inlined_call_operand.vmem [shape: f32[30,128,128], index: 1, kind: input, shape index: {}]   ;;  %s7325_s2 = inlined_call_operand.vmem [shape: f32[5,128], index: 2, kind: input, shape index: {}]   ;;  %s7326_s3 = inlined_call_operand.vmem [shape: f32[5,128], index: 3, kind: input, shape index: {}]   ;;  %s7327_s4 = inlined_call_operand.vmem [shape: f32[5,128], index: 4, kind: input, shape index: {}]   ;;  %s7328_s5 = inlined_call_operand.vmem [shape: f32[5,128], index: 5, kind: input, shape index: {}]   ;;  %s7329_s6 = inlined_call_operand.vmem [shape: f32[2,16,128], index: 6, kind: output, shape index: {0}]   ;;  %s7330_s7 = inlined_call_operand.vmem [shape: f32[2,16,128], index: 7, kind: output, shape index: {1}]   ;;  %s7331_s8 = inlined_call_operand.vmem [shape: f32[2,16,128], index: 8, kind: output, shape index: {2}]   ;;  %s7332_s9 = inlined_call_operand.vmem [shape: f32[2,16,128], index: 9, kind: output, shape index: {3}]   ;;  %s7333_s10 = inlined_call_operand.vmem [shape: f32[2,16,128], index: 10, kind: output, shape index: {4}]  }
   0x1 LB: > { %s3774_s14 = sadd.s32 4294967295, %s5622_s13   ;;  %p3778_p0 = scmp.ge.s32.totalorder %s5622_s13, 1  ;;  %s5622_s13 = sphi %s5684_s13, %s21_s13  }
   0x2   : > { %p321_p1 = scmp.lt.s32.totalorder %s5622_s13, 3 }
   0x4   : > { %p322_p2 = pnand %p3778_p0, %p321_p1 }
   0x5   : > { %p379_p3 = scmp.lt.s32.totalorder (!%p322_p2), %s3774_s14, 1  ;;  %s5625_s15 = smov (!%p322_p2), 8  }
   0x6   : > { %325 = sbr.rel (%p322_p2) target bundleno = 6945 (0x1b21), region = 44  ;;  %s5626_s16 = smov (!%p322_p2), 16  }
   0x7   : > { %s5627_s17 = smov (!%p322_p2), 32   ;;  %s5628_s18 = smov (!%p322_p2), 64  }
   0xb   : > { %v452_v0 = vld [vmem:[%s7324_s1 + $0x78] sm:$0xff]  ;;  %v451_v1 = vld [vmem:[%s7324_s1 + $0x70] sm:$0xff]  ;;  %v450_v2 = vld [vmem:[%s7324_s1 + $0x68] sm:$0xff]  ;;  %s7335_s14 = smov (!%p379_p3, %s3774_s14), 1  ;;  %v413_v18 = vlaneseq  ;;  %v5624_v22 = vmov 0.0   ;;  %vm536_vm1 = vcmask 130048  }
   0xc   : > { %4670 = vmatprep.subr.mxu0 %v452_v0  ;;  %v449_v3 = vld [vmem:[%s7324_s1 + $0x60] sm:$0xff]  ;;  %s5704_s23 = sshll.u32 %s7335_s14, 4  ;;  %v448_v4 = vld [vmem:[%s7324_s1 + $0x58] sm:$0xff]  ;;  %v447_v6 = vld [vmem:[%s7324_s1 + $0x50] sm:$0xff] }
   0xd   : > { %4671 = vmatpush3.msra.mxu0 %v452_v0  ;;  %s5710_s26 = scalar_lea.vmem %s7323_s0, %s5704_s23  ;;  %v446_v7 = vld [vmem:[%s7324_s1 + $0x48] sm:$0xff]  ;;  %v445_v8 = vld [vmem:[%s7324_s1 + $0x40] sm:$0xff]  ;;  %v444_v9 = vld [vmem:[%s7324_s1 + $0x38] sm:$0xff]  ;;  %v5757_v19 = vshrl.u32 %v413_v18, 7  ;;  %v5759_v20 = vand.u32 127, %v413_v18  ;;  %s6100_s11 = scalar_lea.vmem %s7329_s6, %s5704_s23 }
   0xe   : > { %4672 = vmatprep.subr.mxu0 %v451_v1  ;;  %v5716_v5 = vld [vmem:[%s5710_s26] sm:$0xff]  ;;  %v443_v10 = vld [vmem:[%s7324_s1 + $0x30] sm:$0xff]  ;;  %v442_v11 = vld [vmem:[%s7324_s1 + $0x28] sm:$0xff]  ;;  %s6365_s27 = scalar_lea.vmem %s7330_s7, %s5704_s23  ;;  %s398_s12 = scalar_lea.vmem %s7331_s8, %s5704_s23 }
   0xf   : > { %4673 = vmatpush3.msra.mxu0 %v451_v1  ;;  %4702 = vmatprep.mubr.f32.mxu0 %v5716_v5  ;;  %v441_v12 = vld [vmem:[%s7324_s1 + $0x20] sm:$0xff]  ;;  %v440_v13 = vld [vmem:[%s7324_s1 + $0x18] sm:$0xff]  ;;  %v439_v14 = vld [vmem:[%s7324_s1 + $0x10] sm:$0xff]  ;;  %v3807_v21 = vadd.s32 4294967295, %v5757_v19  ;;  %v5766_v24 = vadd.s32 8, %v5757_v19  ;;  %v5823_v47 = vsub.s32 0, %v5757_v19  ;;  %vm2839_vm13 = vcmp.eq.s32.totalorder %v5759_v20, %v5757_v19  ;;  %s408_s29 = scalar_lea.vmem %s7333_s10, %s5704_s23 }
  0x10   : > { %4674 = vmatprep.subr.mxu0 %v450_v2  ;;  %v438_v15 = vld [vmem:[%s7324_s1 + $0x8] sm:$0xff]  ;;  %v437_v16 = vld [vmem:[%s7324_s1] sm:$0xff]  ;;  %v3806_v29 = vld [vmem:[%s7324_s1 + $0xf8] sm:$0xff] }
  0x11   : > { %4675 = vmatpush3.msra.mxu0 %v450_v2  ;;  %v5753_v17 = vld [vmem:[%s5710_s26 + $0x8] sm:$0xff]  ;;  %vm530_vm0 = vcmp.eq.s32.totalorder %v5759_v20, %v3807_v21  ;;  %v3808_v25 = vadd.s32 4294967295, %v5766_v24  ;;  %v3805_v30 = vld [vmem:[%s7324_s1 + $0xf0] sm:$0xff]  ;;  %v3803_v32 = vld [vmem:[%s7324_s1 + $0xe0] sm:$0xff] }
  0x12   : > { %4676 = vmatprep.subr.mxu0 %v449_v3  ;;  %v3809_v23 = vsel %vm530_vm0, 1.0, %v5624_v22  ;;  %v3804_v31 = vld [vmem:[%s7324_s1 + $0xe8] sm:$0xff]  ;;  %v3802_v33 = vld [vmem:[%s7324_s1 + $0xd8] sm:$0xff]  ;;  %v3801_v34 = vld [vmem:[%s7324_s1 + $0xd0] sm:$0xff] }
  0x13   : > { %4677 = vmatpush3.msra.mxu0 %v449_v3  ;;  %4709 = vmatprep.mubr.msk.f32.mxu1 %vm536_vm1, %v3809_v23  ;;  %vm531_vm2 = vcmp.eq.s32.totalorder %v5759_v20, %v3808_v25  ;;  %v3800_v35 = vld [vmem:[%s7324_s1 + $0xc8] sm:$0xff]  ;;  %v3799_v36 = vld [vmem:[%s7324_s1 + $0xc0] sm:$0xff]  ;;  %v3798_v37 = vld [vmem:[%s7324_s1 + $0xb8] sm:$0xff] }
  0x14   : > { %4678 = vmatprep.subr.mxu0 %v448_v4  ;;  %v3810_v28 = vsel %vm531_vm2, 1.0, %v5624_v22  ;;  %v3797_v38 = vld [vmem:[%s7324_s1 + $0xb0] sm:$0xff]  ;;  %v3796_v39 = vld [vmem:[%s7324_s1 + $0xa8] sm:$0xff]  ;;  %v3795_v40 = vld [vmem:[%s7324_s1 + $0xa0] sm:$0xff] }
  0x15   : > { %4679 = vmatpush3.msra.mxu0 %v448_v4  ;;  %v3794_v41 = vld [vmem:[%s7324_s1 + $0x98] sm:$0xff]  ;;  %v3793_v42 = vld [vmem:[%s7324_s1 + $0x90] sm:$0xff]  ;;  %v3792_v43 = vld [vmem:[%s7324_s1 + $0x88] sm:$0xff] }
  0x16   : > { %4680 = vmatprep.subr.mxu0 %v447_v6  ;;  %v3791_v44 = vld [vmem:[%s7324_s1 + $0x80] sm:$0xff]  ;;  %v3860_v23 = vld [vmem:[%s7324_s1 + $0x2f8] sm:$0xff]  ;;  %v3859_v25 = vld [vmem:[%s7324_s1 + $0x2f0] sm:$0xff] }
  0x17   : > { %4681 = vmatpush3.msra.mxu0 %v447_v6  ;;  %v5828_v48 = vld [vmem:[%s7325_s2] sm:$0x1f] }
  0x18   : > { %4682 = vmatprep.subr.mxu0 %v446_v7  ;;  %v696_v51 = vrot.slane %v5828_v48, %v5823_v47 }
  0x19   : > { %4683 = vmatpush3.msra.mxu0 %v446_v7 }
  0x1a   : > { %4684 = vmatprep.subr.mxu0 %v445_v8 }
  0x1b   : > { %4685 = vmatpush3.msra.mxu0 %v445_v8 }
  0x1c   : > { %4686 = vmatprep.subr.mxu0 %v444_v9 }
  0x1d   : > { %4687 = vmatpush3.msra.mxu0 %v444_v9 }
  0x1e   : > { %4688 = vmatprep.subr.mxu0 %v443_v10 }
  0x1f   : > { %4689 = vmatpush3.msra.mxu0 %v443_v10 }
  0x20   : > { %4690 = vmatprep.subr.mxu0 %v442_v11 }
  0x21   : > { %4691 = vmatpush3.msra.mxu0 %v442_v11 }
  0x22   : > { %4692 = vmatprep.subr.mxu0 %v441_v12 }
  0x23   : > { %4693 = vmatpush3.msra.mxu0 %v441_v12 }
  0x24   : > { %4694 = vmatprep.subr.mxu0 %v440_v13 }
  0x25   : > { %4695 = vmatpush3.msra.mxu0 %v440_v13 }
  0x26   : > { %4696 = vmatprep.subr.mxu0 %v439_v14 }
  0x27   : > { %4697 = vmatpush3.msra.mxu0 %v439_v14 }
  0x28   : > { %4698 = vmatprep.subr.mxu0 %v438_v15 }
  0x29   : > { %4699 = vmatpush3.msra.mxu0 %v438_v15 }
  0x2a   : > { %4700 = vmatprep.subr.mxu0 %v437_v16 }
  0x2b   : > { %4701 = vmatpush3.msra.mxu0 %v437_v16 }
  0x2c   : > { %4703 = vmatmul.mubr.f32.vlgmr.msra.gmra.mxu0 %v5753_v17  ;;  %4747 = vmatprep.subr.mxu0 %v3860_v23 }
  0x2d   : > { %4779 = vmatprep.mubr.f32.mxu0 %v5716_v5  ;;  %4748 = vmatpush3.msra.mxu0 %v3860_v23  ;;  %v3820_v23 = vld [vmem:[%s7324_s1 + $0x238] sm:$0xff] }
  0x2e   : > { %4749 = vmatprep.subr.mxu0 %v3859_v25 }
  0x2f   : > { %4750 = vmatpush3.msra.mxu0 %v3859_v25  ;;  %v3922_v25 = vld [vmem:[%s7324_s1 + $0x538] sm:$0xff] }
  0xec   : > { %v4704_v26 = vpop.f32.mrf.mxu0 }
  0xed   : > { %4705 = vmatprep.subr.mxu1 %v4704_v26 }
  0xee   : > { %v519_v27 = vpop.f32.mrf.mxu0  ;;  %4706 = vmatpush3.msra.mxu1 %v4704_v26  ;;  %v3858_v26 = vld [vmem:[%s7324_s1 + $0x2e8] sm:$0xff] }
  0xef   : > { %4707 = vmatprep.subr.mxu1 %v519_v27  ;;  %4751 = vmatprep.subr.mxu0 %v3858_v26 }
  0xf0   : > { %4708 = vmatpush3.msra.mxu1 %v519_v27  ;;  %4752 = vmatpush3.msra.mxu0 %v3858_v26  ;;  %v3819_v26 = vld [vmem:[%s7324_s1 + $0x230] sm:$0xff] }
  0xf1   : > { %4710 = vmatmul.mubr.msk.f32.vlgmr.msra.gmra.mxu1 %vm536_vm1, %v3810_v28  ;;  %4712 = vmatprep.subr.mxu1 %v3806_v29  ;;  %v3857_v28 = vld [vmem:[%s7324_s1 + $0x2e0] sm:$0xff] }
  0xf2   : > { %4713 = vmatpush3.msra.mxu1 %v3806_v29  ;;  %4744 = vmatprep.mubr.f32.mxu1 %v5716_v5 }
  0xf3   : > { %4714 = vmatprep.subr.mxu1 %v3805_v30  ;;  %4753 = vmatprep.subr.mxu0 %v3857_v28 }
  0xf4   : > { %4715 = vmatpush3.msra.mxu1 %v3805_v30  ;;  %v3856_v30 = vld [vmem:[%s7324_s1 + $0x2d8] sm:$0xff]  ;;  %4754 = vmatpush3.msra.mxu0 %v3857_v28  ;;  %v3818_v28 = vld [vmem:[%s7324_s1 + $0x228] sm:$0xff] }
  0xf5   : > { %4716 = vmatprep.subr.mxu1 %v3804_v31  ;;  %4755 = vmatprep.subr.mxu0 %v3856_v30 }
  0xf6   : > { %4717 = vmatpush3.msra.mxu1 %v3804_v31  ;;  %4756 = vmatpush3.msra.mxu0 %v3856_v30  ;;  %v3817_v30 = vld [vmem:[%s7324_s1 + $0x220] sm:$0xff] }
  0xf7   : > { %4718 = vmatprep.subr.mxu1 %v3803_v32 }
  0xf8   : > { %4719 = vmatpush3.msra.mxu1 %v3803_v32  ;;  %v3855_v32 = vld [vmem:[%s7324_s1 + $0x2d0] sm:$0xff] }
  0xf9   : > { %4720 = vmatprep.subr.mxu1 %v3802_v33  ;;  %4757 = vmatprep.subr.mxu0 %v3855_v32 }
  0xfa   : > { %4721 = vmatpush3.msra.mxu1 %v3802_v33  ;;  %4758 = vmatpush3.msra.mxu0 %v3855_v32  ;;  %v3816_v32 = vld [vmem:[%s7324_s1 + $0x218] sm:$0xff] }
  0xfb   : > { %4722 = vmatprep.subr.mxu1 %v3801_v34 }
  0xfc   : > { %4723 = vmatpush3.msra.mxu1 %v3801_v34  ;;  %v3854_v34 = vld [vmem:[%s7324_s1 + $0x2c8] sm:$0xff] }
  0xfd   : > { %4724 = vmatprep.subr.mxu1 %v3800_v35  ;;  %4759 = vmatprep.subr.mxu0 %v3854_v34 }
  0xfe   : > { %4725 = vmatpush3.msra.mxu1 %v3800_v35  ;;  %v3853_v35 = vld [vmem:[%s7324_s1 + $0x2c0] sm:$0xff]  ;;  %4760 = vmatpush3.msra.mxu0 %v3854_v34  ;;  %v3815_v34 = vld [vmem:[%s7324_s1 + $0x210] sm:$0xff] }
  0xff   : > { %4726 = vmatprep.subr.mxu1 %v3799_v36  ;;  %4761 = vmatprep.subr.mxu0 %v3853_v35 }
 0x100   : > { %4727 = vmatpush3.msra.mxu1 %v3799_v36  ;;  %v3852_v36 = vld [vmem:[%s7324_s1 + $0x2b8] sm:$0xff]  ;;  %4762 = vmatpush3.msra.mxu0 %v3853_v35  ;;  %v3917_v35 = vld [vmem:[%s7324_s1 + $0x510] sm:$0xff] }
 0x101   : > { %4728 = vmatprep.subr.mxu1 %v3798_v37  ;;  %4763 = vmatprep.subr.mxu0 %v3852_v36 }
 0x102   : > { %4729 = vmatpush3.msra.mxu1 %v3798_v37  ;;  %v3851_v37 = vld [vmem:[%s7324_s1 + $0x2b0] sm:$0xff]  ;;  %4764 = vmatpush3.msra.mxu0 %v3852_v36  ;;  %v3814_v36 = vld [vmem:[%s7324_s1 + $0x208] sm:$0xff] }
 0x103   : > { %4730 = vmatprep.subr.mxu1 %v3797_v38  ;;  %4765 = vmatprep.subr.mxu0 %v3851_v37 }
 0x104   : > { %4731 = vmatpush3.msra.mxu1 %v3797_v38  ;;  %v3850_v38 = vld [vmem:[%s7324_s1 + $0x2a8] sm:$0xff]  ;;  %4766 = vmatpush3.msra.mxu0 %v3851_v37 }
 0x105   : > { %4732 = vmatprep.subr.mxu1 %v3796_v39  ;;  %4767 = vmatprep.subr.mxu0 %v3850_v38  ;;  %v3916_v37 = vld [vmem:[%s7324_s1 + $0x508] sm:$0xff] }
 0x106   : > { %4733 = vmatpush3.msra.mxu1 %v3796_v39  ;;  %v3849_v39 = vld [vmem:[%s7324_s1 + $0x2a0] sm:$0xff]  ;;  %4768 = vmatpush3.msra.mxu0 %v3850_v38 }
 0x107   : > { %4734 = vmatprep.subr.mxu1 %v3795_v40  ;;  %4769 = vmatprep.subr.mxu0 %v3849_v39  ;;  %v3813_v38 = vld [vmem:[%s7324_s1 + $0x200] sm:$0xff] }
 0x108   : > { %4735 = vmatpush3.msra.mxu1 %v3795_v40  ;;  %v3848_v40 = vld [vmem:[%s7324_s1 + $0x298] sm:$0xff]  ;;  %4770 = vmatpush3.msra.mxu0 %v3849_v39  ;;  %v3915_v39 = vld [vmem:[%s7324_s1 + $0x500] sm:$0xff] }
 0x109   : > { %4736 = vmatprep.subr.mxu1 %v3794_v41  ;;  %4771 = vmatprep.subr.mxu0 %v3848_v40 }
 0x10a   : > { %4737 = vmatpush3.msra.mxu1 %v3794_v41  ;;  %v3847_v41 = vld [vmem:[%s7324_s1 + $0x290] sm:$0xff]  ;;  %4772 = vmatpush3.msra.mxu0 %v3848_v40  ;;  %v3844_v40 = vld [vmem:[%s7324_s1 + $0x178] sm:$0xff] }
 0x10b   : > { %4738 = vmatprep.subr.mxu1 %v3793_v42  ;;  %4773 = vmatprep.subr.mxu0 %v3847_v41 }
 0x10c   : > { %4739 = vmatpush3.msra.mxu1 %v3793_v42  ;;  %v3846_v42 = vld [vmem:[%s7324_s1 + $0x288] sm:$0xff]  ;;  %4774 = vmatpush3.msra.mxu0 %v3847_v41  ;;  %v3946_v41 = vld [vmem:[%s7324_s1 + $0x3f8] sm:$0xff] }
 0x10d   : > { %4740 = vmatprep.subr.mxu1 %v3792_v43  ;;  %4775 = vmatprep.subr.mxu0 %v3846_v42 }
 0x10e   : > { %4741 = vmatpush3.msra.mxu1 %v3792_v43  ;;  %v3845_v43 = vld [vmem:[%s7324_s1 + $0x280] sm:$0xff]  ;;  %4776 = vmatpush3.msra.mxu0 %v3846_v42 }
 0x10f   : > { %4742 = vmatprep.subr.mxu1 %v3791_v44  ;;  %4777 = vmatprep.subr.mxu0 %v3845_v43 }
 0x110   : > { %4743 = vmatpush3.msra.mxu1 %v3791_v44  ;;  %v3876_v44 = vld [vmem:[%s7324_s1 + $0x1f8] sm:$0xff]  ;;  %4778 = vmatpush3.msra.mxu0 %v3845_v43 }
 0x111   : > { %4745 = vmatmul.mubr.f32.vlgmr.msra.gmra.mxu1 %v5753_v17  ;;  %4817 = vmatprep.subr.mxu0 %v3876_v44 }
 0x112   : > { %4780 = vmatmul.mubr.f32.vlgmr.msra.gmra.mxu0 %v5753_v17 }
 0x113   : > { %4818 = vmatpush3.msra.mxu0 %v3876_v44  ;;  %4849 = vmatprep.mubr.f32.mxu0 %v5716_v5  ;;  %v3870_v5 = vld [vmem:[%s7324_s1 + $0x1c8] sm:$0xff] }
 0x1b1   : > { %v4711_v45 = vpop.f32.mrf.mxu1 }
 0x1b3   : > { %v609_v46 = vpop.f32.mrf.mxu1 }
 0x1d1   : > { %v4746_v49 = vpop.f32.mrf.mxu1 }
 0x1d2   : > { %v690_v53 = vadd.f32 %v4746_v49, %v4711_v45  ;;  %v3875_v45 = vld [vmem:[%s7324_s1 + $0x1f0] sm:$0xff]  ;;  %v3873_v49 = vld [vmem:[%s7324_s1 + $0x1e0] sm:$0xff] }
 0x1d3   : > { %v684_v50 = vpop.f32.mrf.mxu1  ;;  %4819 = vmatprep.subr.mxu0 %v3875_v45 }
 0x1d4   : > { %v685_v52 = vadd.f32 %v684_v50, %v609_v46  ;;  %v698_v55 = vadd.f32 %v696_v51, %v690_v53  ;;  %v3874_v46 = vld [vmem:[%s7324_s1 + $0x1e8] sm:$0xff]  ;;  %4820 = vmatpush3.msra.mxu0 %v3875_v45  ;;  %v3872_v50 = vld [vmem:[%s7324_s1 + $0x1d8] sm:$0xff] }
 0x1d5   : > { %4821 = vmatprep.subr.mxu0 %v3874_v46  ;;  %v3868_v53 = vld [vmem:[%s7324_s1 + $0x1b8] sm:$0xff] }
 0x1d6   : > { %v697_v54 = vadd.f32 %v696_v51, %v685_v52  ;;  %4822 = vmatpush3.msra.mxu0 %v3874_v46  ;;  %v3871_v51 = vld [vmem:[%s7324_s1 + $0x1d0] sm:$0xff]  ;;  %v3869_v52 = vld [vmem:[%s7324_s1 + $0x1c0] sm:$0xff] }
 0x1d7   : > { %4823 = vmatprep.subr.mxu0 %v3873_v49 }
 0x1d8   : > { %699 = vrot.lane.b32.xlu0 %v697_v54, %s5625_s15  ;;  %4824 = vmatpush3.msra.mxu0 %v3873_v49 }
 0x1d9   : > { %4825 = vmatprep.subr.mxu0 %v3872_v50 }
 0x1da   : > { %4826 = vmatpush3.msra.mxu0 %v3872_v50 }
 0x1db   : > { %4827 = vmatprep.subr.mxu0 %v3871_v51 }
 0x1dc   : > { %701 = vrot.lane.b32.xlu0 %v698_v55, %s5625_s15  ;;  %4828 = vmatpush3.msra.mxu0 %v3871_v51 }
 0x1dd   : > { %4829 = vmatprep.subr.mxu0 %v3870_v5 }
 0x1de   : > { %4830 = vmatpush3.msra.mxu0 %v3870_v5  ;;  %v6076_v5 = vld [vmem:[%s7326_s3] sm:$0x1f] }
 0x1df   : > { %4831 = vmatprep.subr.mxu0 %v3869_v52 }
 0x1e0   : > { %4832 = vmatpush3.msra.mxu0 %v3869_v52  ;;  %v6081_v52 = vld [vmem:[%s7327_s4] sm:$0x1f] }
 0x1e1   : > { %4833 = vmatprep.subr.mxu0 %v3868_v53 }
 0x1e2   : > { %4834 = vmatpush3.msra.mxu0 %v3868_v53  ;;  %v764_v53 = vrot.slane %v6076_v5, %v5823_v47 }
 0x24a   : > { %v700_v56 = vpop.permute.xlu0 %699 }
 0x24b   : > { %v703_v57 = vadd.f32 %v700_v56, %v697_v54  ;;  %v3865_v56 = vld [vmem:[%s7324_s1 + $0x1a0] sm:$0xff] }
 0x24d   : > { %705 = vrot.lane.b32.xlu1 %v703_v57, %s5626_s16 }
 0x24e   : > { %v702_v58 = vpop.permute.xlu0 %701 }
 0x24f   : > { %v704_v59 = vadd.f32 %v702_v58, %v698_v55  ;;  %v3863_v58 = vld [vmem:[%s7324_s1 + $0x190] sm:$0xff] }
 0x251   : > { %707 = vrot.lane.b32.xlu1 %v704_v59, %s5626_s16 }
 0x2bf   : > { %v706_v60 = vpop.permute.xlu1 %705 }
 0x2c0   : > { %v709_v61 = vadd.f32 %v706_v60, %v703_v57  ;;  %v3864_v57 = vld [vmem:[%s7324_s1 + $0x198] sm:$0xff]  ;;  %v3861_v60 = vld [vmem:[%s7324_s1 + $0x180] sm:$0xff] }
 0x2c2   : > { %711 = vrot.lane.b32.xlu0 %v709_v61, %s5627_s17 }
 0x2c3   : > { %v708_v62 = vpop.permute.xlu1 %707 }
 0x2c4   : > { %v710_v63 = vadd.f32 %v708_v62, %v704_v59  ;;  %v3862_v59 = vld [vmem:[%s7324_s1 + $0x188] sm:$0xff]  ;;  %v3930_v62 = vld [vmem:[%s7324_s1 + $0x578] sm:$0xff] }
 0x2c6   : > { %713 = vrot.lane.b32.xlu1 %v710_v63, %s5627_s17 }
 0x334   : > { %v712_v0 = vpop.permute.xlu0 %711 }
 0x335   : > { %v715_v1 = vadd.f32 %v712_v0, %v709_v61  ;;  %v3828_v61 = vld [vmem:[%s7324_s1 + $0x278] sm:$0xff]  ;;  %v3929_v0 = vld [vmem:[%s7324_s1 + $0x570] sm:$0xff] }
 0x336   : > { %4782 = vmatprep.subr.mxu1 %v3828_v61 }
 0x337   : > { %717 = vrot.lane.b32.xlu0 %v715_v1, %s5628_s18  ;;  %4783 = vmatpush3.msra.mxu1 %v3828_v61 }
 0x338   : > { %v714_v2 = vpop.permute.xlu1 %713 }
 0x339   : > { %v716_v3 = vadd.f32 %v714_v2, %v710_v63  ;;  %v3827_v63 = vld [vmem:[%s7324_s1 + $0x270] sm:$0xff]  ;;  %v3825_v2 = vld [vmem:[%s7324_s1 + $0x260] sm:$0xff] }
 0x33a   : > { %4784 = vmatprep.subr.mxu1 %v3827_v63 }
 0x33b   : > { %719 = vrot.lane.b32.xlu1 %v716_v3, %s5628_s18  ;;  %4785 = vmatpush3.msra.mxu1 %v3827_v63 }
 0x3a9   : > { %v718_v4 = vpop.permute.xlu0 %717 }
 0x3aa   : > { %v721_v6 = vadd.f32 %v718_v4, %v715_v1  ;;  %v3826_v1 = vld [vmem:[%s7324_s1 + $0x268] sm:$0xff]  ;;  %v3824_v4 = vld [vmem:[%s7324_s1 + $0x258] sm:$0xff] }
 0x3ab   : > { %4786 = vmatprep.subr.mxu1 %v3826_v1 }
 0x3ac   : > { %v723_v7 = vmul.f32 0.0625, %v721_v6  ;;  %4787 = vmatpush3.msra.mxu1 %v3826_v1  ;;  %v3926_v6 = vld [vmem:[%s7324_s1 + $0x558] sm:$0xff] }
 0x3ad   : > { %v720_v8 = vpop.permute.xlu1 %719  ;;  %4788 = vmatprep.subr.mxu1 %v3825_v2 }
 0x3ae   : > { %v5840_v9 = vsub.f32 %v697_v54, %v723_v7  ;;  %v722_v10 = vadd.f32 %v720_v8, %v716_v3  ;;  %v3867_v54 = vld [vmem:[%s7324_s1 + $0x1b0] sm:$0xff]  ;;  %v3927_v3 = vld [vmem:[%s7324_s1 + $0x560] sm:$0xff]  ;;  %4789 = vmatpush3.msra.mxu1 %v3825_v2 }
 0x3af   : > { %4835 = vmatprep.subr.mxu0 %v3867_v54  ;;  %4790 = vmatprep.subr.mxu1 %v3824_v4  ;;  %v3823_v7 = vld [vmem:[%s7324_s1 + $0x250] sm:$0xff] }
 0x3b0   : > { %v724_v11 = vmul.f32 0.0625, %v722_v10  ;;  %v727_v12 = vmul.f32 %v5840_v9, %v5840_v9  ;;  %4836 = vmatpush3.msra.mxu0 %v3867_v54  ;;  %4791 = vmatpush3.msra.mxu1 %v3824_v4  ;;  %v3925_v8 = vld [vmem:[%s7324_s1 + $0x550] sm:$0xff]  ;;  %v3944_v4 = vld [vmem:[%s7324_s1 + $0x3e8] sm:$0xff] }
 0x3b1   : > { %4792 = vmatprep.subr.mxu1 %v3823_v7  ;;  %v3945_v2 = vld [vmem:[%s7324_s1 + $0x3f0] sm:$0xff] }
 0x3b2   : > { %v5844_v13 = vsub.f32 %v698_v55, %v724_v11  ;;  %729 = vrot.lane.b32.xlu0 %v727_v12, %s5625_s15  ;;  %v3866_v55 = vld [vmem:[%s7324_s1 + $0x1a8] sm:$0xff]  ;;  %4793 = vmatpush3.msra.mxu1 %v3823_v7  ;;  %v3943_v7 = vld [vmem:[%s7324_s1 + $0x3e0] sm:$0xff] }
 0x3b3   : > { %4837 = vmatprep.subr.mxu0 %v3866_v55 }
 0x3b4   : > { %v728_v14 = vmul.f32 %v5844_v13, %v5844_v13  ;;  %4838 = vmatpush3.msra.mxu0 %v3866_v55  ;;  %v6088_v55 = vld [vmem:[%s7328_s5] sm:$0x1f] }
 0x3b5   : > { %4839 = vmatprep.subr.mxu0 %v3865_v56 }
 0x3b6   : > { %731 = vrot.lane.b32.xlu1 %v728_v14, %s5625_s15  ;;  %4840 = vmatpush3.msra.mxu0 %v3865_v56  ;;  %v770_v56 = vrot.slane %v6081_v52, %v5823_v47 }
 0x3b7   : > { %4841 = vmatprep.subr.mxu0 %v3864_v57 }
 0x3b8   : > { %4842 = vmatpush3.msra.mxu0 %v3864_v57 }
 0x3b9   : > { %4843 = vmatprep.subr.mxu0 %v3863_v58 }
 0x3ba   : > { %4844 = vmatpush3.msra.mxu0 %v3863_v58  ;;  %v778_v58 = vrot.slane %v6088_v55, %v5823_v47 }
 0x3bb   : > { %4845 = vmatprep.subr.mxu0 %v3862_v59 }
 0x3bc   : > { %4846 = vmatpush3.msra.mxu0 %v3862_v59 }
 0x3bd   : > { %4847 = vmatprep.subr.mxu0 %v3861_v60 }
 0x3be   : > { %4848 = vmatpush3.msra.mxu0 %v3861_v60 }
 0x3bf   : > { %4894 = vmatprep.subr.mxu0 %v3930_v62  ;;  %4850 = vmatmul.mubr.f32.vlgmr.msra.gmra.mxu0 %v5753_v17  ;;  %v3928_v17 = vld [vmem:[%s7324_s1 + $0x568] sm:$0xff] }
 0x3c0   : > { %4895 = vmatpush3.msra.mxu0 %v3930_v62 }
 0x3c1   : > { %4896 = vmatprep.subr.mxu0 %v3929_v0 }
 0x3c2   : > { %4897 = vmatpush3.msra.mxu0 %v3929_v0 }
 0x3c3   : > { %4898 = vmatprep.subr.mxu0 %v3928_v17 }
 0x3c4   : > { %4899 = vmatpush3.msra.mxu0 %v3928_v17 }
 0x3c5   : > { %4900 = vmatprep.subr.mxu0 %v3927_v3 }
 0x3c6   : > { %4901 = vmatpush3.msra.mxu0 %v3927_v3  ;;  %v3842_v3 = vld [vmem:[%s7324_s1 + $0x168] sm:$0xff] }
 0x3c7   : > { %4902 = vmatprep.subr.mxu0 %v3926_v6 }
 0x3c8   : > { %4903 = vmatpush3.msra.mxu0 %v3926_v6  ;;  %v3841_v6 = vld [vmem:[%s7324_s1 + $0x160] sm:$0xff] }
 0x3c9   : > { %4904 = vmatprep.subr.mxu0 %v3925_v8 }
 0x3ca   : > { %4905 = vmatpush3.msra.mxu0 %v3925_v8  ;;  %v3840_v8 = vld [vmem:[%s7324_s1 + $0x158] sm:$0xff] }
 0x424   : > { %v730_v15 = vpop.permute.xlu0 %729 }
 0x425   : > { %v733_v16 = vadd.f32 %v730_v15, %v727_v12  ;;  %v3822_v12 = vld [vmem:[%s7324_s1 + $0x248] sm:$0xff]  ;;  %v3821_v15 = vld [vmem:[%s7324_s1 + $0x240] sm:$0xff] }
 0x426   : > { %4794 = vmatprep.subr.mxu1 %v3822_v12 }
 0x427   : > { %735 = vrot.lane.b32.xlu0 %v733_v16, %s5626_s16  ;;  %4795 = vmatpush3.msra.mxu1 %v3822_v12  ;;  %v3941_v12 = vld [vmem:[%s7324_s1 + $0x3d0] sm:$0xff] }
 0x428   : > { %v732_v18 = vpop.permute.xlu1 %731  ;;  %4796 = vmatprep.subr.mxu1 %v3821_v15 }
 0x429   : > { %v734_v21 = vadd.f32 %v732_v18, %v728_v14  ;;  %v3924_v14 = vld [vmem:[%s7324_s1 + $0x548] sm:$0xff]  ;;  %4797 = vmatpush3.msra.mxu1 %v3821_v15 }
 0x42a   : > { %4906 = vmatprep.subr.mxu0 %v3924_v14  ;;  %4798 = vmatprep.subr.mxu1 %v3820_v23  ;;  %v3940_v15 = vld [vmem:[%s7324_s1 + $0x3c8] sm:$0xff] }
 0x42b   : > { %737 = vrot.lane.b32.xlu1 %v734_v21, %s5626_s16  ;;  %4907 = vmatpush3.msra.mxu0 %v3924_v14  ;;  %v3838_v14 = vld [vmem:[%s7324_s1 + $0x148] sm:$0xff] }
 0x42c   : > { %4799 = vmatpush3.msra.mxu1 %v3820_v23  ;;  %v3938_v23 = vld [vmem:[%s7324_s1 + $0x3b8] sm:$0xff] }
 0x42d   : > { %4800 = vmatprep.subr.mxu1 %v3819_v26 }
 0x42e   : > { %4801 = vmatpush3.msra.mxu1 %v3819_v26  ;;  %v3937_v26 = vld [vmem:[%s7324_s1 + $0x3b0] sm:$0xff] }
 0x42f   : > { %4802 = vmatprep.subr.mxu1 %v3818_v28 }
 0x430   : > { %4803 = vmatpush3.msra.mxu1 %v3818_v28  ;;  %v3936_v28 = vld [vmem:[%s7324_s1 + $0x3a8] sm:$0xff] }
 0x431   : > { %4804 = vmatprep.subr.mxu1 %v3817_v30 }
 0x432   : > { %4805 = vmatpush3.msra.mxu1 %v3817_v30  ;;  %v3935_v30 = vld [vmem:[%s7324_s1 + $0x3a0] sm:$0xff] }
 0x433   : > { %4806 = vmatprep.subr.mxu1 %v3816_v32 }
 0x434   : > { %4807 = vmatpush3.msra.mxu1 %v3816_v32  ;;  %v3934_v32 = vld [vmem:[%s7324_s1 + $0x398] sm:$0xff] }
 0x435   : > { %4808 = vmatprep.subr.mxu1 %v3815_v34 }
 0x436   : > { %4809 = vmatpush3.msra.mxu1 %v3815_v34  ;;  %v3933_v34 = vld [vmem:[%s7324_s1 + $0x390] sm:$0xff] }
 0x437   : > { %4810 = vmatprep.subr.mxu1 %v3814_v36 }
 0x438   : > { %4811 = vmatpush3.msra.mxu1 %v3814_v36  ;;  %v3932_v36 = vld [vmem:[%s7324_s1 + $0x388] sm:$0xff] }
 0x439   : > { %4812 = vmatprep.subr.mxu1 %v3813_v38 }
 0x43a   : > { %4813 = vmatpush3.msra.mxu1 %v3813_v38  ;;  %v3931_v38 = vld [vmem:[%s7324_s1 + $0x380] sm:$0xff] }
 0x43b   : > { %4852 = vmatprep.subr.mxu1 %v3844_v40 }
 0x499   : > { %v736_v27 = vpop.permute.xlu0 %735 }
 0x49a   : > { %v5864_v29 = vadd.f32 %v736_v27, %v733_v16  ;;  %v3923_v16 = vld [vmem:[%s7324_s1 + $0x540] sm:$0xff]  ;;  %v3921_v27 = vld [vmem:[%s7324_s1 + $0x530] sm:$0xff] }
 0x49b   : > { %4908 = vmatprep.subr.mxu0 %v3923_v16 }
 0x49c   : > { %741 = vrot.lane.b32.xlu0 %v5864_v29, %s5627_s17  ;;  %4909 = vmatpush3.msra.mxu0 %v3923_v16  ;;  %v3837_v16 = vld [vmem:[%s7324_s1 + $0x140] sm:$0xff] }
 0x49d   : > { %v738_v31 = vpop.permute.xlu1 %737  ;;  %4910 = vmatprep.subr.mxu0 %v3922_v25 }
 0x49e   : > { %v5874_v33 = vadd.f32 %v738_v31, %v734_v21  ;;  %4911 = vmatpush3.msra.mxu0 %v3922_v25  ;;  %v3919_v31 = vld [vmem:[%s7324_s1 + $0x520] sm:$0xff]  ;;  %v3835_v25 = vld [vmem:[%s7324_s1 + $0x130] sm:$0xff] }
 0x49f   : > { %4912 = vmatprep.subr.mxu0 %v3921_v27 }
 0x4a0   : > { %743 = vrot.lane.b32.xlu1 %v5874_v33, %s5627_s17  ;;  %4913 = vmatpush3.msra.mxu0 %v3921_v27  ;;  %v3834_v27 = vld [vmem:[%s7324_s1 + $0x128] sm:$0xff] }
 0x50e   : > { %v742_v10 = vpop.permute.xlu0 %741 }
 0x50f   : > { %v5996_v11 = vadd.f32 %v742_v10, %v5864_v29  ;;  %v3920_v29 = vld [vmem:[%s7324_s1 + $0x528] sm:$0xff]  ;;  %v3942_v10 = vld [vmem:[%s7324_s1 + $0x3d8] sm:$0xff] }
 0x510   : > { %4914 = vmatprep.subr.mxu0 %v3920_v29 }
 0x511   : > { %747 = vrot.lane.b32.xlu0 %v5996_v11, %s5628_s18  ;;  %4915 = vmatpush3.msra.mxu0 %v3920_v29  ;;  %v3833_v29 = vld [vmem:[%s7324_s1 + $0x120] sm:$0xff] }
 0x512   : > { %v744_v18 = vpop.permute.xlu1 %743  ;;  %4916 = vmatprep.subr.mxu0 %v3919_v31 }
 0x513   : > { %v6013_v21 = vadd.f32 %v744_v18, %v5874_v33  ;;  %v3918_v33 = vld [vmem:[%s7324_s1 + $0x518] sm:$0xff]  ;;  %4917 = vmatpush3.msra.mxu0 %v3919_v31  ;;  %v3939_v18 = vld [vmem:[%s7324_s1 + $0x3c0] sm:$0xff] }
 0x514   : > { %4918 = vmatprep.subr.mxu0 %v3918_v33  ;;  %v3832_v31 = vld [vmem:[%s7324_s1 + $0x118] sm:$0xff] }
 0x515   : > { %749 = vrot.lane.b32.xlu1 %v6013_v21, %s5628_s18  ;;  %4919 = vmatpush3.msra.mxu0 %v3918_v33  ;;  %v3831_v33 = vld [vmem:[%s7324_s1 + $0x110] sm:$0xff] }
 0x516   : > { %4920 = vmatprep.subr.mxu0 %v3917_v35 }
 0x517   : > { %4921 = vmatpush3.msra.mxu0 %v3917_v35  ;;  %v3830_v35 = vld [vmem:[%s7324_s1 + $0x108] sm:$0xff] }
 0x518   : > { %4922 = vmatprep.subr.mxu0 %v3916_v37 }
 0x519   : > { %4923 = vmatpush3.msra.mxu0 %v3916_v37  ;;  %v3829_v37 = vld [vmem:[%s7324_s1 + $0x100] sm:$0xff] }
 0x51a   : > { %4924 = vmatprep.subr.mxu0 %v3915_v39 }
 0x51b   : > { %4925 = vmatpush3.msra.mxu0 %v3915_v39  ;;  %v3877_v39 = vadd.s32 4294967294, %v5757_v19 }
 0x51c   : > { %4964 = vmatprep.subr.mxu0 %v3946_v41 }
 0x51d   : > { %vm1159_vm5 = vcmp.eq.s32.totalorder %v5759_v20, %v3877_v39  ;;  %v3896_v39 = vld [vmem:[%s7324_s1 + $0x4e8] sm:$0xff] }
 0x583   : > { %v748_v42 = vpop.permute.xlu0 %747 }
 0x584   : > { %v751_v43 = vadd.f32 %v748_v42, %v5996_v11  ;;  %v3839_v11 = vld [vmem:[%s7324_s1 + $0x150] sm:$0xff] }
 0x586   : > { %v753_v44 = vmul.f32 0.0625, %v751_v43 }
 0x587   : > { %v750_v45 = vpop.permute.xlu1 %749 }
 0x588   : > { %v755_v46 = vadd.f32 1e-05, %v753_v44  ;;  %v752_v49 = vadd.f32 %v750_v45, %v6013_v21  ;;  %v3836_v21 = vld [vmem:[%s7324_s1 + $0x138] sm:$0xff]  ;;  %v3878_v44 = vadd.s32 4294967294, %v5766_v24 }
 0x58a   : > { %5586 = vrsqrt.f32 %v755_v46  ;;  %v754_v50 = vmul.f32 0.0625, %v752_v49  ;;  %vm1160_vm6 = vcmp.eq.s32.totalorder %v5759_v20, %v3878_v44  ;;  %v3959_v44 = vld [vmem:[%s7324_s1 + $0x5e0] sm:$0xff] }
 0x58c   : > { %v756_v51 = vadd.f32 1e-05, %v754_v50 }
 0x58e   : > { %5588 = vrsqrt.f32 %v756_v51 }
 0x597   : > { %v5587_v54 = vpop.eup %5586 }
 0x598   : > { %v759_v57 = vmul.f32 %v5587_v54, %v5840_v9 }
 0x59a   : > { %v765_v59 = vmul.f32 %v764_v53, %v759_v57  ;;  %v6210_v57 = vsub.s32 1, %v5757_v19 }
 0x59b   : > { %v5589_v60 = vpop.eup %5588 }
 0x59c   : > { %v771_v61 = vadd.f32 %v770_v56, %v765_v59  ;;  %v760_v62 = vmul.f32 %v5589_v60, %v5844_v13  ;;  %v3843_v13 = vld [vmem:[%s7324_s1 + $0x170] sm:$0xff]  ;;  %v1251_v59 = vrot.slane %v5828_v48, %v6210_v57 }
 0x59e   : > { %vm773_vm3 = vcmp.gt.f32.partialorder %v771_v61, 0.0  ;;  %v779_v63 = vmul.f32 %v778_v58, %v771_v61  ;;  %v766_v0 = vmul.f32 %v764_v53, %v760_v62 }
 0x5a0   : > { %v781_v1 = vsel %vm773_vm3, %v771_v61, %v779_v63  ;;  %v772_v9 = vadd.f32 %v770_v56, %v766_v0  ;;  %v3880_v56 = vsel %vm1160_vm6, 1.0, %v5624_v22 }
 0x5a1   : > { %783 = vst [vmem:[%s6100_s11] sm:$0xff] %v781_v1  ;;  %4814 = vmatprep.mubr.f32.mxu1 %v781_v1  ;;  %4926 = vmatprep.mubr.f32.mxu0 %v781_v1 }
 0x5a2   : > { %vm774_vm4 = vcmp.gt.f32.partialorder %v772_v9, 0.0  ;;  %v780_v47 = vmul.f32 %v778_v58, %v772_v9 }
 0x5a4   : > { %v6103_v17 = vsel %vm774_vm4, %v772_v9, %v780_v47 }
 0x5a5   : > { %784 = vst [vmem:[%s6100_s11 + $0x8] sm:$0xff] %v6103_v17  ;;  %4815 = vmatmul.mubr.f32.vlgmr.msra.gmra.mxu1 %v6103_v17  ;;  %4927 = vmatmul.mubr.f32.vlgmr.msra.gmra.mxu0 %v6103_v17 }
 0x5a6   : > { %4853 = vmatpush3.msra.mxu1 %v3844_v40  ;;  %4965 = vmatpush3.msra.mxu0 %v3946_v41  ;;  %v3879_v40 = vsel %vm1159_vm5, 1.0, %v5624_v22  ;;  %v4781_v41 = vpop.f32.mrf.mxu0 }
 0x5a7   : > { %4854 = vmatprep.subr.mxu1 %v3843_v13  ;;  %4884 = vmatprep.mubr.f32.mxu1 %v781_v1 }
 0x5a8   : > { %4966 = vmatprep.subr.mxu0 %v3945_v2  ;;  %4996 = vmatprep.mubr.f32.mxu0 %v781_v1  ;;  %v906_v42 = vpop.f32.mrf.mxu0 }
 0x5a9   : > { %4855 = vmatpush3.msra.mxu1 %v3843_v13  ;;  %4967 = vmatpush3.msra.mxu0 %v3945_v2 }
 0x5aa   : > { %4856 = vmatprep.subr.mxu1 %v3842_v3  ;;  %4968 = vmatprep.subr.mxu0 %v3944_v4  ;;  %v4851_v45 = vpop.f32.mrf.mxu0 }
 0x5ab   : > { %4857 = vmatpush3.msra.mxu1 %v3842_v3  ;;  %4969 = vmatpush3.msra.mxu0 %v3944_v4 }
 0x5ac   : > { %4858 = vmatprep.subr.mxu1 %v3841_v6  ;;  %4970 = vmatprep.subr.mxu0 %v3943_v7  ;;  %v1073_v51 = vpop.f32.mrf.mxu0 }
 0x5ad   : > { %4859 = vmatpush3.msra.mxu1 %v3841_v6  ;;  %4971 = vmatpush3.msra.mxu0 %v3943_v7 }
 0x5ae   : > { %4860 = vmatprep.subr.mxu1 %v3840_v8  ;;  %4972 = vmatprep.subr.mxu0 %v3942_v10 }
 0x5af   : > { %4861 = vmatpush3.msra.mxu1 %v3840_v8  ;;  %4973 = vmatpush3.msra.mxu0 %v3942_v10 }
 0x5b0   : > { %4862 = vmatprep.subr.mxu1 %v3839_v11  ;;  %4974 = vmatprep.subr.mxu0 %v3941_v12 }
 0x5b1   : > { %4863 = vmatpush3.msra.mxu1 %v3839_v11  ;;  %4975 = vmatpush3.msra.mxu0 %v3941_v12 }
 0x5b2   : > { %4864 = vmatprep.subr.mxu1 %v3838_v14  ;;  %4976 = vmatprep.subr.mxu0 %v3940_v15 }
 0x5b3   : > { %4865 = vmatpush3.msra.mxu1 %v3838_v14  ;;  %4977 = vmatpush3.msra.mxu0 %v3940_v15 }
 0x5b4   : > { %4866 = vmatprep.subr.mxu1 %v3837_v16  ;;  %4978 = vmatprep.subr.mxu0 %v3939_v18 }
 0x5b5   : > { %4867 = vmatpush3.msra.mxu1 %v3837_v16  ;;  %4979 = vmatpush3.msra.mxu0 %v3939_v18 }
 0x5b6   : > { %4868 = vmatprep.subr.mxu1 %v3836_v21  ;;  %4980 = vmatprep.subr.mxu0 %v3938_v23 }
 0x5b7   : > { %4869 = vmatpush3.msra.mxu1 %v3836_v21  ;;  %4981 = vmatpush3.msra.mxu0 %v3938_v23 }
 0x5b8   : > { %4870 = vmatprep.subr.mxu1 %v3835_v25  ;;  %4982 = vmatprep.subr.mxu0 %v3937_v26 }
 0x5b9   : > { %4871 = vmatpush3.msra.mxu1 %v3835_v25  ;;  %4983 = vmatpush3.msra.mxu0 %v3937_v26 }
 0x5ba   : > { %4872 = vmatprep.subr.mxu1 %v3834_v27  ;;  %4984 = vmatprep.subr.mxu0 %v3936_v28 }
 0x5bb   : > { %4873 = vmatpush3.msra.mxu1 %v3834_v27  ;;  %4985 = vmatpush3.msra.mxu0 %v3936_v28 }
 0x5bc   : > { %4874 = vmatprep.subr.mxu1 %v3833_v29  ;;  %4986 = vmatprep.subr.mxu0 %v3935_v30 }
 0x5bd   : > { %4875 = vmatpush3.msra.mxu1 %v3833_v29  ;;  %4987 = vmatpush3.msra.mxu0 %v3935_v30 }
 0x5be   : > { %4876 = vmatprep.subr.mxu1 %v3832_v31  ;;  %4988 = vmatprep.subr.mxu0 %v3934_v32 }
 0x5bf   : > { %4877 = vmatpush3.msra.mxu1 %v3832_v31  ;;  %4989 = vmatpush3.msra.mxu0 %v3934_v32 }
 0x5c0   : > { %4878 = vmatprep.subr.mxu1 %v3831_v33  ;;  %4990 = vmatprep.subr.mxu0 %v3933_v34 }
 0x5c1   : > { %4879 = vmatpush3.msra.mxu1 %v3831_v33  ;;  %4991 = vmatpush3.msra.mxu0 %v3933_v34 }
 0x5c2   : > { %4880 = vmatprep.subr.mxu1 %v3830_v35  ;;  %4992 = vmatprep.subr.mxu0 %v3932_v36 }
 0x5c3   : > { %4881 = vmatpush3.msra.mxu1 %v3830_v35  ;;  %4993 = vmatpush3.msra.mxu0 %v3932_v36  ;;  %v3898_v36 = vld [vmem:[%s7324_s1 + $0x4f8] sm:$0xff] }
 0x5c4   : > { %4882 = vmatprep.subr.mxu1 %v3829_v37  ;;  %4994 = vmatprep.subr.mxu0 %v3931_v38 }
 0x5c5   : > { %4883 = vmatpush3.msra.mxu1 %v3829_v37  ;;  %4995 = vmatpush3.msra.mxu0 %v3931_v38  ;;  %v3897_v37 = vld [vmem:[%s7324_s1 + $0x4f0] sm:$0xff]  ;;  %v3962_v38 = vld [vmem:[%s7324_s1 + $0x5f8] sm:$0xff] }
 0x5c6   : > { %4885 = vmatmul.mubr.f32.vlgmr.msra.gmra.mxu1 %v6103_v17  ;;  %4997 = vmatmul.mubr.f32.vlgmr.msra.gmra.mxu0 %v6103_v17 }
 0x5c7   : > { %4891 = vmatprep.mubr.msk.f32.mxu1 %vm536_vm1, %v3879_v40  ;;  %5034 = vmatprep.subr.mxu0 %v3962_v38  ;;  %v3961_v40 = vld [vmem:[%s7324_s1 + $0x5f0] sm:$0xff] }
 0x5c8   : > { %5035 = vmatpush3.msra.mxu0 %v3962_v38 }
 0x5c9   : > { %5036 = vmatprep.subr.mxu0 %v3961_v40 }
 0x5ca   : > { %5037 = vmatpush3.msra.mxu0 %v3961_v40 }
 0x665   : > { %v4816_v43 = vpop.f32.mrf.mxu1 }
 0x666   : > { %v987_v58 = vadd.f32 %v4816_v43, %v4781_v41  ;;  %v3895_v41 = vld [vmem:[%s7324_s1 + $0x4e0] sm:$0xff]  ;;  %v3894_v43 = vld [vmem:[%s7324_s1 + $0x4d8] sm:$0xff] }
 0x667   : > { %v981_v46 = vpop.f32.mrf.mxu1 }
 0x668   : > { %v982_v61 = vadd.f32 %v981_v46, %v906_v42  ;;  %v3960_v42 = vld [vmem:[%s7324_s1 + $0x5e8] sm:$0xff]  ;;  %v3958_v46 = vld [vmem:[%s7324_s1 + $0x5d8] sm:$0xff] }
 0x669   : > { %5038 = vmatprep.subr.mxu0 %v3960_v42 }
 0x66a   : > { %5039 = vmatpush3.msra.mxu0 %v3960_v42  ;;  %v3909_v42 = vld [vmem:[%s7324_s1 + $0x350] sm:$0xff] }
 0x66b   : > { %5040 = vmatprep.subr.mxu0 %v3959_v44 }
 0x66c   : > { %5041 = vmatpush3.msra.mxu0 %v3959_v44  ;;  %v3907_v44 = vld [vmem:[%s7324_s1 + $0x340] sm:$0xff] }
 0x66d   : > { %5042 = vmatprep.subr.mxu0 %v3958_v46 }
 0x66e   : > { %5043 = vmatpush3.msra.mxu0 %v3958_v46  ;;  %v3905_v46 = vld [vmem:[%s7324_s1 + $0x330] sm:$0xff] }
 0x686   : > { %v4886_v49 = vpop.f32.mrf.mxu1 }
 0x687   : > { %v1154_v50 = vadd.f32 %v4886_v49, %v4851_v45  ;;  %v3893_v45 = vld [vmem:[%s7324_s1 + $0x4d0] sm:$0xff] }
 0x688   : > { %v1148_v53 = vpop.f32.mrf.mxu1 }
 0x689   : > { %v1149_v54 = vadd.f32 %v1148_v53, %v1073_v51  ;;  %4887 = vmatprep.subr.mxu1 %v1154_v50  ;;  %v3957_v53 = vld [vmem:[%s7324_s1 + $0x5d0] sm:$0xff] }
 0x68a   : > { %4888 = vmatpush3.msra.mxu1 %v1154_v50  ;;  %v3892_v50 = vld [vmem:[%s7324_s1 + $0x4c8] sm:$0xff]  ;;  %5044 = vmatprep.subr.mxu0 %v3957_v53 }
 0x68b   : > { %4889 = vmatprep.subr.mxu1 %v1149_v54  ;;  %5045 = vmatpush3.msra.mxu0 %v3957_v53  ;;  %v3901_v53 = vld [vmem:[%s7324_s1 + $0x310] sm:$0xff] }
 0x68c   : > { %4890 = vmatpush3.msra.mxu1 %v1149_v54 }
 0x68d   : > { %4892 = vmatmul.mubr.msk.f32.vlgmr.msra.gmra.mxu1 %vm536_vm1, %v3880_v56  ;;  %4929 = vmatprep.subr.mxu1 %v3898_v36  ;;  %v3891_v56 = vld [vmem:[%s7324_s1 + $0x4c0] sm:$0xff] }
 0x68e   : > { %4930 = vmatpush3.msra.mxu1 %v3898_v36 }
 0x68f   : > { %4931 = vmatprep.subr.mxu1 %v3897_v37 }
 0x690   : > { %4932 = vmatpush3.msra.mxu1 %v3897_v37 }
 0x691   : > { %4933 = vmatprep.subr.mxu1 %v3896_v39 }
 0x692   : > { %4934 = vmatpush3.msra.mxu1 %v3896_v39 }
 0x693   : > { %4935 = vmatprep.subr.mxu1 %v3895_v41 }
 0x694   : > { %4936 = vmatpush3.msra.mxu1 %v3895_v41  ;;  %v3910_v41 = vld [vmem:[%s7324_s1 + $0x358] sm:$0xff] }
 0x695   : > { %4937 = vmatprep.subr.mxu1 %v3894_v43 }
 0x696   : > { %4938 = vmatpush3.msra.mxu1 %v3894_v43  ;;  %v3908_v43 = vld [vmem:[%s7324_s1 + $0x348] sm:$0xff] }
 0x697   : > { %4939 = vmatprep.subr.mxu1 %v3893_v45 }
 0x698   : > { %4940 = vmatpush3.msra.mxu1 %v3893_v45  ;;  %v3906_v45 = vld [vmem:[%s7324_s1 + $0x338] sm:$0xff] }
 0x699   : > { %4941 = vmatprep.subr.mxu1 %v3892_v50 }
 0x69a   : > { %4942 = vmatpush3.msra.mxu1 %v3892_v50  ;;  %v3903_v50 = vld [vmem:[%s7324_s1 + $0x320] sm:$0xff] }
 0x69b   : > { %4943 = vmatprep.subr.mxu1 %v3891_v56 }
 0x69c   : > { %4944 = vmatpush3.msra.mxu1 %v3891_v56  ;;  %v3899_v56 = vld [vmem:[%s7324_s1 + $0x300] sm:$0xff] }
 0x74d   : > { %v4893_v60 = vpop.f32.mrf.mxu1 }
 0x74e   : > { %v1247_v62 = vadd.f32 %v4893_v60, %v987_v58  ;;  %v3890_v60 = vld [vmem:[%s7324_s1 + $0x4b8] sm:$0xff] }
 0x74f   : > { %v1237_v63 = vpop.f32.mrf.mxu1  ;;  %4945 = vmatprep.subr.mxu1 %v3890_v60 }
 0x750   : > { %v1253_v0 = vadd.f32 %v1251_v59, %v1247_v62  ;;  %v1246_v1 = vadd.f32 %v1237_v63, %v982_v61  ;;  %v3955_v61 = vld [vmem:[%s7324_s1 + $0x5c0] sm:$0xff]  ;;  %v3889_v62 = vld [vmem:[%s7324_s1 + $0x4b0] sm:$0xff]  ;;  %4946 = vmatpush3.msra.mxu1 %v3890_v60  ;;  %v3954_v63 = vld [vmem:[%s7324_s1 + $0x5b8] sm:$0xff] }
 0x751   : > { %4947 = vmatprep.subr.mxu1 %v3889_v62  ;;  %v3976_v60 = vld [vmem:[%s7324_s1 + $0x468] sm:$0xff] }
 0x752   : > { %v1252_v9 = vadd.f32 %v1251_v59, %v1246_v1  ;;  %1256 = vrot.lane.b32.xlu1 %v1253_v0, %s5625_s15  ;;  %v3956_v59 = vld [vmem:[%s7324_s1 + $0x5c8] sm:$0xff]  ;;  %4948 = vmatpush3.msra.mxu1 %v3889_v62  ;;  %v3953_v1 = vld [vmem:[%s7324_s1 + $0x5b0] sm:$0xff]  ;;  %v3974_v62 = vld [vmem:[%s7324_s1 + $0x458] sm:$0xff] }
 0x753   : > { %5046 = vmatprep.subr.mxu0 %v3956_v59 }
 0x754   : > { %1254 = vrot.lane.b32.xlu0 %v1252_v9, %s5625_s15  ;;  %5047 = vmatpush3.msra.mxu0 %v3956_v59  ;;  %v3977_v59 = vld [vmem:[%s7324_s1 + $0x470] sm:$0xff] }
 0x755   : > { %5048 = vmatprep.subr.mxu0 %v3955_v61 }
 0x756   : > { %5049 = vmatpush3.msra.mxu0 %v3955_v61  ;;  %v3975_v61 = vld [vmem:[%s7324_s1 + $0x460] sm:$0xff] }
 0x757   : > { %5050 = vmatprep.subr.mxu0 %v3954_v63 }
 0x758   : > { %5051 = vmatpush3.msra.mxu0 %v3954_v63  ;;  %v3973_v63 = vld [vmem:[%s7324_s1 + $0x450] sm:$0xff] }
 0x759   : > { %5052 = vmatprep.subr.mxu0 %v3953_v1 }
 0x75a   : > { %5053 = vmatpush3.msra.mxu0 %v3953_v1  ;;  %v3971_v1 = vld [vmem:[%s7324_s1 + $0x440] sm:$0xff] }
 0x7c4   : > { %v1257_v47 = vpop.permute.xlu1 %1256 }
 0x7c5   : > { %v1259_v17 = vadd.f32 %v1257_v47, %v1253_v0  ;;  %v3952_v47 = vld [vmem:[%s7324_s1 + $0x5a8] sm:$0xff] }
 0x7c6   : > { %v1255_v13 = vpop.permute.xlu0 %1254  ;;  %5054 = vmatprep.subr.mxu0 %v3952_v47 }
 0x7c7   : > { %v1258_v2 = vadd.f32 %v1255_v13, %v1252_v9  ;;  %1262 = vrot.lane.b32.xlu1 %v1259_v17, %s5626_s16  ;;  %v3951_v13 = vld [vmem:[%s7324_s1 + $0x5a0] sm:$0xff]  ;;  %5055 = vmatpush3.msra.mxu0 %v3952_v47  ;;  %v3969_v47 = vld [vmem:[%s7324_s1 + $0x430] sm:$0xff] }
 0x7c8   : > { %5056 = vmatprep.subr.mxu0 %v3951_v13 }
 0x7c9   : > { %1260 = vrot.lane.b32.xlu0 %v1258_v2, %s5626_s16  ;;  %5057 = vmatpush3.msra.mxu0 %v3951_v13  ;;  %v3967_v13 = vld [vmem:[%s7324_s1 + $0x420] sm:$0xff] }
 0x839   : > { %v1263_v48 = vpop.permute.xlu1 %1262 }
 0x83a   : > { %v1265_v3 = vadd.f32 %v1263_v48, %v1259_v17  ;;  %v3886_v17 = vld [vmem:[%s7324_s1 + $0x498] sm:$0xff] }
 0x83b   : > { %v1261_v4 = vpop.permute.xlu0 %1260  ;;  %v3950_v48 = vld [vmem:[%s7324_s1 + $0x598] sm:$0xff] }
 0x83c   : > { %v1264_v6 = vadd.f32 %v1261_v4, %v1258_v2  ;;  %1268 = vrot.lane.b32.xlu1 %v1265_v3, %s5627_s17  ;;  %v3885_v2 = vld [vmem:[%s7324_s1 + $0x490] sm:$0xff]  ;;  %5058 = vmatprep.subr.mxu0 %v3950_v48 }
 0x83d   : > { %v3949_v4 = vld [vmem:[%s7324_s1 + $0x590] sm:$0xff]  ;;  %5059 = vmatpush3.msra.mxu0 %v3950_v48 }
 0x83e   : > { %1266 = vrot.lane.b32.xlu0 %v1264_v6, %s5627_s17  ;;  %5060 = vmatprep.subr.mxu0 %v3949_v4  ;;  %v3965_v48 = vld [vmem:[%s7324_s1 + $0x410] sm:$0xff] }
 0x83f   : > { %5061 = vmatpush3.msra.mxu0 %v3949_v4  ;;  %v3963_v4 = vld [vmem:[%s7324_s1 + $0x400] sm:$0xff] }
 0x8ae   : > { %v1269_v7 = vpop.permute.xlu1 %1268 }
 0x8af   : > { %v1271_v8 = vadd.f32 %v1269_v7, %v1265_v3  ;;  %v3884_v3 = vld [vmem:[%s7324_s1 + $0x488] sm:$0xff] }
 0x8b0   : > { %v1267_v10 = vpop.permute.xlu0 %1266  ;;  %v3948_v7 = vld [vmem:[%s7324_s1 + $0x588] sm:$0xff] }
 0x8b1   : > { %v1270_v11 = vadd.f32 %v1267_v10, %v1264_v6  ;;  %1274 = vrot.lane.b32.xlu1 %v1271_v8, %s5628_s18  ;;  %v3883_v6 = vld [vmem:[%s7324_s1 + $0x480] sm:$0xff]  ;;  %5062 = vmatprep.subr.mxu0 %v3948_v7 }
 0x8b2   : > { %5063 = vmatpush3.msra.mxu0 %v3948_v7  ;;  %v3947_v10 = vld [vmem:[%s7324_s1 + $0x580] sm:$0xff] }
 0x8b3   : > { %1272 = vrot.lane.b32.xlu0 %v1270_v11, %s5628_s18  ;;  %5064 = vmatprep.subr.mxu0 %v3947_v10 }
 0x8b4   : > { %5065 = vmatpush3.msra.mxu0 %v3947_v10  ;;  %v6480_v10 = vpop.f32.mrf.mxu0 }
 0x923   : > { %v1275_v12 = vpop.permute.xlu1 %1274 }
 0x924   : > { %v1277_v14 = vadd.f32 %v1275_v12, %v1271_v8  ;;  %v3914_v8 = vld [vmem:[%s7324_s1 + $0x378] sm:$0xff]  ;;  %v6348_v12 = vld [vmem:[%s5710_s26 + $0x8] sm:$0xff] }
 0x925   : > { %v1273_v15 = vpop.permute.xlu0 %1272 }
 0x926   : > { %v1279_v16 = vmul.f32 0.0625, %v1277_v14  ;;  %v1276_v18 = vadd.f32 %v1273_v15, %v1270_v11  ;;  %v6344_v11 = vld [vmem:[%s5710_s26] sm:$0xff] }
 0x927   : > { %5066 = vmatprep.mubr.f32.mxu0 %v6344_v11 }
 0x928   : > { %v6222_v21 = vsub.f32 %v1253_v0, %v1279_v16  ;;  %v1278_v23 = vmul.f32 0.0625, %v1276_v18  ;;  %v3888_v0 = vld [vmem:[%s7324_s1 + $0x4a8] sm:$0xff]  ;;  %5067 = vmatmul.mubr.f32.vlgmr.msra.gmra.mxu0 %v6348_v12 }
 0x929   : > { %4949 = vmatprep.subr.mxu1 %v3888_v0 }
 0x92a   : > { %v6224_v25 = vsub.f32 %v1252_v9, %v1278_v23  ;;  %v1283_v26 = vmul.f32 %v6222_v21, %v6222_v21  ;;  %v3887_v9 = vld [vmem:[%s7324_s1 + $0x4a0] sm:$0xff]  ;;  %4950 = vmatpush3.msra.mxu1 %v3888_v0  ;;  %v3972_v0 = vld [vmem:[%s7324_s1 + $0x448] sm:$0xff] }
 0x92b   : > { %4951 = vmatprep.subr.mxu1 %v3887_v9 }
 0x92c   : > { %1286 = vrot.lane.b32.xlu1 %v1283_v26, %s5625_s15  ;;  %v1282_v27 = vmul.f32 %v6224_v25, %v6224_v25  ;;  %4952 = vmatpush3.msra.mxu1 %v3887_v9  ;;  %v3970_v9 = vld [vmem:[%s7324_s1 + $0x438] sm:$0xff] }
 0x92d   : > { %4953 = vmatprep.subr.mxu1 %v3886_v17 }
 0x92e   : > { %1284 = vrot.lane.b32.xlu0 %v1282_v27, %s5625_s15  ;;  %4954 = vmatpush3.msra.mxu1 %v3886_v17  ;;  %v3968_v17 = vld [vmem:[%s7324_s1 + $0x428] sm:$0xff] }
 0x92f   : > { %4955 = vmatprep.subr.mxu1 %v3885_v2 }
 0x930   : > { %4956 = vmatpush3.msra.mxu1 %v3885_v2  ;;  %v3966_v2 = vld [vmem:[%s7324_s1 + $0x418] sm:$0xff] }
 0x931   : > { %4957 = vmatprep.subr.mxu1 %v3884_v3 }
 0x932   : > { %4958 = vmatpush3.msra.mxu1 %v3884_v3  ;;  %v3964_v3 = vld [vmem:[%s7324_s1 + $0x408] sm:$0xff] }
 0x933   : > { %4959 = vmatprep.subr.mxu1 %v3883_v6 }
 0x934   : > { %4960 = vmatpush3.msra.mxu1 %v3883_v6  ;;  %v3979_v6 = vadd.s32 4294967292, %v5757_v19 }
 0x935   : > { %4999 = vmatprep.subr.mxu1 %v3914_v8 }
 0x936   : > { %vm1904_vm9 = vcmp.eq.s32.totalorder %v5759_v20, %v3979_v6  ;;  %v4056_v6 = vld [vmem:[%s7324_s1 + $0x938] sm:$0xff] }
 0x937   : > { %v3981_v7 = vsel %vm1904_vm9, 1.0, %v5624_v22 }
 0x99e   : > { %v1287_v28 = vpop.permute.xlu1 %1286 }
 0x99f   : > { %v1289_v29 = vadd.f32 %v1287_v28, %v1283_v26 }
 0x9a0   : > { %v1285_v30 = vpop.permute.xlu0 %1284 }
 0x9a1   : > { %v1288_v31 = vadd.f32 %v1285_v30, %v1282_v27  ;;  %1292 = vrot.lane.b32.xlu1 %v1289_v29, %s5626_s16 }
 0x9a3   : > { %1290 = vrot.lane.b32.xlu0 %v1288_v31, %s5626_s16 }
 0xa13   : > { %v1293_v32 = vpop.permute.xlu1 %1292 }
 0xa14   : > { %v1295_v33 = vadd.f32 %v1293_v32, %v1289_v29  ;;  %v1319_v29 = vrot.slane %v6076_v5, %v6210_v57 }
 0xa15   : > { %v1291_v34 = vpop.permute.xlu0 %1290 }
 0xa16   : > { %v1294_v35 = vadd.f32 %v1291_v34, %v1288_v31  ;;  %1298 = vrot.lane.b32.xlu1 %v1295_v33, %s5627_s17  ;;  %v1325_v31 = vrot.slane %v6081_v52, %v6210_v57  ;;  %v1333_v34 = vrot.slane %v6088_v55, %v6210_v57  ;;  %v3913_v57 = vld [vmem:[%s7324_s1 + $0x370] sm:$0xff] }
 0xa18   : > { %1296 = vrot.lane.b32.xlu0 %v1294_v35, %s5627_s17 }
 0xa88   : > { %v1299_v49 = vpop.permute.xlu1 %1298 }
 0xa89   : > { %v6272_v51 = vadd.f32 %v1299_v49, %v1295_v33  ;;  %v3904_v49 = vld [vmem:[%s7324_s1 + $0x328] sm:$0xff] }
 0xa8a   : > { %v1297_v54 = vpop.permute.xlu0 %1296 }
 0xa8b   : > { %v6280_v58 = vadd.f32 %v1297_v54, %v1294_v35  ;;  %1304 = vrot.lane.b32.xlu1 %v6272_v51, %s5628_s18  ;;  %v3900_v54 = vld [vmem:[%s7324_s1 + $0x308] sm:$0xff] }
 0xa8d   : > { %1302 = vrot.lane.b32.xlu0 %v6280_v58, %s5628_s18 }
 0xafd   : > { %v1305_v14 = vpop.permute.xlu1 %1304 }
 0xafe   : > { %v1307_v15 = vadd.f32 %v1305_v14, %v6272_v51  ;;  %v3902_v51 = vld [vmem:[%s7324_s1 + $0x318] sm:$0xff] }
 0xaff   : > { %v1303_v16 = vpop.permute.xlu0 %1302 }
 0xb00   : > { %v1309_v18 = vmul.f32 0.0625, %v1307_v15  ;;  %v1306_v23 = vadd.f32 %v1303_v16, %v6280_v58  ;;  %v3978_v58 = vld [vmem:[%s7324_s1 + $0x478] sm:$0xff]  ;;  %v6484_v15 = vpop.f32.mrf.mxu0 }
 0xb02   : > { %v1311_v26 = vadd.f32 1e-05, %v1309_v18  ;;  %v1308_v27 = vmul.f32 0.0625, %v1306_v23  ;;  %v4998_v18 = vpop.f32.mrf.mxu0  ;;  %v3980_v23 = vadd.s32 4294967292, %v5766_v24  ;;  %v4031_v24 = vld [vmem:[%s7324_s1 + $0x8f0] sm:$0xff] }
 0xb04   : > { %5590 = vrsqrt.f32 %v1311_v26  ;;  %v1310_v28 = vadd.f32 1e-05, %v1308_v27  ;;  %vm1905_vm10 = vcmp.eq.s32.totalorder %v5759_v20, %v3980_v23  ;;  %v4052_v23 = vld [vmem:[%s7324_s1 + $0x918] sm:$0xff] }
 0xb06   : > { %5592 = vrsqrt.f32 %v1310_v28  ;;  %v1628_v28 = vpop.f32.mrf.mxu0 }
 0xb11   : > { %v5591_v30 = vpop.eup %5590 }
 0xb12   : > { %v1315_v32 = vmul.f32 %v5591_v30, %v6222_v21  ;;  %v3912_v21 = vld [vmem:[%s7324_s1 + $0x368] sm:$0xff] }
 0xb13   : > { %v5593_v33 = vpop.eup %5592 }
 0xb14   : > { %v1321_v35 = vmul.f32 %v1319_v29, %v1315_v32  ;;  %v1314_v36 = vmul.f32 %v5593_v33, %v6224_v25  ;;  %v3911_v25 = vld [vmem:[%s7324_s1 + $0x360] sm:$0xff] }
 0xb16   : > { %v1327_v37 = vadd.f32 %v1325_v31, %v1321_v35  ;;  %v1320_v38 = vmul.f32 %v1319_v29, %v1314_v36  ;;  %v4032_v35 = vld [vmem:[%s7324_s1 + $0x8f8] sm:$0xff]  ;;  %v4030_v36 = vld [vmem:[%s7324_s1 + $0x8e8] sm:$0xff] }
 0xb18   : > { %vm1329_vm7 = vcmp.gt.f32.partialorder %v1327_v37, 0.0  ;;  %v1335_v39 = vmul.f32 %v1333_v34, %v1327_v37  ;;  %v1326_v40 = vadd.f32 %v1325_v31, %v1320_v38  ;;  %v4028_v38 = vld [vmem:[%s7324_s1 + $0x8d8] sm:$0xff] }
 0xb1a   : > { %v6367_v5 = vsel %vm1329_vm7, %v1327_v37, %v1335_v39  ;;  %vm1328_vm8 = vcmp.gt.f32.partialorder %v1326_v40, 0.0  ;;  %v1334_v52 = vmul.f32 %v1333_v34, %v1326_v40  ;;  %v3982_v34 = vsel %vm1905_vm10, 1.0, %v5624_v22  ;;  %v4029_v37 = vld [vmem:[%s7324_s1 + $0x8e0] sm:$0xff]  ;;  %v4027_v39 = vld [vmem:[%s7324_s1 + $0x8d0] sm:$0xff] }
 0xb1b   : > { %1339 = vst [vmem:[%s6365_s27 + $0x8] sm:$0xff] %v6367_v5 }
 0xb1c   : > { %v6371_v55 = vsel %vm1328_vm8, %v1326_v40, %v1334_v52  ;;  %v4026_v40 = vld [vmem:[%s7324_s1 + $0x8c8] sm:$0xff]  ;;  %v4025_v52 = vld [vmem:[%s7324_s1 + $0x8c0] sm:$0xff] }
 0xb1d   : > { %1338 = vst [vmem:[%s6365_s27] sm:$0xff] %v6371_v55  ;;  %4961 = vmatprep.mubr.f32.mxu1 %v6371_v55 }
 0xb1e   : > { %4962 = vmatmul.mubr.f32.vlgmr.msra.gmra.mxu1 %v6367_v5 }
 0xb1f   : > { %5000 = vmatpush3.msra.mxu1 %v3914_v8  ;;  %5031 = vmatprep.mubr.f32.mxu1 %v6371_v55 }
 0xb20   : > { %5001 = vmatprep.subr.mxu1 %v3913_v57 }
 0xb21   : > { %5002 = vmatpush3.msra.mxu1 %v3913_v57  ;;  %v4024_v57 = vld [vmem:[%s7324_s1 + $0x8b8] sm:$0xff] }
 0xb22   : > { %5003 = vmatprep.subr.mxu1 %v3912_v21 }
 0xb23   : > { %5004 = vmatpush3.msra.mxu1 %v3912_v21  ;;  %v4023_v21 = vld [vmem:[%s7324_s1 + $0x8b0] sm:$0xff] }
 0xb24   : > { %5005 = vmatprep.subr.mxu1 %v3911_v25 }
 0xb25   : > { %5006 = vmatpush3.msra.mxu1 %v3911_v25  ;;  %v4022_v25 = vld [vmem:[%s7324_s1 + $0x8a8] sm:$0xff] }
 0xb26   : > { %5007 = vmatprep.subr.mxu1 %v3910_v41 }
 0xb27   : > { %5008 = vmatpush3.msra.mxu1 %v3910_v41  ;;  %v4021_v41 = vld [vmem:[%s7324_s1 + $0x8a0] sm:$0xff] }
 0xb28   : > { %5009 = vmatprep.subr.mxu1 %v3909_v42 }
 0xb29   : > { %5010 = vmatpush3.msra.mxu1 %v3909_v42  ;;  %v4020_v42 = vld [vmem:[%s7324_s1 + $0x898] sm:$0xff] }
 0xb2a   : > { %5011 = vmatprep.subr.mxu1 %v3908_v43 }
 0xb2b   : > { %5012 = vmatpush3.msra.mxu1 %v3908_v43  ;;  %v4019_v43 = vld [vmem:[%s7324_s1 + $0x890] sm:$0xff] }
 0xb2c   : > { %5013 = vmatprep.subr.mxu1 %v3907_v44 }
 0xb2d   : > { %5014 = vmatpush3.msra.mxu1 %v3907_v44  ;;  %v4018_v44 = vld [vmem:[%s7324_s1 + $0x888] sm:$0xff] }
 0xb2e   : > { %5015 = vmatprep.subr.mxu1 %v3906_v45 }
 0xb2f   : > { %5016 = vmatpush3.msra.mxu1 %v3906_v45  ;;  %v4017_v45 = vld [vmem:[%s7324_s1 + $0x880] sm:$0xff] }
 0xb30   : > { %5017 = vmatprep.subr.mxu1 %v3905_v46 }
 0xb31   : > { %5018 = vmatpush3.msra.mxu1 %v3905_v46  ;;  %v4048_v46 = vld [vmem:[%s7324_s1 + $0x6f8] sm:$0xff] }
 0xb32   : > { %5019 = vmatprep.subr.mxu1 %v3904_v49 }
 0xb33   : > { %5020 = vmatpush3.msra.mxu1 %v3904_v49  ;;  %v4047_v49 = vld [vmem:[%s7324_s1 + $0x6f0] sm:$0xff] }
 0xb34   : > { %5021 = vmatprep.subr.mxu1 %v3903_v50 }
 0xb35   : > { %5022 = vmatpush3.msra.mxu1 %v3903_v50  ;;  %v4046_v50 = vld [vmem:[%s7324_s1 + $0x6e8] sm:$0xff] }
 0xb36   : > { %5023 = vmatprep.subr.mxu1 %v3902_v51 }
 0xb37   : > { %5024 = vmatpush3.msra.mxu1 %v3902_v51  ;;  %v4045_v51 = vld [vmem:[%s7324_s1 + $0x6e0] sm:$0xff] }
 0xb38   : > { %5025 = vmatprep.subr.mxu1 %v3901_v53 }
 0xb39   : > { %5026 = vmatpush3.msra.mxu1 %v3901_v53  ;;  %v4044_v53 = vld [vmem:[%s7324_s1 + $0x6d8] sm:$0xff] }
 0xb3a   : > { %5027 = vmatprep.subr.mxu1 %v3900_v54 }
 0xb3b   : > { %5028 = vmatpush3.msra.mxu1 %v3900_v54  ;;  %v4042_v54 = vld [vmem:[%s7324_s1 + $0x6c8] sm:$0xff] }
 0xb3c   : > { %5029 = vmatprep.subr.mxu1 %v3899_v56 }
 0xb3d   : > { %5030 = vmatpush3.msra.mxu1 %v3899_v56  ;;  %v4041_v56 = vld [vmem:[%s7324_s1 + $0x6c0] sm:$0xff] }
 0xb3e   : > { %5032 = vmatmul.mubr.f32.vlgmr.msra.gmra.mxu1 %v6367_v5  ;;  %5069 = vmatprep.subr.mxu1 %v3978_v58 }
 0xb3f   : > { %5070 = vmatpush3.msra.mxu1 %v3978_v58  ;;  %5101 = vmatprep.mubr.f32.mxu1 %v6344_v11  ;;  %v4040_v58 = vld [vmem:[%s7324_s1 + $0x6b8] sm:$0xff] }
 0xb40   : > { %5071 = vmatprep.subr.mxu1 %v3977_v59 }
 0xb41   : > { %5072 = vmatpush3.msra.mxu1 %v3977_v59  ;;  %v4039_v59 = vld [vmem:[%s7324_s1 + $0x6b0] sm:$0xff] }
 0xb42   : > { %5073 = vmatprep.subr.mxu1 %v3976_v60 }
 0xb43   : > { %5074 = vmatpush3.msra.mxu1 %v3976_v60  ;;  %v4038_v60 = vld [vmem:[%s7324_s1 + $0x6a8] sm:$0xff] }
 0xb44   : > { %5075 = vmatprep.subr.mxu1 %v3975_v61 }
 0xb45   : > { %5076 = vmatpush3.msra.mxu1 %v3975_v61  ;;  %v4037_v61 = vld [vmem:[%s7324_s1 + $0x6a0] sm:$0xff] }
 0xb46   : > { %5077 = vmatprep.subr.mxu1 %v3974_v62 }
 0xb47   : > { %5078 = vmatpush3.msra.mxu1 %v3974_v62  ;;  %v4036_v62 = vld [vmem:[%s7324_s1 + $0x698] sm:$0xff] }
 0xb48   : > { %5079 = vmatprep.subr.mxu1 %v3973_v63 }
 0xb49   : > { %5080 = vmatpush3.msra.mxu1 %v3973_v63  ;;  %v4035_v63 = vld [vmem:[%s7324_s1 + $0x690] sm:$0xff] }
 0xb4a   : > { %5081 = vmatprep.subr.mxu1 %v3972_v0 }
 0xb4b   : > { %5082 = vmatpush3.msra.mxu1 %v3972_v0  ;;  %v4034_v0 = vld [vmem:[%s7324_s1 + $0x688] sm:$0xff] }
 0xb4c   : > { %5083 = vmatprep.subr.mxu1 %v3971_v1 }
 0xb4d   : > { %5084 = vmatpush3.msra.mxu1 %v3971_v1  ;;  %v4033_v1 = vld [vmem:[%s7324_s1 + $0x680] sm:$0xff] }
 0xb4e   : > { %5085 = vmatprep.subr.mxu1 %v3970_v9 }
 0xb4f   : > { %5086 = vmatpush3.msra.mxu1 %v3970_v9  ;;  %v4064_v9 = vld [vmem:[%s7324_s1 + $0x978] sm:$0xff] }
 0xb50   : > { %5087 = vmatprep.subr.mxu1 %v3969_v47 }
 0xb51   : > { %5088 = vmatpush3.msra.mxu1 %v3969_v47  ;;  %v4063_v47 = vld [vmem:[%s7324_s1 + $0x970] sm:$0xff] }
 0xb52   : > { %5089 = vmatprep.subr.mxu1 %v3968_v17 }
 0xb53   : > { %5090 = vmatpush3.msra.mxu1 %v3968_v17  ;;  %v6597_v17 = vld [vmem:[%s6100_s11] sm:$0xff] }
 0xb54   : > { %5091 = vmatprep.subr.mxu1 %v3967_v13 }
 0xb55   : > { %5092 = vmatpush3.msra.mxu1 %v3967_v13  ;;  %v4062_v13 = vld [vmem:[%s7324_s1 + $0x968] sm:$0xff] }
 0xb56   : > { %5093 = vmatprep.subr.mxu1 %v3966_v2 }
 0xb57   : > { %5094 = vmatpush3.msra.mxu1 %v3966_v2  ;;  %v4061_v2 = vld [vmem:[%s7324_s1 + $0x960] sm:$0xff] }
 0xb58   : > { %5095 = vmatprep.subr.mxu1 %v3965_v48 }
 0xb59   : > { %5096 = vmatpush3.msra.mxu1 %v3965_v48  ;;  %v4059_v48 = vld [vmem:[%s7324_s1 + $0x950] sm:$0xff] }
 0xb5a   : > { %5097 = vmatprep.subr.mxu1 %v3964_v3 }
 0xb5b   : > { %5098 = vmatpush3.msra.mxu1 %v3964_v3  ;;  %v4058_v3 = vld [vmem:[%s7324_s1 + $0x948] sm:$0xff] }
 0xb5c   : > { %5099 = vmatprep.subr.mxu1 %v3963_v4 }
 0xb5d   : > { %5100 = vmatpush3.msra.mxu1 %v3963_v4  ;;  %v4057_v4 = vld [vmem:[%s7324_s1 + $0x940] sm:$0xff] }
 0xb5e   : > { %5102 = vmatmul.mubr.f32.vlgmr.msra.gmra.mxu1 %v6348_v12 }
 0xb5f   : > { %5108 = vmatprep.mubr.msk.f32.mxu1 %vm536_vm1, %v3981_v7  ;;  %v4055_v7 = vld [vmem:[%s7324_s1 + $0x930] sm:$0xff] }
 0xbde   : > { %v6478_v8 = vpop.f32.mrf.mxu1 }
 0xbe0   : > { %v6482_v14 = vpop.f32.mrf.mxu1 }
 0xbfe   : > { %v5033_v16 = vpop.f32.mrf.mxu1 }
 0xbff   : > { %v1709_v27 = vadd.f32 %v5033_v16, %v4998_v18  ;;  %v4054_v16 = vld [vmem:[%s7324_s1 + $0x928] sm:$0xff]  ;;  %v4053_v18 = vld [vmem:[%s7324_s1 + $0x920] sm:$0xff] }
 0xc00   : > { %v1703_v26 = vpop.f32.mrf.mxu1 }
 0xc01   : > { %v1704_v30 = vadd.f32 %v1703_v26, %v1628_v28  ;;  %v4051_v26 = vld [vmem:[%s7324_s1 + $0x910] sm:$0xff]  ;;  %v4049_v28 = vld [vmem:[%s7324_s1 + $0x900] sm:$0xff] }
 0xc1e   : > { %v5103_v29 = vpop.f32.mrf.mxu1 }
 0xc1f   : > { %v1901_v31 = vadd.f32 %v5103_v29, %v1709_v27  ;;  %v4050_v27 = vld [vmem:[%s7324_s1 + $0x908] sm:$0xff] }
 0xc20   : > { %v1891_v32 = vpop.f32.mrf.mxu1  ;;  %v6643_v29 = vld [vmem:[%s6100_s11 + $0x8] sm:$0xff] }
 0xc21   : > { %v1900_v33 = vadd.f32 %v1891_v32, %v1704_v30  ;;  %5104 = vmatprep.subr.mxu1 %v1901_v31  ;;  %v5068_v30 = vpop.f32.mrf.mxu0  ;;  %v6650_v32 = vsub.s32 2, %v5757_v19 }
 0xc22   : > { %5105 = vmatpush3.msra.mxu1 %v1901_v31  ;;  %v1542_v31 = vadd.f32 %v6478_v8, %v6480_v10 }
 0xc23   : > { %5106 = vmatprep.subr.mxu1 %v1900_v33 }
 0xc24   : > { %5107 = vmatpush3.msra.mxu1 %v1900_v33  ;;  %v1537_v33 = vadd.f32 %v6482_v14, %v6484_v15 }
 0xc25   : > { %5109 = vmatmul.mubr.msk.f32.vlgmr.msra.gmra.mxu1 %vm536_vm1, %v3982_v34  ;;  %5111 = vmatprep.subr.mxu1 %v4032_v35  ;;  %v1797_v34 = vpop.f32.mrf.mxu0 }
 0xc26   : > { %5112 = vmatpush3.msra.mxu1 %v4032_v35  ;;  %5143 = vmatprep.mubr.f32.mxu1 %v6371_v55  ;;  %v1807_v35 = vadd.f32 %v5068_v30, %v1542_v31  ;;  %v4092_v30 = vld [vmem:[%s7324_s1 + $0x9d8] sm:$0xff] }
 0xc27   : > { %5113 = vmatprep.subr.mxu1 %v4031_v24 }
 0xc28   : > { %5114 = vmatpush3.msra.mxu1 %v4031_v24  ;;  %v6657_v24 = vld [vmem:[%s7325_s2] sm:$0x1f] }
 0xc29   : > { %5115 = vmatprep.subr.mxu1 %v4030_v36 }
 0xc2a   : > { %5116 = vmatpush3.msra.mxu1 %v4030_v36 }
 0xc2b   : > { %5117 = vmatprep.subr.mxu1 %v4029_v37 }
 0xc2c   : > { %5118 = vmatpush3.msra.mxu1 %v4029_v37  ;;  %v1806_v37 = vadd.f32 %v1797_v34, %v1537_v33  ;;  %v3993_v33 = vld [vmem:[%s7324_s1 + $0x840] sm:$0xff] }
 0xc2d   : > { %5119 = vmatprep.subr.mxu1 %v4028_v38 }
 0xc2e   : > { %5120 = vmatpush3.msra.mxu1 %v4028_v38 }
 0xc2f   : > { %5121 = vmatprep.subr.mxu1 %v4027_v39 }
 0xc30   : > { %5122 = vmatpush3.msra.mxu1 %v4027_v39 }
 0xc31   : > { %5123 = vmatprep.subr.mxu1 %v4026_v40 }
 0xc32   : > { %5124 = vmatpush3.msra.mxu1 %v4026_v40 }
 0xc33   : > { %5125 = vmatprep.subr.mxu1 %v4025_v52 }
 0xc34   : > { %5126 = vmatpush3.msra.mxu1 %v4025_v52 }
 0xc35   : > { %5127 = vmatprep.subr.mxu1 %v4024_v57 }
 0xc36   : > { %5128 = vmatpush3.msra.mxu1 %v4024_v57 }
 0xc37   : > { %5129 = vmatprep.subr.mxu1 %v4023_v21 }
 0xc38   : > { %5130 = vmatpush3.msra.mxu1 %v4023_v21 }
 0xc39   : > { %5131 = vmatprep.subr.mxu1 %v4022_v25 }
 0xc3a   : > { %5132 = vmatpush3.msra.mxu1 %v4022_v25 }
 0xc3b   : > { %5133 = vmatprep.subr.mxu1 %v4021_v41 }
 0xc3c   : > { %5134 = vmatpush3.msra.mxu1 %v4021_v41 }
 0xc3d   : > { %5135 = vmatprep.subr.mxu1 %v4020_v42 }
 0xc3e   : > { %5136 = vmatpush3.msra.mxu1 %v4020_v42 }
 0xc3f   : > { %5137 = vmatprep.subr.mxu1 %v4019_v43 }
 0xc40   : > { %5138 = vmatpush3.msra.mxu1 %v4019_v43 }
 0xc41   : > { %5139 = vmatprep.subr.mxu1 %v4018_v44 }
 0xc42   : > { %5140 = vmatpush3.msra.mxu1 %v4018_v44 }
 0xc43   : > { %5141 = vmatprep.subr.mxu1 %v4017_v45 }
 0xc44   : > { %5142 = vmatpush3.msra.mxu1 %v4017_v45 }
 0xc45   : > { %5144 = vmatmul.mubr.f32.vlgmr.msra.gmra.mxu1 %v6367_v5  ;;  %5181 = vmatprep.subr.mxu1 %v4048_v46 }
 0xc46   : > { %5182 = vmatpush3.msra.mxu1 %v4048_v46  ;;  %5213 = vmatprep.mubr.f32.mxu1 %v6371_v55  ;;  %v4043_v55 = vld [vmem:[%s7324_s1 + $0x6d0] sm:$0xff] }
 0xc47   : > { %5183 = vmatprep.subr.mxu1 %v4047_v49 }
 0xc48   : > { %5184 = vmatpush3.msra.mxu1 %v4047_v49 }
 0xc49   : > { %5185 = vmatprep.subr.mxu1 %v4046_v50 }
 0xc4a   : > { %5186 = vmatpush3.msra.mxu1 %v4046_v50 }
 0xc4b   : > { %5187 = vmatprep.subr.mxu1 %v4045_v51 }
 0xc4c   : > { %5188 = vmatpush3.msra.mxu1 %v4045_v51 }
 0xc4d   : > { %5189 = vmatprep.subr.mxu1 %v4044_v53 }
 0xc4e   : > { %5190 = vmatpush3.msra.mxu1 %v4044_v53 }
 0xc4f   : > { %5191 = vmatprep.subr.mxu1 %v4043_v55 }
 0xc50   : > { %5192 = vmatpush3.msra.mxu1 %v4043_v55 }
 0xc51   : > { %5193 = vmatprep.subr.mxu1 %v4042_v54 }
 0xc52   : > { %5194 = vmatpush3.msra.mxu1 %v4042_v54 }
 0xc53   : > { %5195 = vmatprep.subr.mxu1 %v4041_v56 }
 0xc54   : > { %5196 = vmatpush3.msra.mxu1 %v4041_v56 }
 0xc55   : > { %5197 = vmatprep.subr.mxu1 %v4040_v58 }
 0xc56   : > { %5198 = vmatpush3.msra.mxu1 %v4040_v58 }
 0xc57   : > { %5199 = vmatprep.subr.mxu1 %v4039_v59 }
 0xc58   : > { %5200 = vmatpush3.msra.mxu1 %v4039_v59 }
 0xc59   : > { %5201 = vmatprep.subr.mxu1 %v4038_v60 }
 0xc5a   : > { %5202 = vmatpush3.msra.mxu1 %v4038_v60 }
 0xc5b   : > { %5203 = vmatprep.subr.mxu1 %v4037_v61 }
 0xc5c   : > { %5204 = vmatpush3.msra.mxu1 %v4037_v61 }
 0xc5d   : > { %5205 = vmatprep.subr.mxu1 %v4036_v62 }
 0xc5e   : > { %5206 = vmatpush3.msra.mxu1 %v4036_v62 }
 0xc5f   : > { %5207 = vmatprep.subr.mxu1 %v4035_v63 }
 0xc60   : > { %5208 = vmatpush3.msra.mxu1 %v4035_v63 }
 0xc61   : > { %5209 = vmatprep.subr.mxu1 %v4034_v0 }
 0xc62   : > { %5210 = vmatpush3.msra.mxu1 %v4034_v0 }
 0xc63   : > { %5211 = vmatprep.subr.mxu1 %v4033_v1 }
 0xc64   : > { %5212 = vmatpush3.msra.mxu1 %v4033_v1 }
 0xc65   : > { %5214 = vmatmul.mubr.f32.vlgmr.msra.gmra.mxu1 %v6367_v5  ;;  %5251 = vmatprep.subr.mxu1 %v4064_v9  ;;  %v4060_v5 = vld [vmem:[%s7324_s1 + $0x958] sm:$0xff] }
 0xc66   : > { %5252 = vmatpush3.msra.mxu1 %v4064_v9  ;;  %5283 = vmatprep.mubr.f32.mxu1 %v6597_v17 }
 0xc67   : > { %5253 = vmatprep.subr.mxu1 %v4063_v47 }
 0xc68   : > { %5254 = vmatpush3.msra.mxu1 %v4063_v47 }
 0xc69   : > { %5255 = vmatprep.subr.mxu1 %v4062_v13 }
 0xc6a   : > { %5256 = vmatpush3.msra.mxu1 %v4062_v13 }
 0xc6b   : > { %5257 = vmatprep.subr.mxu1 %v4061_v2 }
 0xc6c   : > { %5258 = vmatpush3.msra.mxu1 %v4061_v2  ;;  %v4000_v2 = vld [vmem:[%s7324_s1 + $0x878] sm:$0xff] }
 0xc6d   : > { %5259 = vmatprep.subr.mxu1 %v4060_v5  ;;  %5146 = vmatprep.subr.mxu0 %v4000_v2 }
 0xc6e   : > { %5260 = vmatpush3.msra.mxu1 %v4060_v5  ;;  %5147 = vmatpush3.msra.mxu0 %v4000_v2  ;;  %v3999_v5 = vld [vmem:[%s7324_s1 + $0x870] sm:$0xff] }
 0xc6f   : > { %5261 = vmatprep.subr.mxu1 %v4059_v48  ;;  %5148 = vmatprep.subr.mxu0 %v3999_v5 }
 0xc70   : > { %5262 = vmatpush3.msra.mxu1 %v4059_v48  ;;  %5149 = vmatpush3.msra.mxu0 %v3999_v5  ;;  %v3998_v48 = vld [vmem:[%s7324_s1 + $0x868] sm:$0xff] }
 0xc71   : > { %5263 = vmatprep.subr.mxu1 %v4058_v3  ;;  %5150 = vmatprep.subr.mxu0 %v3998_v48 }
 0xc72   : > { %5264 = vmatpush3.msra.mxu1 %v4058_v3  ;;  %v4096_v3 = vld [vmem:[%s7324_s1 + $0x9f8] sm:$0xff]  ;;  %5151 = vmatpush3.msra.mxu0 %v3998_v48 }
 0xc73   : > { %5265 = vmatprep.subr.mxu1 %v4057_v4 }
 0xc74   : > { %5266 = vmatpush3.msra.mxu1 %v4057_v4  ;;  %v3997_v4 = vld [vmem:[%s7324_s1 + $0x860] sm:$0xff] }
 0xc75   : > { %5267 = vmatprep.subr.mxu1 %v4056_v6  ;;  %5152 = vmatprep.subr.mxu0 %v3997_v4 }
 0xc76   : > { %5268 = vmatpush3.msra.mxu1 %v4056_v6  ;;  %v4095_v6 = vld [vmem:[%s7324_s1 + $0x9f0] sm:$0xff]  ;;  %5153 = vmatpush3.msra.mxu0 %v3997_v4 }
 0xc77   : > { %5269 = vmatprep.subr.mxu1 %v4055_v7 }
 0xc78   : > { %5270 = vmatpush3.msra.mxu1 %v4055_v7  ;;  %v3996_v7 = vld [vmem:[%s7324_s1 + $0x858] sm:$0xff] }
 0xc79   : > { %5271 = vmatprep.subr.mxu1 %v4054_v16  ;;  %5154 = vmatprep.subr.mxu0 %v3996_v7 }
 0xc7a   : > { %5272 = vmatpush3.msra.mxu1 %v4054_v16  ;;  %v4094_v16 = vld [vmem:[%s7324_s1 + $0x9e8] sm:$0xff]  ;;  %5155 = vmatpush3.msra.mxu0 %v3996_v7 }
 0xc7b   : > { %5273 = vmatprep.subr.mxu1 %v4053_v18 }
 0xc7c   : > { %5274 = vmatpush3.msra.mxu1 %v4053_v18  ;;  %v3995_v18 = vld [vmem:[%s7324_s1 + $0x850] sm:$0xff] }
 0xc7d   : > { %5275 = vmatprep.subr.mxu1 %v4052_v23  ;;  %5156 = vmatprep.subr.mxu0 %v3995_v18 }
 0xc7e   : > { %5276 = vmatpush3.msra.mxu1 %v4052_v23  ;;  %v4093_v23 = vld [vmem:[%s7324_s1 + $0x9e0] sm:$0xff]  ;;  %5157 = vmatpush3.msra.mxu0 %v3995_v18  ;;  %v4012_v18 = vld [vmem:[%s7324_s1 + $0x658] sm:$0xff] }
 0xc7f   : > { %5277 = vmatprep.subr.mxu1 %v4051_v26 }
 0xc80   : > { %5278 = vmatpush3.msra.mxu1 %v4051_v26 }
 0xc81   : > { %5279 = vmatprep.subr.mxu1 %v4050_v27 }
 0xc82   : > { %5280 = vmatpush3.msra.mxu1 %v4050_v27  ;;  %v3994_v27 = vld [vmem:[%s7324_s1 + $0x848] sm:$0xff] }
 0xc83   : > { %5281 = vmatprep.subr.mxu1 %v4049_v28  ;;  %5158 = vmatprep.subr.mxu0 %v3994_v27 }
 0xc84   : > { %5282 = vmatpush3.msra.mxu1 %v4049_v28  ;;  %5159 = vmatpush3.msra.mxu0 %v3994_v27  ;;  %v4009_v27 = vld [vmem:[%s7324_s1 + $0x640] sm:$0xff] }
 0xc85   : > { %5284 = vmatmul.mubr.f32.vlgmr.msra.gmra.mxu1 %v6643_v29  ;;  %5321 = vmatprep.subr.mxu1 %v4096_v3 }
 0xc86   : > { %5353 = vmatprep.mubr.f32.mxu1 %v6344_v11  ;;  %v1996_v11 = vrot.slane %v6657_v24, %v6650_v32  ;;  %5322 = vmatpush3.msra.mxu1 %v4096_v3 }
 0xc87   : > { %5323 = vmatprep.subr.mxu1 %v4095_v6  ;;  %5160 = vmatprep.subr.mxu0 %v3993_v33 }
 0xc88   : > { %5324 = vmatpush3.msra.mxu1 %v4095_v6  ;;  %5161 = vmatpush3.msra.mxu0 %v3993_v33  ;;  %v4005_v33 = vld [vmem:[%s7324_s1 + $0x620] sm:$0xff] }
 0xc89   : > { %5325 = vmatprep.subr.mxu1 %v4094_v16 }
 0xc8a   : > { %5326 = vmatpush3.msra.mxu1 %v4094_v16  ;;  %v4013_v16 = vld [vmem:[%s7324_s1 + $0x660] sm:$0xff] }
 0xc8b   : > { %5327 = vmatprep.subr.mxu1 %v4093_v23 }
 0xc8c   : > { %5328 = vmatpush3.msra.mxu1 %v4093_v23  ;;  %v4011_v23 = vld [vmem:[%s7324_s1 + $0x650] sm:$0xff] }
 0xc8d   : > { %5329 = vmatprep.subr.mxu1 %v4092_v30 }
 0xc8e   : > { %5330 = vmatpush3.msra.mxu1 %v4092_v30  ;;  %v4007_v30 = vld [vmem:[%s7324_s1 + $0x630] sm:$0xff] }
 0xce5   : > { %v5110_v36 = vpop.f32.mrf.mxu1 }
 0xce6   : > { %v1992_v38 = vadd.f32 %v5110_v36, %v1807_v35  ;;  %v4091_v35 = vld [vmem:[%s7324_s1 + $0x9d0] sm:$0xff]  ;;  %v4090_v36 = vld [vmem:[%s7324_s1 + $0x9c8] sm:$0xff] }
 0xce7   : > { %v1982_v8 = vpop.f32.mrf.mxu1  ;;  %5331 = vmatprep.subr.mxu1 %v4091_v35 }
 0xce8   : > { %v1998_v10 = vadd.f32 %v1996_v11, %v1992_v38  ;;  %v1991_v39 = vadd.f32 %v1982_v8, %v1806_v37  ;;  %5332 = vmatpush3.msra.mxu1 %v4091_v35  ;;  %v3991_v37 = vld [vmem:[%s7324_s1 + $0x830] sm:$0xff]  ;;  %v4089_v38 = vld [vmem:[%s7324_s1 + $0x9c0] sm:$0xff]  ;;  %v3990_v8 = vld [vmem:[%s7324_s1 + $0x828] sm:$0xff] }
 0xce9   : > { %5333 = vmatprep.subr.mxu1 %v4090_v36  ;;  %v4003_v35 = vld [vmem:[%s7324_s1 + $0x610] sm:$0xff] }
 0xcea   : > { %v1997_v40 = vadd.f32 %v1996_v11, %v1991_v39  ;;  %2001 = vrot.lane.b32.xlu1 %v1998_v10, %s5625_s15  ;;  %v3992_v11 = vld [vmem:[%s7324_s1 + $0x838] sm:$0xff]  ;;  %5334 = vmatpush3.msra.mxu1 %v4090_v36  ;;  %v3989_v39 = vld [vmem:[%s7324_s1 + $0x820] sm:$0xff] }
 0xceb   : > { %5162 = vmatprep.subr.mxu0 %v3992_v11  ;;  %5335 = vmatprep.subr.mxu1 %v4089_v38  ;;  %v4001_v36 = vld [vmem:[%s7324_s1 + $0x600] sm:$0xff] }
 0xcec   : > { %1999 = vrot.lane.b32.xlu0 %v1997_v40, %s5625_s15  ;;  %5163 = vmatpush3.msra.mxu0 %v3992_v11  ;;  %v4002_v11 = vld [vmem:[%s7324_s1 + $0x608] sm:$0xff] }
 0xced   : > { %5164 = vmatprep.subr.mxu0 %v3991_v37  ;;  %5336 = vmatpush3.msra.mxu1 %v4089_v38  ;;  %v4079_v38 = vld [vmem:[%s7324_s1 + $0x770] sm:$0xff] }
 0xcee   : > { %5165 = vmatpush3.msra.mxu0 %v3991_v37  ;;  %v4080_v37 = vld [vmem:[%s7324_s1 + $0x778] sm:$0xff] }
 0xcef   : > { %5166 = vmatprep.subr.mxu0 %v3990_v8 }
 0xcf0   : > { %5167 = vmatpush3.msra.mxu0 %v3990_v8  ;;  %v4078_v8 = vld [vmem:[%s7324_s1 + $0x768] sm:$0xff] }
 0xcf1   : > { %5168 = vmatprep.subr.mxu0 %v3989_v39 }
 0xcf2   : > { %5169 = vmatpush3.msra.mxu0 %v3989_v39  ;;  %v4076_v39 = vld [vmem:[%s7324_s1 + $0x758] sm:$0xff] }
 0xd5c   : > { %v2002_v14 = vpop.permute.xlu1 %2001 }
 0xd5d   : > { %v2004_v15 = vadd.f32 %v2002_v14, %v1998_v10  ;;  %v3988_v14 = vld [vmem:[%s7324_s1 + $0x818] sm:$0xff] }
 0xd5e   : > { %v2000_v52 = vpop.permute.xlu0 %1999  ;;  %5170 = vmatprep.subr.mxu0 %v3988_v14 }
 0xd5f   : > { %v2003_v57 = vadd.f32 %v2000_v52, %v1997_v40  ;;  %2007 = vrot.lane.b32.xlu1 %v2004_v15, %s5626_s16  ;;  %v3987_v52 = vld [vmem:[%s7324_s1 + $0x810] sm:$0xff]  ;;  %5171 = vmatpush3.msra.mxu0 %v3988_v14  ;;  %v4073_v14 = vld [vmem:[%s7324_s1 + $0x740] sm:$0xff] }
 0xd60   : > { %5172 = vmatprep.subr.mxu0 %v3987_v52 }
 0xd61   : > { %2005 = vrot.lane.b32.xlu0 %v2003_v57, %s5626_s16  ;;  %5173 = vmatpush3.msra.mxu0 %v3987_v52  ;;  %v4071_v52 = vld [vmem:[%s7324_s1 + $0x730] sm:$0xff] }
 0xdd1   : > { %v2008_v21 = vpop.permute.xlu1 %2007 }
 0xdd2   : > { %v2010_v25 = vadd.f32 %v2008_v21, %v2004_v15  ;;  %v4086_v15 = vld [vmem:[%s7324_s1 + $0x9a8] sm:$0xff] }
 0xdd3   : > { %v2006_v41 = vpop.permute.xlu0 %2005  ;;  %v3986_v21 = vld [vmem:[%s7324_s1 + $0x808] sm:$0xff] }
 0xdd4   : > { %v2009_v42 = vadd.f32 %v2006_v41, %v2003_v57  ;;  %2013 = vrot.lane.b32.xlu1 %v2010_v25, %s5627_s17  ;;  %v4085_v57 = vld [vmem:[%s7324_s1 + $0x9a0] sm:$0xff]  ;;  %5174 = vmatprep.subr.mxu0 %v3986_v21 }
 0xdd5   : > { %v3985_v41 = vld [vmem:[%s7324_s1 + $0x800] sm:$0xff]  ;;  %5175 = vmatpush3.msra.mxu0 %v3986_v21 }
 0xdd6   : > { %2011 = vrot.lane.b32.xlu0 %v2009_v42, %s5627_s17  ;;  %5176 = vmatprep.subr.mxu0 %v3985_v41  ;;  %v4069_v21 = vld [vmem:[%s7324_s1 + $0x720] sm:$0xff] }
 0xdd7   : > { %5177 = vmatpush3.msra.mxu0 %v3985_v41  ;;  %v4067_v41 = vld [vmem:[%s7324_s1 + $0x710] sm:$0xff] }
 0xe46   : > { %v2014_v43 = vpop.permute.xlu1 %2013 }
 0xe47   : > { %v2016_v44 = vadd.f32 %v2014_v43, %v2010_v25  ;;  %v4084_v25 = vld [vmem:[%s7324_s1 + $0x998] sm:$0xff] }
 0xe48   : > { %v2012_v45 = vpop.permute.xlu0 %2011  ;;  %v4016_v43 = vld [vmem:[%s7324_s1 + $0x678] sm:$0xff] }
 0xe49   : > { %v2015_v46 = vadd.f32 %v2012_v45, %v2009_v42  ;;  %2019 = vrot.lane.b32.xlu1 %v2016_v44, %s5628_s18  ;;  %v4083_v42 = vld [vmem:[%s7324_s1 + $0x990] sm:$0xff]  ;;  %5216 = vmatprep.subr.mxu0 %v4016_v43  ;;  %v4081_v45 = vld [vmem:[%s7324_s1 + $0x980] sm:$0xff] }
 0xe4b   : > { %2017 = vrot.lane.b32.xlu0 %v2015_v46, %s5628_s18 }
 0xebb   : > { %v2020_v49 = vpop.permute.xlu1 %2019 }
 0xebc   : > { %v2022_v50 = vadd.f32 %v2020_v49, %v2016_v44  ;;  %v4082_v44 = vld [vmem:[%s7324_s1 + $0x988] sm:$0xff] }
 0xebd   : > { %v2018_v51 = vpop.permute.xlu0 %2017 }
 0xebe   : > { %v2024_v53 = vmul.f32 0.0625, %v2022_v50  ;;  %v2021_v55 = vadd.f32 %v2018_v51, %v2015_v46 }
 0xec0   : > { %v6669_v54 = vsub.f32 %v1998_v10, %v2024_v53  ;;  %v2023_v56 = vmul.f32 0.0625, %v2021_v55  ;;  %v4088_v10 = vld [vmem:[%s7324_s1 + $0x9b8] sm:$0xff] }
 0xec1   : > { %5337 = vmatprep.subr.mxu1 %v4088_v10 }
 0xec2   : > { %v6671_v58 = vsub.f32 %v1997_v40, %v2023_v56  ;;  %v2028_v59 = vmul.f32 %v6669_v54, %v6669_v54  ;;  %v4087_v40 = vld [vmem:[%s7324_s1 + $0x9b0] sm:$0xff]  ;;  %5338 = vmatpush3.msra.mxu1 %v4088_v10  ;;  %v4077_v10 = vld [vmem:[%s7324_s1 + $0x760] sm:$0xff] }
 0xec3   : > { %5339 = vmatprep.subr.mxu1 %v4087_v40 }
 0xec4   : > { %2031 = vrot.lane.b32.xlu1 %v2028_v59, %s5625_s15  ;;  %v2027_v60 = vmul.f32 %v6671_v58, %v6671_v58  ;;  %5340 = vmatpush3.msra.mxu1 %v4087_v40  ;;  %v4074_v40 = vld [vmem:[%s7324_s1 + $0x748] sm:$0xff] }
 0xec5   : > { %5341 = vmatprep.subr.mxu1 %v4086_v15 }
 0xec6   : > { %2029 = vrot.lane.b32.xlu0 %v2027_v60, %s5625_s15  ;;  %5342 = vmatpush3.msra.mxu1 %v4086_v15  ;;  %v4072_v15 = vld [vmem:[%s7324_s1 + $0x738] sm:$0xff] }
 0xec7   : > { %5343 = vmatprep.subr.mxu1 %v4085_v57 }
 0xec8   : > { %5344 = vmatpush3.msra.mxu1 %v4085_v57  ;;  %v4070_v57 = vld [vmem:[%s7324_s1 + $0x728] sm:$0xff] }
 0xec9   : > { %5345 = vmatprep.subr.mxu1 %v4084_v25 }
 0xeca   : > { %5346 = vmatpush3.msra.mxu1 %v4084_v25  ;;  %v4068_v25 = vld [vmem:[%s7324_s1 + $0x718] sm:$0xff] }
 0xecb   : > { %5347 = vmatprep.subr.mxu1 %v4083_v42 }
 0xecc   : > { %5348 = vmatpush3.msra.mxu1 %v4083_v42  ;;  %v4066_v42 = vld [vmem:[%s7324_s1 + $0x708] sm:$0xff] }
 0xecd   : > { %5349 = vmatprep.subr.mxu1 %v4082_v44 }
 0xece   : > { %5350 = vmatpush3.msra.mxu1 %v4082_v44  ;;  %v4112_v44 = vld [vmem:[%s7324_s1 + $0x7f8] sm:$0xff] }
 0xecf   : > { %5351 = vmatprep.subr.mxu1 %v4081_v45 }
 0xed0   : > { %5352 = vmatpush3.msra.mxu1 %v4081_v45  ;;  %v4111_v45 = vld [vmem:[%s7324_s1 + $0x7f0] sm:$0xff] }
 0xed1   : > { %5354 = vmatmul.mubr.f32.vlgmr.msra.gmra.mxu1 %v6348_v12 }
 0xed2   : > { %5395 = vmatprep.mubr.f32.mxu1 %v5624_v22 }
 0xf36   : > { %v2032_v61 = vpop.permute.xlu1 %2031 }
 0xf37   : > { %v2034_v62 = vadd.f32 %v2032_v61, %v2028_v59 }
 0xf38   : > { %v2030_v63 = vpop.permute.xlu0 %2029 }
 0xf39   : > { %v2033_v0 = vadd.f32 %v2030_v63, %v2027_v60  ;;  %2037 = vrot.lane.b32.xlu1 %v2034_v62, %s5626_s16  ;;  %v6797_v60 = vld [vmem:[%s7326_s3] sm:$0x1f] }
 0xf3a   : > { %v2064_v12 = vrot.slane %v6797_v60, %v6650_v32 }
 0xf3b   : > { %2035 = vrot.lane.b32.xlu0 %v2033_v0, %s5626_s16 }
 0xfab   : > { %v2038_v1 = vpop.permute.xlu1 %2037 }
 0xfac   : > { %v2040_v9 = vadd.f32 %v2038_v1, %v2034_v62  ;;  %v6804_v62 = vld [vmem:[%s7327_s4] sm:$0x1f] }
 0xfad   : > { %v2036_v47 = vpop.permute.xlu0 %2035  ;;  %v2070_v63 = vrot.slane %v6804_v62, %v6650_v32 }
 0xfae   : > { %v2039_v13 = vadd.f32 %v2036_v47, %v2033_v0  ;;  %2043 = vrot.lane.b32.xlu1 %v2040_v9, %s5627_s17 }
 0xfb0   : > { %2041 = vrot.lane.b32.xlu0 %v2039_v13, %s5627_s17 }
0x1020   : > { %v2044_v26 = vpop.permute.xlu1 %2043 }
0x1021   : > { %v6716_v28 = vadd.f32 %v2044_v26, %v2040_v9  ;;  %v6812_v9 = vld [vmem:[%s7328_s5] sm:$0x1f]  ;;  %v4010_v26 = vld [vmem:[%s7324_s1 + $0x648] sm:$0xff] }
0x1022   : > { %v2042_v31 = vpop.permute.xlu0 %2041  ;;  %v2078_v47 = vrot.slane %v6812_v9, %v6650_v32  ;;  %v4015_v32 = vld [vmem:[%s7324_s1 + $0x670] sm:$0xff] }
0x1023   : > { %v6724_v34 = vadd.f32 %v2042_v31, %v2039_v13  ;;  %2049 = vrot.lane.b32.xlu1 %v6716_v28, %s5628_s18  ;;  %v4006_v31 = vld [vmem:[%s7324_s1 + $0x628] sm:$0xff] }
0x1025   : > { %2047 = vrot.lane.b32.xlu0 %v6724_v34, %s5628_s18 }
0x1095   : > { %v2050_v46 = vpop.permute.xlu1 %2049 }
0x1096   : > { %v2052_v49 = vadd.f32 %v2050_v46, %v6716_v28  ;;  %v4008_v28 = vld [vmem:[%s7324_s1 + $0x638] sm:$0xff]  ;;  %v4110_v46 = vld [vmem:[%s7324_s1 + $0x7e8] sm:$0xff] }
0x1097   : > { %v2048_v50 = vpop.permute.xlu0 %2047 }
0x1098   : > { %v2054_v51 = vmul.f32 0.0625, %v2052_v49  ;;  %v2051_v53 = vadd.f32 %v2048_v50, %v6724_v34  ;;  %v4004_v34 = vld [vmem:[%s7324_s1 + $0x618] sm:$0xff]  ;;  %v5610_v49 = vld [vmem:[%s5710_s26] sm:$0xff] }
0x1099   : > { %v4109_v50 = vld [vmem:[%s7324_s1 + $0x7e0] sm:$0xff] }
0x109a   : > { %v2056_v55 = vadd.f32 1e-05, %v2054_v51  ;;  %v2053_v56 = vmul.f32 0.0625, %v2051_v53  ;;  %v4107_v51 = vld [vmem:[%s7324_s1 + $0x7d0] sm:$0xff]  ;;  %v4106_v53 = vld [vmem:[%s7324_s1 + $0x7c8] sm:$0xff] }
0x109c   : > { %5594 = vrsqrt.f32 %v2056_v55  ;;  %v2055_v59 = vadd.f32 1e-05, %v2053_v56  ;;  %v4105_v55 = vld [vmem:[%s7324_s1 + $0x7c0] sm:$0xff]  ;;  %v4104_v56 = vld [vmem:[%s7324_s1 + $0x7b8] sm:$0xff] }
0x109e   : > { %5596 = vrsqrt.f32 %v2055_v59  ;;  %v4103_v59 = vld [vmem:[%s7324_s1 + $0x7b0] sm:$0xff] }
0x10a9   : > { %v5595_v61 = vpop.eup %5594 }
0x10aa   : > { %v2060_v0 = vmul.f32 %v5595_v61, %v6669_v54  ;;  %v4101_v61 = vld [vmem:[%s7324_s1 + $0x7a0] sm:$0xff] }
0x10ab   : > { %v5597_v1 = vpop.eup %5596 }
0x10ac   : > { %v2066_v13 = vmul.f32 %v2064_v12, %v2060_v0  ;;  %v2059_v2 = vmul.f32 %v5597_v1, %v6671_v58  ;;  %v4014_v58 = vld [vmem:[%s7324_s1 + $0x668] sm:$0xff]  ;;  %v4099_v0 = vld [vmem:[%s7324_s1 + $0x790] sm:$0xff] }
0x10ad   : > { %v4098_v1 = vld [vmem:[%s7324_s1 + $0x788] sm:$0xff] }
0x10ae   : > { %v2072_v5 = vadd.f32 %v2070_v63, %v2066_v13  ;;  %v2065_v48 = vmul.f32 %v2064_v12, %v2059_v2  ;;  %v4102_v12 = vld [vmem:[%s7324_s1 + $0x7a8] sm:$0xff]  ;;  %v4147_v13 = vld [vmem:[%s7324_s1 + $0xd78] sm:$0xff]  ;;  %v4146_v2 = vld [vmem:[%s7324_s1 + $0xd70] sm:$0xff] }
0x10b0   : > { %v2080_v3 = vmul.f32 %v2078_v47, %v2072_v5  ;;  %v2071_v4 = vadd.f32 %v2070_v63, %v2065_v48  ;;  %vm2074_vm11 = vcmp.gt.f32.partialorder %v2072_v5, 0.0  ;;  %v4100_v63 = vld [vmem:[%s7324_s1 + $0x798] sm:$0xff]  ;;  %v4145_v48 = vld [vmem:[%s7324_s1 + $0xd68] sm:$0xff] }
0x10b2   : > { %v2079_v54 = vmul.f32 %v2078_v47, %v2071_v4  ;;  %vm2073_vm12 = vcmp.gt.f32.partialorder %v2071_v4, 0.0  ;;  %v6821_v6 = vsel %vm2074_vm11, %v2072_v5, %v2080_v3  ;;  %v4097_v47 = vld [vmem:[%s7324_s1 + $0x780] sm:$0xff]  ;;  %v5611_v5 = vld [vmem:[%s5710_s26 + $0x8] sm:$0xff] }
0x10b3   : > { %2084 = vst [vmem:[%s398_s12 + $0x8] sm:$0xff] %v6821_v6  ;;  %v4144_v3 = vld [vmem:[%s7324_s1 + $0xd60] sm:$0xff] }
0x10b4   : > { %v6824_v7 = vsel %vm2073_vm12, %v2071_v4, %v2079_v54  ;;  %v4143_v4 = vld [vmem:[%s7324_s1 + $0xd58] sm:$0xff]  ;;  %v4142_v54 = vld [vmem:[%s7324_s1 + $0xd50] sm:$0xff] }
0x10b5   : > { %2083 = vst [vmem:[%s398_s12] sm:$0xff] %v6824_v7  ;;  %5178 = vmatprep.mubr.f32.mxu0 %v6824_v7  ;;  %s403_s12 = scalar_lea.vmem %s7332_s9, %s5704_s23 }
0x10b6   : > { %5179 = vmatmul.mubr.f32.vlgmr.msra.gmra.mxu0 %v6821_v6 }
0x10b7   : > { %5217 = vmatpush3.msra.mxu0 %v4016_v43  ;;  %5248 = vmatprep.mubr.f32.mxu0 %v6824_v7  ;;  %v4065_v43 = vld [vmem:[%s7324_s1 + $0x700] sm:$0xff] }
0x10b8   : > { %5218 = vmatprep.subr.mxu0 %v4015_v32 }
0x10b9   : > { %5219 = vmatpush3.msra.mxu0 %v4015_v32  ;;  %v4140_v32 = vld [vmem:[%s7324_s1 + $0xd40] sm:$0xff] }
0x10ba   : > { %5220 = vmatprep.subr.mxu0 %v4014_v58 }
0x10bb   : > { %5221 = vmatpush3.msra.mxu0 %v4014_v58  ;;  %v4139_v58 = vld [vmem:[%s7324_s1 + $0xd38] sm:$0xff] }
0x10bc   : > { %5222 = vmatprep.subr.mxu0 %v4013_v16 }
0x10bd   : > { %5223 = vmatpush3.msra.mxu0 %v4013_v16  ;;  %v4138_v16 = vld [vmem:[%s7324_s1 + $0xd30] sm:$0xff] }
0x10be   : > { %5224 = vmatprep.subr.mxu0 %v4012_v18 }
0x10bf   : > { %5225 = vmatpush3.msra.mxu0 %v4012_v18  ;;  %v4137_v18 = vld [vmem:[%s7324_s1 + $0xd28] sm:$0xff] }
0x10c0   : > { %5226 = vmatprep.subr.mxu0 %v4011_v23 }
0x10c1   : > { %5227 = vmatpush3.msra.mxu0 %v4011_v23  ;;  %v4136_v23 = vld [vmem:[%s7324_s1 + $0xd20] sm:$0xff] }
0x10c2   : > { %5228 = vmatprep.subr.mxu0 %v4010_v26 }
0x10c3   : > { %5229 = vmatpush3.msra.mxu0 %v4010_v26  ;;  %v4135_v26 = vld [vmem:[%s7324_s1 + $0xd18] sm:$0xff] }
0x10c4   : > { %5230 = vmatprep.subr.mxu0 %v4009_v27 }
0x10c5   : > { %5231 = vmatpush3.msra.mxu0 %v4009_v27  ;;  %v4134_v27 = vld [vmem:[%s7324_s1 + $0xd10] sm:$0xff] }
0x10c6   : > { %5232 = vmatprep.subr.mxu0 %v4008_v28 }
0x10c7   : > { %5233 = vmatpush3.msra.mxu0 %v4008_v28  ;;  %v4133_v28 = vld [vmem:[%s7324_s1 + $0xd08] sm:$0xff] }
0x10c8   : > { %5234 = vmatprep.subr.mxu0 %v4007_v30 }
0x10c9   : > { %5235 = vmatpush3.msra.mxu0 %v4007_v30  ;;  %v4132_v30 = vld [vmem:[%s7324_s1 + $0xd00] sm:$0xff] }
0x10ca   : > { %5236 = vmatprep.subr.mxu0 %v4006_v31 }
0x10cb   : > { %5237 = vmatpush3.msra.mxu0 %v4006_v31  ;;  %v4163_v31 = vld [vmem:[%s7324_s1 + $0xdf8] sm:$0xff] }
0x10cc   : > { %5238 = vmatprep.subr.mxu0 %v4005_v33 }
0x10cd   : > { %5239 = vmatpush3.msra.mxu0 %v4005_v33  ;;  %v4162_v33 = vld [vmem:[%s7324_s1 + $0xdf0] sm:$0xff] }
0x10ce   : > { %5240 = vmatprep.subr.mxu0 %v4004_v34 }
0x10cf   : > { %5241 = vmatpush3.msra.mxu0 %v4004_v34  ;;  %v3207_v34 = vld [vmem:[%s6365_s27] sm:$0xff] }
0x10d0   : > { %5242 = vmatprep.subr.mxu0 %v4003_v35 }
0x10d1   : > { %5243 = vmatpush3.msra.mxu0 %v4003_v35  ;;  %v4161_v35 = vld [vmem:[%s7324_s1 + $0xde8] sm:$0xff] }
0x10d2   : > { %5244 = vmatprep.subr.mxu0 %v4002_v11 }
0x10d3   : > { %5245 = vmatpush3.msra.mxu0 %v4002_v11  ;;  %v4160_v11 = vld [vmem:[%s7324_s1 + $0xde0] sm:$0xff] }
0x10d4   : > { %5246 = vmatprep.subr.mxu0 %v4001_v36 }
0x10d5   : > { %5247 = vmatpush3.msra.mxu0 %v4001_v36  ;;  %v4158_v36 = vld [vmem:[%s7324_s1 + $0xdd0] sm:$0xff] }
0x10d6   : > { %5249 = vmatmul.mubr.f32.vlgmr.msra.gmra.mxu0 %v6821_v6  ;;  %5286 = vmatprep.subr.mxu0 %v4080_v37 }
0x10d7   : > { %5287 = vmatpush3.msra.mxu0 %v4080_v37  ;;  %5318 = vmatprep.mubr.f32.mxu0 %v6597_v17  ;;  %v4075_v17 = vld [vmem:[%s7324_s1 + $0x750] sm:$0xff]  ;;  %v4157_v37 = vld [vmem:[%s7324_s1 + $0xdc8] sm:$0xff] }
0x10d8   : > { %5288 = vmatprep.subr.mxu0 %v4079_v38 }
0x10d9   : > { %5289 = vmatpush3.msra.mxu0 %v4079_v38  ;;  %v4156_v38 = vld [vmem:[%s7324_s1 + $0xdc0] sm:$0xff] }
0x10da   : > { %5290 = vmatprep.subr.mxu0 %v4078_v8 }
0x10db   : > { %5291 = vmatpush3.msra.mxu0 %v4078_v8  ;;  %v4155_v8 = vld [vmem:[%s7324_s1 + $0xdb8] sm:$0xff] }
0x10dc   : > { %5292 = vmatprep.subr.mxu0 %v4077_v10 }
0x10dd   : > { %5293 = vmatpush3.msra.mxu0 %v4077_v10  ;;  %v4154_v10 = vld [vmem:[%s7324_s1 + $0xdb0] sm:$0xff] }
0x10de   : > { %5294 = vmatprep.subr.mxu0 %v4076_v39 }
0x10df   : > { %5295 = vmatpush3.msra.mxu0 %v4076_v39  ;;  %v4153_v39 = vld [vmem:[%s7324_s1 + $0xda8] sm:$0xff] }
0x10e0   : > { %5296 = vmatprep.subr.mxu0 %v4075_v17 }
0x10e1   : > { %5297 = vmatpush3.msra.mxu0 %v4075_v17  ;;  %v4152_v17 = vld [vmem:[%s7324_s1 + $0xda0] sm:$0xff] }
0x10e2   : > { %5298 = vmatprep.subr.mxu0 %v4074_v40 }
0x10e3   : > { %5299 = vmatpush3.msra.mxu0 %v4074_v40  ;;  %v4151_v40 = vld [vmem:[%s7324_s1 + $0xd98] sm:$0xff] }
0x10e4   : > { %5300 = vmatprep.subr.mxu0 %v4073_v14 }
0x10e5   : > { %5301 = vmatpush3.msra.mxu0 %v4073_v14  ;;  %v4150_v14 = vld [vmem:[%s7324_s1 + $0xd90] sm:$0xff] }
0x10e6   : > { %5302 = vmatprep.subr.mxu0 %v4072_v15 }
0x10e7   : > { %5303 = vmatpush3.msra.mxu0 %v4072_v15  ;;  %v4149_v15 = vld [vmem:[%s7324_s1 + $0xd88] sm:$0xff] }
0x10e8   : > { %5304 = vmatprep.subr.mxu0 %v4071_v52 }
0x10e9   : > { %5305 = vmatpush3.msra.mxu0 %v4071_v52  ;;  %v4148_v52 = vld [vmem:[%s7324_s1 + $0xd80] sm:$0xff] }
0x10ea   : > { %5306 = vmatprep.subr.mxu0 %v4070_v57 }
0x10eb   : > { %5307 = vmatpush3.msra.mxu0 %v4070_v57  ;;  %v3208_v57 = vld [vmem:[%s6365_s27 + $0x8] sm:$0xff] }
0x10ec   : > { %5308 = vmatprep.subr.mxu0 %v4069_v21 }
0x10ed   : > { %5309 = vmatpush3.msra.mxu0 %v4069_v21 }
0x10ee   : > { %5310 = vmatprep.subr.mxu0 %v4068_v25 }
0x10ef   : > { %5311 = vmatpush3.msra.mxu0 %v4068_v25 }
0x10f0   : > { %5312 = vmatprep.subr.mxu0 %v4067_v41 }
0x10f1   : > { %5313 = vmatpush3.msra.mxu0 %v4067_v41  ;;  %v5145_v41 = vpop.f32.mrf.mxu1 }
0x10f2   : > { %5314 = vmatprep.subr.mxu0 %v4066_v42 }
0x10f3   : > { %5315 = vmatpush3.msra.mxu0 %v4066_v42 }
0x10f4   : > { %5316 = vmatprep.subr.mxu0 %v4065_v43 }
0x10f5   : > { %5317 = vmatpush3.msra.mxu0 %v4065_v43  ;;  %v2206_v43 = vpop.f32.mrf.mxu1 }
0x10f6   : > { %5319 = vmatmul.mubr.f32.vlgmr.msra.gmra.mxu0 %v6643_v29  ;;  %5356 = vmatprep.subr.mxu0 %v4112_v44  ;;  %v4108_v29 = vld [vmem:[%s7324_s1 + $0x7d8] sm:$0xff] }
0x10f7   : > { %5357 = vmatpush3.msra.mxu0 %v4112_v44  ;;  %5388 = vmatprep.mubr.f32.mxu0 %v5610_v49 }
0x10f8   : > { %5358 = vmatprep.subr.mxu0 %v4111_v45 }
0x10f9   : > { %5359 = vmatpush3.msra.mxu0 %v4111_v45  ;;  %v5215_v45 = vpop.f32.mrf.mxu1 }
0x10fa   : > { %5360 = vmatprep.subr.mxu0 %v4110_v46 }
0x10fb   : > { %5361 = vmatpush3.msra.mxu0 %v4110_v46 }
0x10fc   : > { %5362 = vmatprep.subr.mxu0 %v4109_v50 }
0x10fd   : > { %5363 = vmatpush3.msra.mxu0 %v4109_v50  ;;  %v2373_v50 = vpop.f32.mrf.mxu1 }
0x10fe   : > { %5364 = vmatprep.subr.mxu0 %v4108_v29 }
0x10ff   : > { %5365 = vmatpush3.msra.mxu0 %v4108_v29 }
0x1100   : > { %5366 = vmatprep.subr.mxu0 %v4107_v51 }
0x1101   : > { %5367 = vmatpush3.msra.mxu0 %v4107_v51 }
0x1102   : > { %5368 = vmatprep.subr.mxu0 %v4106_v53 }
0x1103   : > { %5369 = vmatpush3.msra.mxu0 %v4106_v53 }
0x1104   : > { %5370 = vmatprep.subr.mxu0 %v4105_v55 }
0x1105   : > { %5371 = vmatpush3.msra.mxu0 %v4105_v55 }
0x1106   : > { %5372 = vmatprep.subr.mxu0 %v4104_v56 }
0x1107   : > { %5373 = vmatpush3.msra.mxu0 %v4104_v56 }
0x1108   : > { %5374 = vmatprep.subr.mxu0 %v4103_v59 }
0x1109   : > { %5375 = vmatpush3.msra.mxu0 %v4103_v59 }
0x110a   : > { %5376 = vmatprep.subr.mxu0 %v4102_v12 }
0x110b   : > { %5377 = vmatpush3.msra.mxu0 %v4102_v12 }
0x110c   : > { %5378 = vmatprep.subr.mxu0 %v4101_v61 }
0x110d   : > { %5379 = vmatpush3.msra.mxu0 %v4101_v61 }
0x110e   : > { %5380 = vmatprep.subr.mxu0 %v4100_v63 }
0x110f   : > { %5381 = vmatpush3.msra.mxu0 %v4100_v63  ;;  %v4114_v63 = vsel %vm2839_vm13, 1.0, %v5624_v22 }
0x1110   : > { %5382 = vmatprep.subr.mxu0 %v4099_v0 }
0x1111   : > { %5383 = vmatpush3.msra.mxu0 %v4099_v0  ;;  %v5285_v0 = vpop.f32.mrf.mxu1 }
0x1112   : > { %5384 = vmatprep.subr.mxu0 %v4098_v1 }
0x1113   : > { %5385 = vmatpush3.msra.mxu0 %v4098_v1 }
0x1114   : > { %5386 = vmatprep.subr.mxu0 %v4097_v47 }
0x1115   : > { %5387 = vmatpush3.msra.mxu0 %v4097_v47  ;;  %v2542_v47 = vpop.f32.mrf.mxu1 }
0x1116   : > { %5389 = vmatmul.mubr.f32.vlgmr.msra.gmra.mxu0 %v5611_v5  ;;  %5398 = vmatprep.subr.mxu0 %v4147_v13 }
0x1117   : > { %5399 = vmatpush3.msra.mxu0 %v4147_v13  ;;  %5430 = vmatprep.mubr.f32.mxu0 %v6824_v7  ;;  %v4141_v7 = vld [vmem:[%s7324_s1 + $0xd48] sm:$0xff] }
0x1118   : > { %5400 = vmatprep.subr.mxu0 %v4146_v2 }
0x1119   : > { %5401 = vmatpush3.msra.mxu0 %v4146_v2  ;;  %v5355_v2 = vpop.f32.mrf.mxu1 }
0x111a   : > { %5402 = vmatprep.subr.mxu0 %v4145_v48 }
0x111b   : > { %5403 = vmatpush3.msra.mxu0 %v4145_v48  ;;  %v7081_v48 = vsub.s32 3, %v5757_v19 }
0x111c   : > { %5404 = vmatprep.subr.mxu0 %v4144_v3 }
0x111d   : > { %5405 = vmatpush3.msra.mxu0 %v4144_v3  ;;  %v2732_v3 = vpop.f32.mrf.mxu1 }
0x111e   : > { %5406 = vmatprep.subr.mxu0 %v4143_v4 }
0x111f   : > { %5407 = vmatpush3.msra.mxu0 %v4143_v4 }
0x1120   : > { %5408 = vmatprep.subr.mxu0 %v4142_v54 }
0x1121   : > { %5409 = vmatpush3.msra.mxu0 %v4142_v54  ;;  %v2930_v54 = vrot.slane %v6657_v24, %v7081_v48 }
0x1122   : > { %5410 = vmatprep.subr.mxu0 %v4141_v7 }
0x1123   : > { %5411 = vmatpush3.msra.mxu0 %v4141_v7 }
0x1124   : > { %5412 = vmatprep.subr.mxu0 %v4140_v32 }
0x1125   : > { %5413 = vmatpush3.msra.mxu0 %v4140_v32 }
0x1126   : > { %5414 = vmatprep.subr.mxu0 %v4139_v58 }
0x1127   : > { %5415 = vmatpush3.msra.mxu0 %v4139_v58 }
0x1128   : > { %5416 = vmatprep.subr.mxu0 %v4138_v16 }
0x1129   : > { %5417 = vmatpush3.msra.mxu0 %v4138_v16 }
0x112a   : > { %5418 = vmatprep.subr.mxu0 %v4137_v18 }
0x112b   : > { %5419 = vmatpush3.msra.mxu0 %v4137_v18 }
0x112c   : > { %5420 = vmatprep.subr.mxu0 %v4136_v23 }
0x112d   : > { %5421 = vmatpush3.msra.mxu0 %v4136_v23 }
0x112e   : > { %5422 = vmatprep.subr.mxu0 %v4135_v26 }
0x112f   : > { %5423 = vmatpush3.msra.mxu0 %v4135_v26 }
0x1130   : > { %5424 = vmatprep.subr.mxu0 %v4134_v27 }
0x1131   : > { %5425 = vmatpush3.msra.mxu0 %v4134_v27 }
0x1132   : > { %5426 = vmatprep.subr.mxu0 %v4133_v28 }
0x1133   : > { %5427 = vmatpush3.msra.mxu0 %v4133_v28 }
0x1134   : > { %5428 = vmatprep.subr.mxu0 %v4132_v30 }
0x1135   : > { %5429 = vmatpush3.msra.mxu0 %v4132_v30 }
0x1136   : > { %5431 = vmatmul.mubr.f32.vlgmr.msra.gmra.mxu0 %v6821_v6  ;;  %5468 = vmatprep.subr.mxu0 %v4163_v31  ;;  %v4159_v6 = vld [vmem:[%s7324_s1 + $0xdd8] sm:$0xff] }
0x1137   : > { %5469 = vmatpush3.msra.mxu0 %v4163_v31  ;;  %5500 = vmatprep.mubr.f32.mxu0 %v3207_v34 }
0x1138   : > { %5470 = vmatprep.subr.mxu0 %v4162_v33 }
0x1139   : > { %5471 = vmatpush3.msra.mxu0 %v4162_v33 }
0x113a   : > { %5472 = vmatprep.subr.mxu0 %v4161_v35 }
0x113b   : > { %5473 = vmatpush3.msra.mxu0 %v4161_v35 }
0x113c   : > { %5474 = vmatprep.subr.mxu0 %v4160_v11 }
0x113d   : > { %5475 = vmatpush3.msra.mxu0 %v4160_v11 }
0x113e   : > { %5476 = vmatprep.subr.mxu0 %v4159_v6 }
0x113f   : > { %5477 = vmatpush3.msra.mxu0 %v4159_v6 }
0x1140   : > { %5478 = vmatprep.subr.mxu0 %v4158_v36 }
0x1141   : > { %5479 = vmatpush3.msra.mxu0 %v4158_v36 }
0x1142   : > { %5480 = vmatprep.subr.mxu0 %v4157_v37 }
0x1143   : > { %5481 = vmatpush3.msra.mxu0 %v4157_v37 }
0x1144   : > { %5482 = vmatprep.subr.mxu0 %v4156_v38 }
0x1145   : > { %5483 = vmatpush3.msra.mxu0 %v4156_v38 }
0x1146   : > { %5484 = vmatprep.subr.mxu0 %v4155_v8 }
0x1147   : > { %5485 = vmatpush3.msra.mxu0 %v4155_v8 }
0x1148   : > { %5486 = vmatprep.subr.mxu0 %v4154_v10 }
0x1149   : > { %5487 = vmatpush3.msra.mxu0 %v4154_v10 }
0x114a   : > { %5488 = vmatprep.subr.mxu0 %v4153_v39 }
0x114b   : > { %5489 = vmatpush3.msra.mxu0 %v4153_v39 }
0x114c   : > { %5490 = vmatprep.subr.mxu0 %v4152_v17 }
0x114d   : > { %5491 = vmatpush3.msra.mxu0 %v4152_v17 }
0x114e   : > { %5492 = vmatprep.subr.mxu0 %v4151_v40 }
0x114f   : > { %5493 = vmatpush3.msra.mxu0 %v4151_v40 }
0x1150   : > { %5494 = vmatprep.subr.mxu0 %v4150_v14 }
0x1151   : > { %5495 = vmatpush3.msra.mxu0 %v4150_v14 }
0x1152   : > { %5496 = vmatprep.subr.mxu0 %v4149_v15 }
0x1153   : > { %5497 = vmatpush3.msra.mxu0 %v4149_v15 }
0x1154   : > { %5498 = vmatprep.subr.mxu0 %v4148_v52 }
0x1155   : > { %5499 = vmatpush3.msra.mxu0 %v4148_v52 }
0x1156   : > { %5501 = vmatmul.mubr.f32.vlgmr.msra.gmra.mxu0 %v3208_v57 }
0x1176   : > { %v5180_v21 = vpop.f32.mrf.mxu0 }
0x1177   : > { %v2287_v1 = vadd.f32 %v5180_v21, %v5145_v41 }
0x1178   : > { %v2281_v25 = vpop.f32.mrf.mxu0 }
0x1179   : > { %v2282_v13 = vadd.f32 %v2281_v25, %v2206_v43  ;;  %v2552_v5 = vadd.f32 %v5285_v0, %v2287_v1  ;;  %v4123_v0 = vld [vmem:[%s7324_s1 + $0xcb8] sm:$0xff]  ;;  %v4122_v1 = vld [vmem:[%s7324_s1 + $0xcb0] sm:$0xff] }
0x117b   : > { %v2551_v20 = vadd.f32 %v2542_v47, %v2282_v13  ;;  %v2742_v4 = vadd.f32 %v5355_v2, %v2552_v5  ;;  %v4121_v47 = vld [vmem:[%s7324_s1 + $0xca8] sm:$0xff]  ;;  %v4120_v13 = vld [vmem:[%s7324_s1 + $0xca0] sm:$0xff]  ;;  %v4119_v2 = vld [vmem:[%s7324_s1 + $0xc98] sm:$0xff] }
0x117c   : > { %v4118_v5 = vld [vmem:[%s7324_s1 + $0xc90] sm:$0xff] }
0x117d   : > { %v2741_v7 = vadd.f32 %v2732_v3, %v2551_v20  ;;  %v4117_v20 = vld [vmem:[%s7324_s1 + $0xc88] sm:$0xff]  ;;  %v4116_v3 = vld [vmem:[%s7324_s1 + $0xc80] sm:$0xff] }
0x1196   : > { %v5250_v42 = vpop.f32.mrf.mxu0 }
0x1197   : > { %v2454_v49 = vadd.f32 %v5250_v42, %v5215_v45 }
0x1198   : > { %v2448_v44 = vpop.f32.mrf.mxu0 }
0x1199   : > { %v2449_v51 = vadd.f32 %v2448_v44, %v2373_v50  ;;  %v4129_v50 = vld [vmem:[%s7324_s1 + $0xce8] sm:$0xff] }
0x11b6   : > { %v5320_v46 = vpop.f32.mrf.mxu0 }
0x11b7   : > { %v2646_v53 = vadd.f32 %v5320_v46, %v2454_v49  ;;  %v4131_v46 = vld [vmem:[%s7324_s1 + $0xcf8] sm:$0xff]  ;;  %v4130_v49 = vld [vmem:[%s7324_s1 + $0xcf0] sm:$0xff] }
0x11b8   : > { %v2636_v29 = vpop.f32.mrf.mxu0 }
0x11b9   : > { %v2645_v56 = vadd.f32 %v2636_v29, %v2449_v51  ;;  %v4128_v29 = vld [vmem:[%s7324_s1 + $0xce0] sm:$0xff]  ;;  %v4127_v51 = vld [vmem:[%s7324_s1 + $0xcd8] sm:$0xff] }
0x11d6   : > { %v5390_v55 = vpop.f32.mrf.mxu0 }
0x11d7   : > { %v2836_v59 = vadd.f32 %v5390_v55, %v2646_v53  ;;  %v4126_v53 = vld [vmem:[%s7324_s1 + $0xcd0] sm:$0xff] }
0x11d8   : > { %v2826_v12 = vpop.f32.mrf.mxu0 }
0x11d9   : > { %v2835_v61 = vadd.f32 %v2826_v12, %v2645_v56  ;;  %5391 = vmatprep.subr.mxu1 %v2836_v59  ;;  %v4125_v56 = vld [vmem:[%s7324_s1 + $0xcc8] sm:$0xff] }
0x11da   : > { %5392 = vmatpush3.msra.mxu1 %v2836_v59 }
0x11db   : > { %5393 = vmatprep.subr.mxu1 %v2835_v61 }
0x11dc   : > { %5394 = vmatpush3.msra.mxu1 %v2835_v61  ;;  %v4124_v61 = vld [vmem:[%s7324_s1 + $0xcc0] sm:$0xff] }
0x11dd   : > { %5396 = vmatmul.mubr.msk.f32.vlgmr.msra.gmra.mxu1 %vm536_vm1, %v4114_v63  ;;  %5433 = vmatprep.subr.mxu1 %v4131_v46 }
0x11de   : > { %5434 = vmatpush3.msra.mxu1 %v4131_v46 }
0x11df   : > { %5435 = vmatprep.subr.mxu1 %v4130_v49 }
0x11e0   : > { %5436 = vmatpush3.msra.mxu1 %v4130_v49 }
0x11e1   : > { %5437 = vmatprep.subr.mxu1 %v4129_v50 }
0x11e2   : > { %5438 = vmatpush3.msra.mxu1 %v4129_v50  ;;  %v4176_v50 = vld [vmem:[%s7324_s1 + $0xe60] sm:$0xff] }
0x11e3   : > { %5439 = vmatprep.subr.mxu1 %v4128_v29 }
0x11e4   : > { %5440 = vmatpush3.msra.mxu1 %v4128_v29  ;;  %v4175_v29 = vld [vmem:[%s7324_s1 + $0xe58] sm:$0xff] }
0x11e5   : > { %5441 = vmatprep.subr.mxu1 %v4127_v51 }
0x11e6   : > { %5442 = vmatpush3.msra.mxu1 %v4127_v51  ;;  %v4174_v51 = vld [vmem:[%s7324_s1 + $0xe50] sm:$0xff] }
0x11e7   : > { %5443 = vmatprep.subr.mxu1 %v4126_v53 }
0x11e8   : > { %5444 = vmatpush3.msra.mxu1 %v4126_v53  ;;  %v4173_v53 = vld [vmem:[%s7324_s1 + $0xe48] sm:$0xff] }
0x11e9   : > { %5445 = vmatprep.subr.mxu1 %v4125_v56 }
0x11ea   : > { %5446 = vmatpush3.msra.mxu1 %v4125_v56  ;;  %v4171_v56 = vld [vmem:[%s7324_s1 + $0xe38] sm:$0xff] }
0x11eb   : > { %5447 = vmatprep.subr.mxu1 %v4124_v61 }
0x11ec   : > { %5448 = vmatpush3.msra.mxu1 %v4124_v61  ;;  %v4168_v61 = vld [vmem:[%s7324_s1 + $0xe20] sm:$0xff] }
0x11ed   : > { %5449 = vmatprep.subr.mxu1 %v4123_v0 }
0x11ee   : > { %5450 = vmatpush3.msra.mxu1 %v4123_v0  ;;  %v4166_v0 = vld [vmem:[%s7324_s1 + $0xe10] sm:$0xff] }
0x11ef   : > { %5451 = vmatprep.subr.mxu1 %v4122_v1 }
0x11f0   : > { %5452 = vmatpush3.msra.mxu1 %v4122_v1  ;;  %v4165_v1 = vld [vmem:[%s7324_s1 + $0xe08] sm:$0xff] }
0x11f1   : > { %5453 = vmatprep.subr.mxu1 %v4121_v47 }
0x11f2   : > { %5454 = vmatpush3.msra.mxu1 %v4121_v47  ;;  %v4164_v47 = vld [vmem:[%s7324_s1 + $0xe00] sm:$0xff] }
0x11f3   : > { %5455 = vmatprep.subr.mxu1 %v4120_v13 }
0x11f4   : > { %5456 = vmatpush3.msra.mxu1 %v4120_v13  ;;  %v3304_v13 = vld [vmem:[%s6100_s11 + $0x8] sm:$0xff] }
0x11f5   : > { %5457 = vmatprep.subr.mxu1 %v4119_v2 }
0x11f6   : > { %5458 = vmatpush3.msra.mxu1 %v4119_v2  ;;  %v5432_v2 = vpop.f32.mrf.mxu0 }
0x11f7   : > { %5459 = vmatprep.subr.mxu1 %v4118_v5 }
0x11f8   : > { %5460 = vmatpush3.msra.mxu1 %v4118_v5 }
0x11f9   : > { %5461 = vmatprep.subr.mxu1 %v4117_v20 }
0x11fa   : > { %5462 = vmatpush3.msra.mxu1 %v4117_v20  ;;  %v3123_v20 = vpop.f32.mrf.mxu0 }
0x11fb   : > { %5463 = vmatprep.subr.mxu1 %v4116_v3 }
0x11fc   : > { %5464 = vmatpush3.msra.mxu1 %v4116_v3 }
0x1216   : > { %v5502_v3 = vpop.f32.mrf.mxu0 }
0x129d   : > { %v5397_v22 = vpop.f32.mrf.mxu1 }
0x129e   : > { %v2926_v32 = vadd.f32 %v5397_v22, %v2742_v4  ;;  %v7166_v4 = vld [vmem:[%s7324_s1 + $0xe78] sm:$0xff]  ;;  %v4194_v22 = vld [vmem:[%s7324_s1 + $0xef0] sm:$0xff] }
0x129f   : > { %v2916_v58 = vpop.f32.mrf.mxu1  ;;  %5503 = vmatprep.subr.mxu1 %v7166_v4 }
0x12a0   : > { %v2932_v16 = vadd.f32 %v2930_v54, %v2926_v32  ;;  %v2925_v18 = vadd.f32 %v2916_v58, %v2741_v7  ;;  %v4193_v7 = vld [vmem:[%s7324_s1 + $0xee8] sm:$0xff]  ;;  %v4192_v32 = vld [vmem:[%s7324_s1 + $0xee0] sm:$0xff]  ;;  %v4191_v58 = vld [vmem:[%s7324_s1 + $0xed8] sm:$0xff] }
0x12a2   : > { %v2931_v23 = vadd.f32 %v2930_v54, %v2925_v18  ;;  %2935 = vrot.lane.b32.xlu1 %v2932_v16, %s5625_s15  ;;  %v4195_v54 = vld [vmem:[%s7324_s1 + $0xef8] sm:$0xff]  ;;  %v4189_v18 = vld [vmem:[%s7324_s1 + $0xec8] sm:$0xff] }
0x12a3   : > { %5538 = vmatprep.subr.mxu0 %v4195_v54 }
0x12a4   : > { %2933 = vrot.lane.b32.xlu0 %v2931_v23, %s5625_s15  ;;  %5539 = vmatpush3.msra.mxu0 %v4195_v54 }
0x12a5   : > { %5540 = vmatprep.subr.mxu0 %v4194_v22 }
0x12a6   : > { %5541 = vmatpush3.msra.mxu0 %v4194_v22 }
0x12a7   : > { %5542 = vmatprep.subr.mxu0 %v4193_v7 }
0x12a8   : > { %5543 = vmatpush3.msra.mxu0 %v4193_v7  ;;  %v7282_v7 = vsub.s32 4, %v5757_v19 }
0x12a9   : > { %5544 = vmatprep.subr.mxu0 %v4192_v32 }
0x12aa   : > { %5545 = vmatpush3.msra.mxu0 %v4192_v32  ;;  %v3292_v32 = vpop.f32.mrf.mxu0 }
0x12ab   : > { %5546 = vmatprep.subr.mxu0 %v4191_v58 }
0x12ac   : > { %5547 = vmatpush3.msra.mxu0 %v4191_v58 }
0x1314   : > { %v2936_v26 = vpop.permute.xlu1 %2935 }
0x1315   : > { %v2938_v27 = vadd.f32 %v2936_v26, %v2932_v16  ;;  %v4187_v26 = vld [vmem:[%s7324_s1 + $0xeb8] sm:$0xff] }
0x1316   : > { %v2934_v28 = vpop.permute.xlu0 %2933 }
0x1317   : > { %v2937_v30 = vadd.f32 %v2934_v28, %v2931_v23  ;;  %2941 = vrot.lane.b32.xlu1 %v2938_v27, %s5626_s16  ;;  %v4185_v28 = vld [vmem:[%s7324_s1 + $0xea8] sm:$0xff] }
0x1319   : > { %2939 = vrot.lane.b32.xlu0 %v2937_v30, %s5626_s16 }
0x1389   : > { %v2942_v24 = vpop.permute.xlu1 %2941 }
0x138a   : > { %v2944_v31 = vadd.f32 %v2942_v24, %v2938_v27  ;;  %v4186_v27 = vld [vmem:[%s7324_s1 + $0xeb0] sm:$0xff]  ;;  %v4183_v24 = vld [vmem:[%s7324_s1 + $0xe98] sm:$0xff] }
0x138b   : > { %v2940_v33 = vpop.permute.xlu0 %2939 }
0x138c   : > { %v2943_v34 = vadd.f32 %v2940_v33, %v2937_v30  ;;  %2947 = vrot.lane.b32.xlu1 %v2944_v31, %s5627_s17  ;;  %v4184_v30 = vld [vmem:[%s7324_s1 + $0xea0] sm:$0xff]  ;;  %v4181_v33 = vld [vmem:[%s7324_s1 + $0xe88] sm:$0xff] }
0x138e   : > { %2945 = vrot.lane.b32.xlu0 %v2943_v34, %s5627_s17 }
0x13fe   : > { %v2948_v35 = vpop.permute.xlu1 %2947 }
0x13ff   : > { %v2950_v11 = vadd.f32 %v2948_v35, %v2944_v31  ;;  %v4182_v31 = vld [vmem:[%s7324_s1 + $0xe90] sm:$0xff]  ;;  %v3399_v35 = vld [vmem:[%s5710_s26] sm:$0xff] }
0x1400   : > { %v2946_v6 = vpop.permute.xlu0 %2945  ;;  %5570 = vmatprep.mubr.f32.mxu0 %v3399_v35 }
0x1401   : > { %v2949_v36 = vadd.f32 %v2946_v6, %v2943_v34  ;;  %2953 = vrot.lane.b32.xlu1 %v2950_v11, %s5628_s18  ;;  %v4180_v34 = vld [vmem:[%s7324_s1 + $0xe80] sm:$0xff] }
0x1403   : > { %2951 = vrot.lane.b32.xlu0 %v2949_v36, %s5628_s18 }
0x1473   : > { %v2954_v37 = vpop.permute.xlu1 %2953 }
0x1474   : > { %v2956_v38 = vadd.f32 %v2954_v37, %v2950_v11  ;;  %v3400_v11 = vld [vmem:[%s5710_s26 + $0x8] sm:$0xff] }
0x1475   : > { %v2952_v8 = vpop.permute.xlu0 %2951 }
0x1476   : > { %v2958_v10 = vmul.f32 0.0625, %v2956_v38  ;;  %v2955_v39 = vadd.f32 %v2952_v8, %v2949_v36 }
0x1478   : > { %v7093_v17 = vsub.f32 %v2932_v16, %v2958_v10  ;;  %v2957_v40 = vmul.f32 0.0625, %v2955_v39  ;;  %v4190_v16 = vld [vmem:[%s7324_s1 + $0xed0] sm:$0xff] }
0x1479   : > { %5548 = vmatprep.subr.mxu0 %v4190_v16 }
0x147a   : > { %v7095_v14 = vsub.f32 %v2931_v23, %v2957_v40  ;;  %v2962_v15 = vmul.f32 %v7093_v17, %v7093_v17  ;;  %5549 = vmatpush3.msra.mxu0 %v4190_v16  ;;  %v4188_v23 = vld [vmem:[%s7324_s1 + $0xec0] sm:$0xff] }
0x147b   : > { %5550 = vmatprep.subr.mxu0 %v4189_v18 }
0x147c   : > { %2965 = vrot.lane.b32.xlu1 %v2962_v15, %s5625_s15  ;;  %v2961_v52 = vmul.f32 %v7095_v14, %v7095_v14  ;;  %5551 = vmatpush3.msra.mxu0 %v4189_v18 }
0x147d   : > { %5552 = vmatprep.subr.mxu0 %v4188_v23 }
0x147e   : > { %2963 = vrot.lane.b32.xlu0 %v2961_v52, %s5625_s15  ;;  %5553 = vmatpush3.msra.mxu0 %v4188_v23 }
0x147f   : > { %5554 = vmatprep.subr.mxu0 %v4187_v26 }
0x1480   : > { %5555 = vmatpush3.msra.mxu0 %v4187_v26  ;;  %v5612_v26 = vld [vmem:[%s7325_s2] sm:$0x1f] }
0x1481   : > { %5556 = vmatprep.subr.mxu0 %v4186_v27 }
0x1482   : > { %5557 = vmatpush3.msra.mxu0 %v4186_v27  ;;  %v3498_v27 = vrot.slane %v5612_v26, %v7282_v7 }
0x1483   : > { %5558 = vmatprep.subr.mxu0 %v4185_v28 }
0x1484   : > { %5559 = vmatpush3.msra.mxu0 %v4185_v28 }
0x1485   : > { %5560 = vmatprep.subr.mxu0 %v4184_v30 }
0x1486   : > { %5561 = vmatpush3.msra.mxu0 %v4184_v30 }
0x1487   : > { %5562 = vmatprep.subr.mxu0 %v4183_v24 }
0x1488   : > { %5563 = vmatpush3.msra.mxu0 %v4183_v24 }
0x1489   : > { %5564 = vmatprep.subr.mxu0 %v4182_v31 }
0x148a   : > { %5565 = vmatpush3.msra.mxu0 %v4182_v31 }
0x148b   : > { %5566 = vmatprep.subr.mxu0 %v4181_v33 }
0x148c   : > { %5567 = vmatpush3.msra.mxu0 %v4181_v33 }
0x148d   : > { %5568 = vmatprep.subr.mxu0 %v4180_v34 }
0x148e   : > { %5569 = vmatpush3.msra.mxu0 %v4180_v34 }
0x148f   : > { %5571 = vmatmul.mubr.f32.vlgmr.msra.gmra.mxu0 %v3400_v11 }
0x14ee   : > { %v2966_v57 = vpop.permute.xlu1 %2965 }
0x14ef   : > { %v2968_v21 = vadd.f32 %v2966_v57, %v2962_v15  ;;  %v2998_v15 = vrot.slane %v6797_v60, %v7081_v48 }
0x14f0   : > { %v2964_v25 = vpop.permute.xlu0 %2963 }
0x14f1   : > { %v2967_v41 = vadd.f32 %v2964_v25, %v2961_v52  ;;  %2971 = vrot.lane.b32.xlu1 %v2968_v21, %s5626_s16 }
0x14f3   : > { %2969 = vrot.lane.b32.xlu0 %v2967_v41, %s5626_s16 }
0x154f   : > { %v5572_v18 = vpop.f32.mrf.mxu0 }
0x1551   : > { %v3484_v33 = vpop.f32.mrf.mxu0 }
0x1563   : > { %v2972_v42 = vpop.permute.xlu1 %2971 }
0x1564   : > { %v2974_v43 = vadd.f32 %v2972_v42, %v2968_v21  ;;  %v3004_v21 = vrot.slane %v6804_v62, %v7081_v48 }
0x1565   : > { %v2970_v44 = vpop.permute.xlu0 %2969 }
0x1566   : > { %v2973_v45 = vadd.f32 %v2970_v44, %v2967_v41  ;;  %2977 = vrot.lane.b32.xlu1 %v2974_v43, %s5627_s17 }
0x1568   : > { %2975 = vrot.lane.b32.xlu0 %v2973_v45, %s5627_s17 }
0x15d8   : > { %v2978_v55 = vpop.permute.xlu1 %2977 }
0x15d9   : > { %v7128_v59 = vadd.f32 %v2978_v55, %v2974_v43  ;;  %v3012_v43 = vrot.slane %v6812_v9, %v7081_v48  ;;  %v4178_v9 = vld [vmem:[%s7324_s1 + $0xe70] sm:$0xff]  ;;  %v3303_v48 = vld [vmem:[%s6100_s11] sm:$0xff] }
0x15da   : > { %v2976_v12 = vpop.permute.xlu0 %2975  ;;  %v4172_v55 = vld [vmem:[%s7324_s1 + $0xe40] sm:$0xff] }
0x15db   : > { %v7133_v63 = vadd.f32 %v2976_v12, %v2973_v45  ;;  %2983 = vrot.lane.b32.xlu1 %v7128_v59, %s5628_s18  ;;  %v4169_v12 = vld [vmem:[%s7324_s1 + $0xe28] sm:$0xff] }
0x15dd   : > { %2981 = vrot.lane.b32.xlu0 %v7133_v63, %s5628_s18 }
0x164d   : > { %v2984_v6 = vpop.permute.xlu1 %2983 }
0x164e   : > { %v2986_v36 = vadd.f32 %v2984_v6, %v7128_v59  ;;  %v4170_v59 = vld [vmem:[%s7324_s1 + $0xe30] sm:$0xff] }
0x164f   : > { %v2982_v37 = vpop.permute.xlu0 %2981 }
0x1650   : > { %v2988_v38 = vmul.f32 0.0625, %v2986_v36  ;;  %v2985_v8 = vadd.f32 %v2982_v37, %v7133_v63  ;;  %v4167_v63 = vld [vmem:[%s7324_s1 + $0xe18] sm:$0xff] }
0x1652   : > { %v2990_v10 = vadd.f32 1e-05, %v2988_v38  ;;  %v2987_v39 = vmul.f32 0.0625, %v2985_v8 }
0x1654   : > { %5598 = vrsqrt.f32 %v2990_v10  ;;  %v2989_v40 = vadd.f32 1e-05, %v2987_v39 }
0x1656   : > { %5600 = vrsqrt.f32 %v2989_v40 }
0x1661   : > { %v5599_v52 = vpop.eup %5598 }
0x1662   : > { %v2994_v57 = vmul.f32 %v5599_v52, %v7093_v17 }
0x1663   : > { %v5601_v25 = vpop.eup %5600 }
0x1664   : > { %v2993_v41 = vmul.f32 %v5601_v25, %v7095_v14  ;;  %v3000_v42 = vmul.f32 %v2998_v15, %v2994_v57  ;;  %v4177_v14 = vld [vmem:[%s7324_s1 + $0xe68] sm:$0xff] }
0x1666   : > { %v2999_v44 = vmul.f32 %v2998_v15, %v2993_v41  ;;  %v3006_v45 = vadd.f32 %v3004_v21, %v3000_v42 }
0x1668   : > { %v3005_v60 = vadd.f32 %v3004_v21, %v2999_v44  ;;  %vm3008_vm14 = vcmp.gt.f32.partialorder %v3006_v45, 0.0  ;;  %v3014_v17 = vmul.f32 %v3012_v43, %v3006_v45 }
0x166a   : > { %vm3007_vm15 = vcmp.gt.f32.partialorder %v3005_v60, 0.0  ;;  %v3013_v46 = vmul.f32 %v3012_v43, %v3005_v60  ;;  %v3016_v62 = vsel %vm3008_vm14, %v3006_v45, %v3014_v17 }
0x166b   : > { %3018 = vst [vmem:[%s403_s12 + $0x8] sm:$0xff] %v3016_v62 }
0x166c   : > { %v3015_v49 = vsel %vm3007_vm15, %v3005_v60, %v3013_v46 }
0x166d   : > { %3017 = vst [vmem:[%s403_s12] sm:$0xff] %v3015_v49  ;;  %5465 = vmatprep.mubr.f32.mxu1 %v3015_v49 }
0x166e   : > { %5466 = vmatmul.mubr.f32.vlgmr.msra.gmra.mxu1 %v3016_v62 }
0x166f   : > { %5504 = vmatpush3.msra.mxu1 %v7166_v4  ;;  %5535 = vmatprep.mubr.f32.mxu1 %v3303_v48 }
0x1670   : > { %5505 = vmatprep.subr.mxu1 %v4178_v9 }
0x1671   : > { %5506 = vmatpush3.msra.mxu1 %v4178_v9 }
0x1672   : > { %5507 = vmatprep.subr.mxu1 %v4177_v14 }
0x1673   : > { %5508 = vmatpush3.msra.mxu1 %v4177_v14 }
0x1674   : > { %5509 = vmatprep.subr.mxu1 %v4176_v50 }
0x1675   : > { %5510 = vmatpush3.msra.mxu1 %v4176_v50 }
0x1676   : > { %5511 = vmatprep.subr.mxu1 %v4175_v29 }
0x1677   : > { %5512 = vmatpush3.msra.mxu1 %v4175_v29 }
0x1678   : > { %5513 = vmatprep.subr.mxu1 %v4174_v51 }
0x1679   : > { %5514 = vmatpush3.msra.mxu1 %v4174_v51 }
0x167a   : > { %5515 = vmatprep.subr.mxu1 %v4173_v53 }
0x167b   : > { %5516 = vmatpush3.msra.mxu1 %v4173_v53 }
0x167c   : > { %5517 = vmatprep.subr.mxu1 %v4172_v55 }
0x167d   : > { %5518 = vmatpush3.msra.mxu1 %v4172_v55 }
0x167e   : > { %5519 = vmatprep.subr.mxu1 %v4171_v56 }
0x167f   : > { %5520 = vmatpush3.msra.mxu1 %v4171_v56 }
0x1680   : > { %5521 = vmatprep.subr.mxu1 %v4170_v59 }
0x1681   : > { %5522 = vmatpush3.msra.mxu1 %v4170_v59 }
0x1682   : > { %5523 = vmatprep.subr.mxu1 %v4169_v12 }
0x1683   : > { %5524 = vmatpush3.msra.mxu1 %v4169_v12 }
0x1684   : > { %5525 = vmatprep.subr.mxu1 %v4168_v61 }
0x1685   : > { %5526 = vmatpush3.msra.mxu1 %v4168_v61 }
0x1686   : > { %5527 = vmatprep.subr.mxu1 %v4167_v63 }
0x1687   : > { %5528 = vmatpush3.msra.mxu1 %v4167_v63 }
0x1688   : > { %5529 = vmatprep.subr.mxu1 %v4166_v0 }
0x1689   : > { %5530 = vmatpush3.msra.mxu1 %v4166_v0 }
0x168a   : > { %5531 = vmatprep.subr.mxu1 %v4165_v1 }
0x168b   : > { %5532 = vmatpush3.msra.mxu1 %v4165_v1 }
0x168c   : > { %5533 = vmatprep.subr.mxu1 %v4164_v47 }
0x168d   : > { %5534 = vmatpush3.msra.mxu1 %v4164_v47 }
0x168e   : > { %5536 = vmatmul.mubr.f32.vlgmr.msra.gmra.mxu1 %v3304_v13 }
0x172e   : > { %v5467_v5 = vpop.f32.mrf.mxu1 }
0x172f   : > { %v3204_v54 = vadd.f32 %v5467_v5, %v5432_v2  ;;  %v5613_v5 = vld [vmem:[%s7326_s3] sm:$0x1f] }
0x1730   : > { %v3198_v4 = vpop.f32.mrf.mxu1 }
0x1731   : > { %v3199_v22 = vadd.f32 %v3198_v4, %v3123_v20  ;;  %v3302_v58 = vadd.f32 %v5502_v3, %v3204_v54  ;;  %v3566_v20 = vrot.slane %v5613_v5, %v7282_v7  ;;  %v5614_v4 = vld [vmem:[%s7327_s4] sm:$0x1f] }
0x1732   : > { %v3572_v54 = vrot.slane %v5614_v4, %v7282_v7 }
0x1733   : > { %v3301_v28 = vadd.f32 %v3292_v32, %v3199_v22 }
0x174e   : > { %v5537_v16 = vpop.f32.mrf.mxu1 }
0x174f   : > { %v3398_v23 = vadd.f32 %v5537_v16, %v3302_v58  ;;  %v5615_v58 = vld [vmem:[%s7328_s5] sm:$0x1f] }
0x1750   : > { %v3388_v30 = vpop.f32.mrf.mxu1  ;;  %v3580_v16 = vrot.slane %v5615_v58, %v7282_v7 }
0x1751   : > { %v3494_v24 = vadd.f32 %v5572_v18, %v3398_v23  ;;  %v3397_v31 = vadd.f32 %v3388_v30, %v3301_v28 }
0x1753   : > { %v3500_v34 = vadd.f32 %v3498_v27, %v3494_v24  ;;  %v3493_v35 = vadd.f32 %v3484_v33, %v3397_v31 }
0x1755   : > { %v3499_v19 = vadd.f32 %v3498_v27, %v3493_v35  ;;  %3503 = vrot.lane.b32.xlu1 %v3500_v34, %s5625_s15 }
0x1757   : > { %3501 = vrot.lane.b32.xlu0 %v3499_v19, %s5625_s15 }
0x17c7   : > { %v3504_v11 = vpop.permute.xlu1 %3503 }
0x17c8   : > { %v3506_v6 = vadd.f32 %v3504_v11, %v3500_v34 }
0x17c9   : > { %v3502_v36 = vpop.permute.xlu0 %3501 }
0x17ca   : > { %v3505_v37 = vadd.f32 %v3502_v36, %v3499_v19  ;;  %3509 = vrot.lane.b32.xlu1 %v3506_v6, %s5626_s16 }
0x17cc   : > { %3507 = vrot.lane.b32.xlu0 %v3505_v37, %s5626_s16 }
0x183c   : > { %v3510_v38 = vpop.permute.xlu1 %3509 }
0x183d   : > { %v3512_v8 = vadd.f32 %v3510_v38, %v3506_v6 }
0x183e   : > { %v3508_v10 = vpop.permute.xlu0 %3507 }
0x183f   : > { %v3511_v39 = vadd.f32 %v3508_v10, %v3505_v37  ;;  %3515 = vrot.lane.b32.xlu1 %v3512_v8, %s5627_s17 }
0x1841   : > { %3513 = vrot.lane.b32.xlu0 %v3511_v39, %s5627_s17 }
0x18b1   : > { %v3516_v40 = vpop.permute.xlu1 %3515 }
0x18b2   : > { %v3518_v15 = vadd.f32 %v3516_v40, %v3512_v8 }
0x18b3   : > { %v3514_v52 = vpop.permute.xlu0 %3513 }
0x18b4   : > { %v3517_v57 = vadd.f32 %v3514_v52, %v3511_v39  ;;  %3521 = vrot.lane.b32.xlu1 %v3518_v15, %s5628_s18 }
0x18b6   : > { %3519 = vrot.lane.b32.xlu0 %v3517_v57, %s5628_s18 }
0x1926   : > { %v3522_v21 = vpop.permute.xlu1 %3521 }
0x1927   : > { %v3524_v25 = vadd.f32 %v3522_v21, %v3518_v15 }
0x1928   : > { %v3520_v41 = vpop.permute.xlu0 %3519 }
0x1929   : > { %v3526_v42 = vmul.f32 0.0625, %v3524_v25  ;;  %v3523_v43 = vadd.f32 %v3520_v41, %v3517_v57 }
0x192b   : > { %v3528_v44 = vsub.f32 %v3500_v34, %v3526_v42  ;;  %v3525_v45 = vmul.f32 0.0625, %v3523_v43 }
0x192d   : > { %v3527_v60 = vsub.f32 %v3499_v19, %v3525_v45  ;;  %v3530_v17 = vmul.f32 %v3528_v44, %v3528_v44 }
0x192f   : > { %3533 = vrot.lane.b32.xlu1 %v3530_v17, %s5625_s15  ;;  %v3529_v46 = vmul.f32 %v3527_v60, %v3527_v60 }
0x1931   : > { %3531 = vrot.lane.b32.xlu0 %v3529_v46, %s5625_s15 }
0x19a1   : > { %v3534_v62 = vpop.permute.xlu1 %3533 }
0x19a2   : > { %v3536_v49 = vadd.f32 %v3534_v62, %v3530_v17 }
0x19a3   : > { %v3532_v9 = vpop.permute.xlu0 %3531 }
0x19a4   : > { %v3535_v48 = vadd.f32 %v3532_v9, %v3529_v46  ;;  %3539 = vrot.lane.b32.xlu1 %v3536_v49, %s5626_s16 }
0x19a6   : > { %3537 = vrot.lane.b32.xlu0 %v3535_v48, %s5626_s16 }
0x1a16   : > { %v3540_v14 = vpop.permute.xlu1 %3539 }
0x1a17   : > { %v3542_v50 = vadd.f32 %v3540_v14, %v3536_v49 }
0x1a18   : > { %v3538_v29 = vpop.permute.xlu0 %3537 }
0x1a19   : > { %v3541_v51 = vadd.f32 %v3538_v29, %v3535_v48  ;;  %3545 = vrot.lane.b32.xlu1 %v3542_v50, %s5627_s17 }
0x1a1b   : > { %3543 = vrot.lane.b32.xlu0 %v3541_v51, %s5627_s17 }
0x1a8b   : > { %v3546_v53 = vpop.permute.xlu1 %3545 }
0x1a8c   : > { %v3548_v55 = vadd.f32 %v3546_v53, %v3542_v50 }
0x1a8d   : > { %v3544_v56 = vpop.permute.xlu0 %3543 }
0x1a8e   : > { %v3547_v59 = vadd.f32 %v3544_v56, %v3541_v51  ;;  %3551 = vrot.lane.b32.xlu1 %v3548_v55, %s5628_s18 }
0x1a90   : > { %3549 = vrot.lane.b32.xlu0 %v3547_v59, %s5628_s18 }
0x1b00   : > { %v3552_v12 = vpop.permute.xlu1 %3551 }
0x1b01   : > { %v3554_v61 = vadd.f32 %v3552_v12, %v3548_v55 }
0x1b02   : > { %v3550_v63 = vpop.permute.xlu0 %3549 }
0x1b03   : > { %v3556_v0 = vmul.f32 0.0625, %v3554_v61  ;;  %v3553_v1 = vadd.f32 %v3550_v63, %v3547_v59 }
0x1b05   : > { %v3558_v47 = vadd.f32 1e-05, %v3556_v0  ;;  %v3555_v13 = vmul.f32 0.0625, %v3553_v1 }
0x1b07   : > { %5602 = vrsqrt.f32 %v3558_v47  ;;  %v3557_v2 = vadd.f32 1e-05, %v3555_v13 }
0x1b09   : > { %5604 = vrsqrt.f32 %v3557_v2 }
0x1b14   : > { %v5603_v3 = vpop.eup %5602 }
0x1b15   : > { %v3562_v22 = vmul.f32 %v5603_v3, %v3528_v44 }
0x1b16   : > { %v5605_v32 = vpop.eup %5604 }
0x1b17   : > { %v3568_v18 = vmul.f32 %v3566_v20, %v3562_v22  ;;  %v3561_v23 = vmul.f32 %v5605_v32, %v3527_v60 }
0x1b19   : > { %v3574_v26 = vadd.f32 %v3572_v54, %v3568_v18  ;;  %v3567_v27 = vmul.f32 %v3566_v20, %v3561_v23 }
0x1b1b   : > { %vm3576_vm0 = vcmp.gt.f32.partialorder %v3574_v26, 0.0  ;;  %v3582_v28 = vmul.f32 %v3580_v16, %v3574_v26  ;;  %v3573_v30 = vadd.f32 %v3572_v54, %v3567_v27 }
0x1b1d   : > { %v3584_v24 = vsel %vm3576_vm0, %v3574_v26, %v3582_v28  ;;  %vm3575_vm1 = vcmp.gt.f32.partialorder %v3573_v30, 0.0  ;;  %v3581_v31 = vmul.f32 %v3580_v16, %v3573_v30 }
0x1b1e   : > { %3586 = vst [vmem:[%s408_s29 + $0x8] sm:$0xff] %v3584_v24 }
0x1b1f   : > { %v3583_v33 = vsel %vm3575_vm1, %v3573_v30, %v3581_v31 }
0x1b20   : > { %3585 = vst [vmem:[%s408_s29] sm:$0xff] %v3583_v33 }
0x1b21 PF: > { %s21_s13 = sadd.s32 1, %s5622_s13  }
0x1b22   : > { %p18_p4 = scmp.ge.s32.totalorder %s21_s13, 4  }
0x1b24   :  { %20 = sbr.rel (!%p18_p4) target bundleno = 1 (0x1), region = 146 }

</bundles_post_ra>
